<compile_context>
chip_gen: v6e
topology: v6e:2x2x1
jax: 0.10.0
libtpu: 0.0.40
codegen_flags: <defaults>
</compile_context>

<pallas_src>
import jax
import jax.numpy as jnp
from jax import lax
from jax.experimental import pallas as pl
from jax.experimental.pallas import tpu as pltpu

EPS = 1e-5
NEG_SLOPE = 0.2
LANE = 128
ROW_ALIGN = 16  # bf16 staging scratch is (16, 128)-tiled -> keep row offsets aligned


def _leaky(v):
    return jnp.where(v > 0, v, NEG_SLOPE * v)


def _round_up(v, m):
    return (v + m - 1) // m * m


def _pad_to(a, shape, value=0.0):
    pads = [(0, t - s) for s, t in zip(a.shape, shape)]
    if all(p == (0, 0) for p in pads):
        return a
    return jnp.pad(a, pads, constant_values=value)


def _vmem_budget():
    """Per-generation scoped-VMEM budget: ~0.75 of physical VMEM."""
    try:
        cap = pltpu.get_tpu_info().vmem_capacity_bytes
    except Exception:
        cap = 64 * 1024 * 1024  # conservative fallback (v7x per-TC size)
    return int(0.75 * cap)


# ----------------------------------------------------------------------------
# Fast path: whole batch resident, single grid step (no pipeline overhead).
# ----------------------------------------------------------------------------
def _make_single_kernel(n_rows):
    inv_n = 1.0 / float(n_rows)

    def kernel(x_ref, w1_ref, g1_ref, be1_ref, w2_ref, g2_ref, be2_ref, o_ref):
        x = x_ref[...]
        # Linear bias omitted: cancels under training-mode BatchNorm.
        h = jnp.dot(x.astype(jnp.bfloat16), w1_ref[...],
                    preferred_element_type=jnp.float32)
        mean = jnp.sum(h, axis=0, keepdims=True) * inv_n
        var = jnp.maximum(jnp.sum(h * h, axis=0, keepdims=True) * inv_n
                          - mean * mean, 0.0)
        a1 = g1_ref[...] * lax.rsqrt(var + EPS)
        b1 = be1_ref[...] - mean * a1
        hn = _leaky(h * a1 + b1)
        y = jnp.dot(hn.astype(jnp.bfloat16), w2_ref[...],
                    preferred_element_type=jnp.float32)
        mean2 = jnp.sum(y, axis=0, keepdims=True) * inv_n
        var2 = jnp.maximum(jnp.sum(y * y, axis=0, keepdims=True) * inv_n
                           - mean2 * mean2, 0.0)
        a2 = g2_ref[...] * lax.rsqrt(var2 + EPS)
        b2 = be2_ref[...] - mean2 * a2
        z = y * a2 + b2 + x
        o_ref[...] = _leaky(z).astype(o_ref.dtype)

    return kernel


# ----------------------------------------------------------------------------
# Streaming path: 3-phase grid over a VMEM-resident bf16 staging of the batch.
#   phase 0: h = x @ W1, cache bf16 x, accumulate BN1 sum/sumsq (f32)
#   phase 1: fold BN1 + LeakyReLU, y = hn @ W2, accumulate BN2 stats
#   phase 2: fold BN2 + residual (from VMEM x cache) + LeakyReLU -> out
# ----------------------------------------------------------------------------
def _make_streaming_kernel(n_real, n_padded, tn):
    inv_n = 1.0 / float(n_real)
    ragged = n_padded != n_real

    def kernel(x_ref, w1_hbm, g1_ref, be1_ref, w2_hbm, g2_ref, be2_ref, o_ref,
               hy_ref, xc_ref, w1_ref, w2_ref, sum_ref, sq_ref, a_ref, b_ref):
        p = pl.program_id(0)            # phase
        i = pl.program_id(1)            # batch tile
        row = pl.multiple_of(i * tn, tn)

        # ---- one-time init: zero stats, load weights once (single-buffered) ----
        @pl.when((p == 0) & (i == 0))
        def _():
            sum_ref[...] = jnp.zeros_like(sum_ref)
            sq_ref[...] = jnp.zeros_like(sq_ref)
            pltpu.sync_copy(w1_hbm, w1_ref)
            pltpu.sync_copy(w2_hbm, w2_ref)

        # ---- phase 0 -----------------------------------------------------------
        @pl.when(p == 0)
        def _():
            xb = x_ref[...].astype(jnp.bfloat16)
            xc_ref[pl.ds(row, tn), :] = xb                      # residual cache
            h = jnp.dot(xb, w1_ref[...], preferred_element_type=jnp.float32)
            hy_ref[pl.ds(row, tn), :] = h.astype(jnp.bfloat16)  # bf16 staging
            # Padded (zero) rows contribute exactly 0 (bias dropped), stats exact.
            sum_ref[...] += jnp.sum(h, axis=0, keepdims=True)
            sq_ref[...] += jnp.sum(h * h, axis=0, keepdims=True)

        # ---- phase 1: fold BN1 into per-feature scale/shift --------------------
        @pl.when((p == 1) & (i == 0))
        def _():
            mean = sum_ref[...] * inv_n
            var = jnp.maximum(sq_ref[...] * inv_n - mean * mean, 0.0)
            a = g1_ref[...] * lax.rsqrt(var + EPS)
            a_ref[...] = a
            b_ref[...] = be1_ref[...] - mean * a
            sum_ref[...] = jnp.zeros_like(sum_ref)
            sq_ref[...] = jnp.zeros_like(sq_ref)

        @pl.when(p == 1)
        def _():
            # TODO(synk): on v6e/v7x this fold + LeakyReLU could run in bf16.
            h = hy_ref[pl.ds(row, tn), :].astype(jnp.float32)
            hn = _leaky(h * a_ref[...] + b_ref[...])
            if ragged:
                rid = row + lax.broadcasted_iota(jnp.int32, (tn, 1), 0)
                hn = jnp.where(rid < n_real, hn, 0.0)   # keep BN2 stats exact
            y = jnp.dot(hn.astype(jnp.bfloat16), w2_ref[...],
                        preferred_element_type=jnp.float32)
            hy_ref[pl.ds(row, tn), :] = y.astype(jnp.bfloat16)  # overwrite in place
            sum_ref[...] += jnp.sum(y, axis=0, keepdims=True)
            sq_ref[...] += jnp.sum(y * y, axis=0, keepdims=True)

        # ---- phase 2: fold BN2, residual from VMEM cache, final LeakyReLU ------
        @pl.when((p == 2) & (i == 0))
        def _():
            mean = sum_ref[...] * inv_n
            var = jnp.maximum(sq_ref[...] * inv_n - mean * mean, 0.0)
            a = g2_ref[...] * lax.rsqrt(var + EPS)
            a_ref[...] = a
            b_ref[...] = be2_ref[...] - mean * a

        @pl.when(p == 2)
        def _():
            y = hy_ref[pl.ds(row, tn), :].astype(jnp.float32)
            z = (y * a_ref[...] + b_ref[...]
                 + xc_ref[pl.ds(row, tn), :].astype(jnp.float32))
            o_ref[...] = _leaky(z).astype(o_ref.dtype)

    return kernel


def _prep_params(params, d, dp):
    w1_p = _pad_to(params["w1"], (dp, dp)).astype(jnp.bfloat16)
    w2_p = _pad_to(params["w2"], (dp, dp)).astype(jnp.bfloat16)
    g1_p = _pad_to(params["g1"].reshape(1, d), (1, dp), 1.0)
    be1_p = _pad_to(params["be1"].reshape(1, d), (1, dp))
    g2_p = _pad_to(params["g2"].reshape(1, d), (1, dp), 1.0)
    be2_p = _pad_to(params["be2"].reshape(1, d), (1, dp))
    return w1_p, w2_p, g1_p, be1_p, g2_p, be2_p


def basic_block(x, params, *, force_streaming=False, row_tile=None):
    """Fused BasicBlock forward (training-mode BN).  x: (N, D) f32, identity shortcut."""
    n, d_in = x.shape
    d = params["w1"].shape[1]
    assert d_in == d, "identity shortcut requires in_dims == out_dims"
    dp = _round_up(d, LANE)
    budget = _vmem_budget()
    w1_p, w2_p, g1_p, be1_p, g2_p, be2_p = _prep_params(params, d, dp)
    # NOTE: Linear biases b1/b2 are intentionally NOT passed — they cancel exactly
    # in training-mode BatchNorm (mean subtraction is shift-invariant).

    # ---------------- fast path: whole batch in one grid-less call ----------------
    single_est = 5 * n * dp * 4 + 2 * dp * dp * 2 + 32 * dp * 4
    if not force_streaming and single_est <= budget // 2:
        x_p = _pad_to(x.astype(jnp.float32), (n, dp))
        vmem_limit = int(min(max(2 * single_est, 16 * 1024 * 1024), budget))
        out = pl.pallas_call(
            _make_single_kernel(n),
            out_shape=jax.ShapeDtypeStruct((n, dp), x.dtype),
            compiler_params=pltpu.CompilerParams(vmem_limit_bytes=vmem_limit),
        )(x_p, w1_p, g1_p, be1_p, w2_p, g2_p, be2_p)
        return out[:, :d]

    # ---------------- streaming path: 3-phase grid, tiled batch -------------------
    # Resident VMEM: bf16 h/y staging + bf16 x cache + single-buffered bf16 weights.
    resident = 2 * _round_up(n, ROW_ALIGN) * dp * 2 + 2 * dp * dp * 2
    if row_tile is not None:
        tn = int(row_tile)
        assert tn % ROW_ALIGN == 0, "row_tile must be a multiple of 16"
    else:
        avail = max(budget - resident, 0)
        per_row = 2 * 2 * dp * 4          # x-in / out tiles, double-buffered, f32
        n_align = _round_up(n, ROW_ALIGN)
        tn = ROW_ALIGN
        for cand in (1024, 512, 256, 128, 64, 32, 16):
            if cand <= n_align and cand * per_row <= avail:
                tn = cand
                break
    n_p = _round_up(n, tn)
    nt = n_p // tn
    # TODO(synk): if the bf16 (n_p, dp) staging exceeds the VMEM budget, stage h/y
    # in HBM and split into multiple pallas_calls (two-pass BN with stats between).

    x_p = _pad_to(x.astype(jnp.float32), (n_p, dp))

    full = lambda p_, i_: (0, 0)
    x_map = lambda p_, i_: (jnp.where(p_ == 0, i_, 0), 0)    # x read only in phase 0
    out_map = lambda p_, i_: (jnp.where(p_ == 2, i_, 0), 0)  # out written only in phase 2

    est = (2 * n_p * dp * 2            # bf16 staging + x cache
           + 2 * dp * dp * 2           # single-buffered weights
           + 2 * 2 * tn * dp * 4       # streamed x / out tiles (double-buffered)
           + 96 * dp * 4)              # per-feature vectors & BN params
    vmem_limit = int(min(max(2 * est, 16 * 1024 * 1024), budget))

    grid_spec = pltpu.PrefetchScalarGridSpec(
        num_scalar_prefetch=0,
        grid=(3, nt),
        in_specs=[
            pl.BlockSpec((tn, dp), x_map),          # x (streamed, double-buffered)
            pl.BlockSpec(memory_space=pl.ANY),      # W1 (HBM; DMA'd once into scratch)
            pl.BlockSpec((1, dp), full),            # gamma1
            pl.BlockSpec((1, dp), full),            # beta1
            pl.BlockSpec(memory_space=pl.ANY),      # W2 (HBM; DMA'd once into scratch)
            pl.BlockSpec((1, dp), full),            # gamma2
            pl.BlockSpec((1, dp), full),            # beta2
        ],
        out_specs=pl.BlockSpec((tn, dp), out_map),
        scratch_shapes=[
            pltpu.VMEM((n_p, dp), jnp.bfloat16),    # h then y staging (bf16)
            pltpu.VMEM((n_p, dp), jnp.bfloat16),    # x cache for the residual
            pltpu.VMEM((dp, dp), jnp.bfloat16),     # W1 resident (single buffer)
            pltpu.VMEM((dp, dp), jnp.bfloat16),     # W2 resident (single buffer)
            pltpu.VMEM((1, dp), jnp.float32),       # per-feature sum
            pltpu.VMEM((1, dp), jnp.float32),       # per-feature sum of squares
            pltpu.VMEM((1, dp), jnp.float32),       # folded BN scale a
            pltpu.VMEM((1, dp), jnp.float32),       # folded BN shift b
        ],
    )

    out = pl.pallas_call(
        _make_streaming_kernel(n, n_p, tn),
        out_shape=jax.ShapeDtypeStruct((n_p, dp), x.dtype),
        grid_spec=grid_spec,
        compiler_params=pltpu.CompilerParams(
            # Both axes sequential: phases are ordered and BN stats accumulate into
            # shared VMEM scratch.
            # TODO(synk): v7x dual-TC — per-core partial sum/sumsq combined via
            # VMEM_SHARED + core_barrier so the batch-tile axis can be "parallel".
            dimension_semantics=("arbitrary", "arbitrary"),
            vmem_limit_bytes=vmem_limit,
        ),
    )(x_p, w1_p, g1_p, be1_p, w2_p, g2_p, be2_p)
    return out[:n, :d]


def init_params(key, in_dims, out_dims):
    k1, k2, k3, k4 = jax.random.split(key, 4)
    bound1 = 1.0 / jnp.sqrt(in_dims)
    bound2 = 1.0 / jnp.sqrt(out_dims)
    return {
        # Linear weights stored pre-transposed: (in, out).
        "w1": jax.random.uniform(k1, (in_dims, out_dims), jnp.float32, -bound1, bound1),
        "b1": jax.random.uniform(k2, (1, out_dims), jnp.float32, -bound1, bound1),
        "g1": jnp.ones((1, out_dims), jnp.float32),
        "be1": jnp.zeros((1, out_dims), jnp.float32),
        "w2": jax.random.uniform(k3, (out_dims, out_dims), jnp.float32, -bound2, bound2),
        "b2": jax.random.uniform(k4, (1, out_dims), jnp.float32, -bound2, bound2),
        "g2": jnp.ones((1, out_dims), jnp.float32),
        "be2": jnp.zeros((1, out_dims), jnp.float32),
    }


def basic_block_ref(x, p):
    """Pure-JAX reference mirroring PyTorch .train() semantics (biases included)."""
    h = x @ p["w1"] + p["b1"]
    m = h.mean(0, keepdims=True)
    v = ((h - m) ** 2).mean(0, keepdims=True)
    h = (h - m) / jnp.sqrt(v + EPS) * p["g1"] + p["be1"]
    h = jnp.where(h > 0, h, NEG_SLOPE * h)
    y = h @ p["w2"] + p["b2"]
    m2 = y.mean(0, keepdims=True)
    v2 = ((y - m2) ** 2).mean(0, keepdims=True)
    y = (y - m2) / jnp.sqrt(v2 + EPS) * p["g2"] + p["be2"]
    y = y + x
    return jnp.where(y > 0, y, NEG_SLOPE * y)


if __name__ == "__main__":
    key = jax.random.PRNGKey(0)
    k1, k2, k3, k4, k5, k6 = jax.random.split(key, 6)

    # 1) Primary config: single-step fast path, lane-dense features.
    N, D = 512, 128
    x = jax.random.normal(k1, (N, D), jnp.float32)
    params = init_params(k2, D, D)
    out = jax.block_until_ready(basic_block(x, params))
    ref = basic_block_ref(x, params)
    assert out.shape == (N, D)
    # Tolerance reflects intentional bf16 MXU-input casts (BN/residual math is f32).
    assert float(jnp.max(jnp.abs(out - ref))) < 1e-1
    assert float(jnp.mean(jnp.abs(out - ref))) < 1e-2

    # 2) Non-128 feature width exercises the lane zero-padding path (fast path).
    N2, D2 = 64, 96
    x2 = jax.random.normal(k3, (N2, D2), jnp.float32)
    params2 = init_params(k4, D2, D2)
    out2 = jax.block_until_ready(basic_block(x2, params2))
    ref2 = basic_block_ref(x2, params2)
    assert out2.shape == (N2, D2)
    assert float(jnp.max(jnp.abs(out2 - ref2))) < 1e-1

    # 3) Streaming 3-phase path (forced at small size), 4 batch tiles.
    out3 = jax.block_until_ready(
        basic_block(x, params, force_streaming=True, row_tile=128))
    assert out3.shape == (N, D)
    # Extra slack for bf16 h/y staging and bf16 residual cache.
    assert float(jnp.max(jnp.abs(out3 - ref))) < 2e-1
    assert float(jnp.mean(jnp.abs(out3 - ref))) < 2e-2

    # 4) Streaming path with ragged batch (row padding + mask) and padded lanes.
    N4, D4 = 200, 96
    x4 = jax.random.normal(k5, (N4, D4), jnp.float32)
    params4 = init_params(k6, D4, D4)
    out4 = jax.block_until_ready(
        basic_block(x4, params4, force_streaming=True, row_tile=64))
    ref4 = basic_block_ref(x4, params4)
    assert out4.shape == (N4, D4)
    assert float(jnp.max(jnp.abs(out4 - ref4))) < 2e-1

    print("KERNEL_OK")
</pallas_src>

<mosaic_0001>
module attributes {stable_mosaic.version = 11 : i64} {
  func.func @kernel(%arg0: memref<512x128xf32, #tpu.memory_space<vmem>>, %arg1: memref<128x128xbf16, #tpu.memory_space<vmem>>, %arg2: memref<1x128xf32, #tpu.memory_space<vmem>>, %arg3: memref<1x128xf32, #tpu.memory_space<vmem>>, %arg4: memref<128x128xbf16, #tpu.memory_space<vmem>>, %arg5: memref<1x128xf32, #tpu.memory_space<vmem>>, %arg6: memref<1x128xf32, #tpu.memory_space<vmem>>, %arg7: memref<512x128xf32, #tpu.memory_space<vmem>>) attributes {dimension_semantics = [], scalar_prefetch = 0 : i64, scratch_operands = 0 : i64, tpu.core_type = #tpu.core_type<tc>} {
    %c0 = arith.constant 0 : index
    %c0_0 = arith.constant 0 : index
    %0 = vector.load %arg0[%c0, %c0_0] : memref<512x128xf32, #tpu.memory_space<vmem>>, vector<512x128xf32>
    %1 = arith.truncf %0 : vector<512x128xf32> to vector<512x128xbf16>
    %c0_1 = arith.constant 0 : index
    %c0_2 = arith.constant 0 : index
    %2 = vector.load %arg1[%c0_1, %c0_2] : memref<128x128xbf16, #tpu.memory_space<vmem>>, vector<128x128xbf16>
    %cst = arith.constant dense<0.000000e+00> : vector<512x128xf32>
    %3 = tpu.matmul %1, %2, %cst {dimension_numbers = #tpu.dot_dimension_numbers<[1], [0], [0], [1], [0, 0, 1, 1], [], []>} : vector<512x128xbf16>, vector<128x128xbf16>, vector<512x128xf32> -> vector<512x128xf32>
    %cst_3 = arith.constant dense<0.000000e+00> : vector<128xf32>
    %4 = vector.multi_reduction <add>, %3, %cst_3 [0] : vector<512x128xf32> to vector<128xf32>
    %5 = vector.shape_cast %4 : vector<128xf32> to vector<1x128xf32>
    %cst_4 = arith.constant 0.001953125 : f32
    %6 = vector.broadcast %cst_4 : f32 to vector<1x128xf32>
    %7 = arith.mulf %5, %6 : vector<1x128xf32>
    %8 = arith.mulf %3, %3 : vector<512x128xf32>
    %cst_5 = arith.constant dense<0.000000e+00> : vector<128xf32>
    %9 = vector.multi_reduction <add>, %8, %cst_5 [0] : vector<512x128xf32> to vector<128xf32>
    %10 = vector.shape_cast %9 : vector<128xf32> to vector<1x128xf32>
    %cst_6 = arith.constant 0.001953125 : f32
    %11 = vector.broadcast %cst_6 : f32 to vector<1x128xf32>
    %12 = arith.mulf %10, %11 : vector<1x128xf32>
    %13 = arith.mulf %7, %7 : vector<1x128xf32>
    %14 = arith.subf %12, %13 : vector<1x128xf32>
    %cst_7 = arith.constant 0.000000e+00 : f32
    %15 = vector.broadcast %cst_7 : f32 to vector<1x128xf32>
    %16 = arith.maximumf %14, %15 : vector<1x128xf32>
    %c0_8 = arith.constant 0 : index
    %c0_9 = arith.constant 0 : index
    %17 = vector.load %arg2[%c0_8, %c0_9] : memref<1x128xf32, #tpu.memory_space<vmem>>, vector<1x128xf32>
    %cst_10 = arith.constant 9.99999974E-6 : f32
    %18 = vector.broadcast %cst_10 : f32 to vector<1x128xf32>
    %19 = arith.addf %16, %18 : vector<1x128xf32>
    %20 = math.rsqrt %19 : vector<1x128xf32>
    %21 = arith.mulf %17, %20 : vector<1x128xf32>
    %c0_11 = arith.constant 0 : index
    %c0_12 = arith.constant 0 : index
    %22 = vector.load %arg3[%c0_11, %c0_12] : memref<1x128xf32, #tpu.memory_space<vmem>>, vector<1x128xf32>
    %23 = arith.mulf %7, %21 : vector<1x128xf32>
    %24 = arith.subf %22, %23 : vector<1x128xf32>
    %25 = vector.broadcast %21 : vector<1x128xf32> to vector<512x128xf32>
    %26 = arith.mulf %3, %25 : vector<512x128xf32>
    %27 = vector.broadcast %24 : vector<1x128xf32> to vector<512x128xf32>
    %28 = arith.addf %26, %27 : vector<512x128xf32>
    %cst_13 = arith.constant 0.000000e+00 : f32
    %29 = vector.broadcast %cst_13 : f32 to vector<512x128xf32>
    %30 = arith.cmpf ogt, %28, %29 : vector<512x128xf32>
    %cst_14 = arith.constant 2.000000e-01 : f32
    %31 = vector.broadcast %cst_14 : f32 to vector<512x128xf32>
    %32 = arith.mulf %31, %28 : vector<512x128xf32>
    %33 = arith.select %30, %28, %32 : vector<512x128xi1>, vector<512x128xf32>
    %34 = arith.truncf %33 : vector<512x128xf32> to vector<512x128xbf16>
    %c0_15 = arith.constant 0 : index
    %c0_16 = arith.constant 0 : index
    %35 = vector.load %arg4[%c0_15, %c0_16] : memref<128x128xbf16, #tpu.memory_space<vmem>>, vector<128x128xbf16>
    %cst_17 = arith.constant dense<0.000000e+00> : vector<512x128xf32>
    %36 = tpu.matmul %34, %35, %cst_17 {dimension_numbers = #tpu.dot_dimension_numbers<[1], [0], [0], [1], [0, 0, 1, 1], [], []>} : vector<512x128xbf16>, vector<128x128xbf16>, vector<512x128xf32> -> vector<512x128xf32>
    %cst_18 = arith.constant dense<0.000000e+00> : vector<128xf32>
    %37 = vector.multi_reduction <add>, %36, %cst_18 [0] : vector<512x128xf32> to vector<128xf32>
    %38 = vector.shape_cast %37 : vector<128xf32> to vector<1x128xf32>
    %cst_19 = arith.constant 0.001953125 : f32
    %39 = vector.broadcast %cst_19 : f32 to vector<1x128xf32>
    %40 = arith.mulf %38, %39 : vector<1x128xf32>
    %41 = arith.mulf %36, %36 : vector<512x128xf32>
    %cst_20 = arith.constant dense<0.000000e+00> : vector<128xf32>
    %42 = vector.multi_reduction <add>, %41, %cst_20 [0] : vector<512x128xf32> to vector<128xf32>
    %43 = vector.shape_cast %42 : vector<128xf32> to vector<1x128xf32>
    %cst_21 = arith.constant 0.001953125 : f32
    %44 = vector.broadcast %cst_21 : f32 to vector<1x128xf32>
    %45 = arith.mulf %43, %44 : vector<1x128xf32>
    %46 = arith.mulf %40, %40 : vector<1x128xf32>
    %47 = arith.subf %45, %46 : vector<1x128xf32>
    %cst_22 = arith.constant 0.000000e+00 : f32
    %48 = vector.broadcast %cst_22 : f32 to vector<1x128xf32>
    %49 = arith.maximumf %47, %48 : vector<1x128xf32>
    %c0_23 = arith.constant 0 : index
    %c0_24 = arith.constant 0 : index
    %50 = vector.load %arg5[%c0_23, %c0_24] : memref<1x128xf32, #tpu.memory_space<vmem>>, vector<1x128xf32>
    %cst_25 = arith.constant 9.99999974E-6 : f32
    %51 = vector.broadcast %cst_25 : f32 to vector<1x128xf32>
    %52 = arith.addf %49, %51 : vector<1x128xf32>
    %53 = math.rsqrt %52 : vector<1x128xf32>
    %54 = arith.mulf %50, %53 : vector<1x128xf32>
    %c0_26 = arith.constant 0 : index
    %c0_27 = arith.constant 0 : index
    %55 = vector.load %arg6[%c0_26, %c0_27] : memref<1x128xf32, #tpu.memory_space<vmem>>, vector<1x128xf32>
    %56 = arith.mulf %40, %54 : vector<1x128xf32>
    %57 = arith.subf %55, %56 : vector<1x128xf32>
    %58 = vector.broadcast %54 : vector<1x128xf32> to vector<512x128xf32>
    %59 = arith.mulf %36, %58 : vector<512x128xf32>
    %60 = vector.broadcast %57 : vector<1x128xf32> to vector<512x128xf32>
    %61 = arith.addf %59, %60 : vector<512x128xf32>
    %62 = arith.addf %61, %0 : vector<512x128xf32>
    %cst_28 = arith.constant 0.000000e+00 : f32
    %63 = vector.broadcast %cst_28 : f32 to vector<512x128xf32>
    %64 = arith.cmpf ogt, %62, %63 : vector<512x128xf32>
    %cst_29 = arith.constant 2.000000e-01 : f32
    %65 = vector.broadcast %cst_29 : f32 to vector<512x128xf32>
    %66 = arith.mulf %65, %62 : vector<512x128xf32>
    %67 = arith.select %64, %62, %66 : vector<512x128xi1>, vector<512x128xf32>
    %c0_30 = arith.constant 0 : index
    %c0_31 = arith.constant 0 : index
    %68 = vector.load %arg7[%c0_30, %c0_31] : memref<512x128xf32, #tpu.memory_space<vmem>>, vector<512x128xf32>
    tpu.vector_store %arg7[%c0_30, %c0_31], %67 {strides = array<i32>} : memref<512x128xf32, #tpu.memory_space<vmem>>, vector<512x128xf32>,
    return
  }
}

</mosaic_0001>

<bundles_post_ra>
// kernel: tpu_custom_call.1
= control target key start
LH: loop header
LB: loop body
LE: loop exit
PB: predicated region body
PF: predicated region fallthrough
CT: control target
= control target key end

     0   :  { %12 = vsyncpa [#allocation3], 0  ;;  %s4970_s0 = inlined_call_operand.hbm [shape: f32[512,128], index: 0, kind: input, shape index: {}]   ;;  %s4971_s1 = inlined_call_operand.hbm [shape: bf16[128,128], index: 1, kind: input, shape index: {}]   ;;  %s4972_s2 = inlined_call_operand.vmem [shape: f32[1,128], index: 2, kind: input, shape index: {}]   ;;  %s4973_s3 = inlined_call_operand.vmem [shape: f32[1,128], index: 3, kind: input, shape index: {}]   ;;  %s4974_s4 = inlined_call_operand.hbm [shape: bf16[128,128], index: 4, kind: input, shape index: {}]   ;;  %s4975_s5 = inlined_call_operand.vmem [shape: f32[1,128], index: 5, kind: input, shape index: {}]   ;;  %s4976_s6 = inlined_call_operand.vmem [shape: f32[1,128], index: 6, kind: input, shape index: {}]   ;;  %s4977_s7 = inlined_call_operand.hbm [shape: f32[512,128], index: 7, kind: output, shape index: {}]  }
   0x1   :  { %13 = vsyncpa [#allocation6], 0 }
   0x2   :  { %14 = vsyncpa [#allocation4], 0  ;;  %s2575_s24 = smov [#allocation5]  }
   0x3   :  { %s32_s25 = sshll.u32 %s2575_s24, 4  ;;  %s33_s25 = int_to_ptr.vmem [resolvable:$true] %s32_s25 }
   0x4   :  { %s2497_s26 = scalar_lea.vmem %s33_s25, 1024  ;;  %p2502_p1 = scmp.lt.s32.totalorder %s33_s25, %s33_s25 }
   0x5   :  { %p2498_p0 = scmp.ne.s32.totalorder %s33_s25, %s2497_s26  ;;  %p2503_p2 = scmp.lt.s32.totalorder %s2497_s26, %s2497_s26 }
   0x7   :  { %p2504_p3 = por %p2503_p2, %p2502_p1 }
   0x9   :  { %p2505_p4 = pnand %p2504_p3, %p2498_p0 }
   0xb   :  { %2508 = shalt.err (!%p2505_p4)
}
   0xc   :  { %s2576_s27 = smov 64   ;;  %s2577_s28 = smov 4  }
   0xd   :  { %38 = dma.hbm_to_vmem [thread:$0]  %s4971_s1, 1024, %s33_s25, [#allocation6], %s2576_s27, %s2576_s27, %s2577_s28  }
   0xe   :  { %s2578_s8 = smov [#allocation2]  }
   0xf   :  { %s20_s9 = sshll.u32 %s2578_s8, 4  ;;  %s21_s9 = int_to_ptr.vmem [resolvable:$true] %s20_s9 }
  0x10   :  { %s2517_s10 = scalar_lea.vmem %s21_s9, 8192  ;;  %p2522_p6 = scmp.lt.s32.totalorder %s21_s9, %s21_s9 }
  0x11   :  { %p2518_p5 = scmp.ne.s32.totalorder %s21_s9, %s2517_s10  ;;  %p2523_p7 = scmp.lt.s32.totalorder %s2517_s10, %s2517_s10 }
  0x13   :  { %p2524_p8 = por %p2523_p7, %p2522_p6 }
  0x15   :  { %p2525_p9 = pnand %p2524_p8, %p2518_p5 }
  0x17   :  { %2528 = shalt.err (!%p2525_p9)
}
  0x18   :  { %s2579_s11 = smov 128   ;;  %s2580_s12 = smov 8  }
  0x19   :  { %26 = dma.hbm_to_vmem [thread:$0]  %s4970_s0, 8192, %s21_s9, [#allocation3], %s2579_s11, %s2579_s11, %s2580_s12  }
  0x1a   :  { %s2581_s1 = smov [#allocation7]  }
  0x1b   :  { %s48_s15 = sshll.u32 %s2581_s1, 4  ;;  %s49_s15 = int_to_ptr.vmem [resolvable:$true] %s48_s15 }
  0x1c   :  { %s2537_s16 = scalar_lea.vmem %s49_s15, 1024  ;;  %p2542_p11 = scmp.lt.s32.totalorder %s49_s15, %s49_s15 }
  0x1d   :  { %p2538_p10 = scmp.ne.s32.totalorder %s49_s15, %s2537_s16  ;;  %p2543_p12 = scmp.lt.s32.totalorder %s2537_s16, %s2537_s16 }
  0x1f   :  { %p2544_p13 = por %p2543_p12, %p2542_p11 }
  0x21   :  { %p2545_p0 = pnand %p2544_p13, %p2538_p10 }
  0x23   :  { %2548 = shalt.err (!%p2545_p0)
}
  0x24   :  { %54 = dma.hbm_to_vmem [thread:$0]  %s4974_s4, 1024, %s49_s15, [#allocation6], %s2576_s27, %s2576_s27, %s2577_s28  }
  0x25   :  { %2569 = dma.done.wait [#allocation3], 8192  }
  0x26   :  { %2570 = vsyncadd [#allocation3], 4294959104 }
  0x27   :  { %2571 = dma.done.wait [#allocation6], 2048  }
  0x28   :  { %2572 = vsyncadd [#allocation6], 4294965248  ;;  %v2405_v0 = vld [vmem:[#allocation5 + $0x38] sm:$0xff]   ;;  %v2406_v1 = vld [vmem:[#allocation5 + $0x30] sm:$0xff]  }
  0x29   :  { %2237 = vmatprep.subr.bf16.mxu0 %v2405_v0  ;;  %v2407_v2 = vld [vmem:[#allocation5 + $0x28] sm:$0xff]   ;;  %v2408_v3 = vld [vmem:[#allocation5 + $0x20] sm:$0xff]   ;;  %v2409_v7 = vld [vmem:[#allocation5 + $0x18] sm:$0xff]  }
  0x2a   :  { %2238 = vmatpush3.bf16.msra.mxu0 %v2405_v0  ;;  %v69_v4 = vld [vmem:[#allocation2] sm:$0xff]  ;;  %v70_v5 = vld [vmem:[#allocation2 + $0x8] sm:$0xff]  ;;  %v2410_v8 = vld [vmem:[#allocation5 + $0x10] sm:$0xff]  }
  0x2b   :  { %2239 = vmatprep.subr.bf16.mxu0 %v2406_v1  ;;  %v133_v6 = vpack.c.bf16 %v70_v5, %v69_v4  ;;  %v2411_v9 = vld [vmem:[#allocation5 + $0x8] sm:$0xff]   ;;  %v2412_v10 = vld [vmem:[#allocation5] sm:$0xff]   ;;  %v71_v11 = vld [vmem:[#allocation2 + $0x10] sm:$0xff] }
  0x2c   :  { %v72_v12 = vld [vmem:[#allocation2 + $0x18] sm:$0xff]  ;;  %v73_v13 = vld [vmem:[#allocation2 + $0x20] sm:$0xff]  ;;  %v74_v14 = vld [vmem:[#allocation2 + $0x28] sm:$0xff] }
  0x2d   :  { %2253 = vmatprep.mubr.bf16.mxu0 %v133_v6  ;;  %v134_v15 = vpack.c.bf16 %v72_v12, %v71_v11  ;;  %v135_v16 = vpack.c.bf16 %v74_v14, %v73_v13  ;;  %v75_v17 = vld [vmem:[#allocation2 + $0x30] sm:$0xff]  ;;  %v76_v18 = vld [vmem:[#allocation2 + $0x38] sm:$0xff]  ;;  %v77_v19 = vld [vmem:[#allocation2 + $0x40] sm:$0xff] }
  0x2e   :  { %2240 = vmatpush3.bf16.msra.mxu0 %v2406_v1  ;;  %v78_v20 = vld [vmem:[#allocation2 + $0x48] sm:$0xff]  ;;  %v136_v21 = vpack.c.bf16 %v76_v18, %v75_v17  ;;  %v79_v23 = vld [vmem:[#allocation2 + $0x50] sm:$0xff]  ;;  %v80_v24 = vld [vmem:[#allocation2 + $0x58] sm:$0xff] }
  0x2f   :  { %2241 = vmatprep.subr.bf16.mxu0 %v2407_v2  ;;  %v137_v22 = vpack.c.bf16 %v78_v20, %v77_v19  ;;  %v81_v25 = vld [vmem:[#allocation2 + $0x60] sm:$0xff]  ;;  %v82_v26 = vld [vmem:[#allocation2 + $0x68] sm:$0xff]  ;;  %v138_v27 = vpack.c.bf16 %v80_v24, %v79_v23  ;;  %v83_v29 = vld [vmem:[#allocation2 + $0x70] sm:$0xff] }
  0x30   :  { %v139_v28 = vpack.c.bf16 %v82_v26, %v81_v25  ;;  %v84_v30 = vld [vmem:[#allocation2 + $0x78] sm:$0xff]  ;;  %v85_v31 = vld [vmem:[#allocation2 + $0x80] sm:$0xff]  ;;  %v86_v32 = vld [vmem:[#allocation2 + $0x88] sm:$0xff] }
  0x31   :  { %v140_v33 = vpack.c.bf16 %v84_v30, %v83_v29  ;;  %v141_v34 = vpack.c.bf16 %v86_v32, %v85_v31  ;;  %v87_v35 = vld [vmem:[#allocation2 + $0x90] sm:$0xff]  ;;  %v88_v36 = vld [vmem:[#allocation2 + $0x98] sm:$0xff]  ;;  %v89_v37 = vld [vmem:[#allocation2 + $0xa0] sm:$0xff] }
  0x32   :  { %2242 = vmatpush3.bf16.msra.mxu0 %v2407_v2  ;;  %v90_v38 = vld [vmem:[#allocation2 + $0xa8] sm:$0xff]  ;;  %v142_v39 = vpack.c.bf16 %v88_v36, %v87_v35  ;;  %v91_v41 = vld [vmem:[#allocation2 + $0xb0] sm:$0xff]  ;;  %v92_v42 = vld [vmem:[#allocation2 + $0xb8] sm:$0xff] }
  0x33   :  { %2243 = vmatprep.subr.bf16.mxu0 %v2408_v3  ;;  %v143_v40 = vpack.c.bf16 %v90_v38, %v89_v37  ;;  %v93_v43 = vld [vmem:[#allocation2 + $0xc0] sm:$0xff]  ;;  %v94_v44 = vld [vmem:[#allocation2 + $0xc8] sm:$0xff]  ;;  %v144_v45 = vpack.c.bf16 %v92_v42, %v91_v41  ;;  %v95_v47 = vld [vmem:[#allocation2 + $0xd0] sm:$0xff] }
  0x34   :  { %v145_v46 = vpack.c.bf16 %v94_v44, %v93_v43  ;;  %v96_v48 = vld [vmem:[#allocation2 + $0xd8] sm:$0xff]  ;;  %v97_v49 = vld [vmem:[#allocation2 + $0xe0] sm:$0xff]  ;;  %v98_v50 = vld [vmem:[#allocation2 + $0xe8] sm:$0xff] }
  0x35   :  { %v146_v51 = vpack.c.bf16 %v96_v48, %v95_v47  ;;  %v147_v52 = vpack.c.bf16 %v98_v50, %v97_v49  ;;  %v99_v53 = vld [vmem:[#allocation2 + $0xf0] sm:$0xff]  ;;  %v100_v54 = vld [vmem:[#allocation2 + $0xf8] sm:$0xff]  ;;  %v101_v55 = vld [vmem:[#allocation2 + $0x100] sm:$0xff] }
  0x36   :  { %2244 = vmatpush3.bf16.msra.mxu0 %v2408_v3  ;;  %v102_v56 = vld [vmem:[#allocation2 + $0x108] sm:$0xff]  ;;  %v148_v57 = vpack.c.bf16 %v100_v54, %v99_v53  ;;  %v103_v59 = vld [vmem:[#allocation2 + $0x110] sm:$0xff]  ;;  %v104_v60 = vld [vmem:[#allocation2 + $0x118] sm:$0xff] }
  0x37   :  { %2245 = vmatprep.subr.bf16.mxu0 %v2409_v7  ;;  %v149_v58 = vpack.c.bf16 %v102_v56, %v101_v55  ;;  %v105_v61 = vld [vmem:[#allocation2 + $0x120] sm:$0xff]  ;;  %v106_v62 = vld [vmem:[#allocation2 + $0x128] sm:$0xff]  ;;  %v150_v63 = vpack.c.bf16 %v104_v60, %v103_v59  ;;  %v107_v1 = vld [vmem:[#allocation2 + $0x130] sm:$0xff] }
  0x38   :  { %v151_v0 = vpack.c.bf16 %v106_v62, %v105_v61  ;;  %v108_v2 = vld [vmem:[#allocation2 + $0x138] sm:$0xff]  ;;  %v109_v3 = vld [vmem:[#allocation2 + $0x140] sm:$0xff]  ;;  %v110_v4 = vld [vmem:[#allocation2 + $0x148] sm:$0xff] }
  0x39   :  { %v152_v5 = vpack.c.bf16 %v108_v2, %v107_v1  ;;  %v153_v6 = vpack.c.bf16 %v110_v4, %v109_v3  ;;  %v115_v13 = vld [vmem:[#allocation2 + $0x170] sm:$0xff]  ;;  %v116_v14 = vld [vmem:[#allocation2 + $0x178] sm:$0xff] }
  0x3a   :  { %2246 = vmatpush3.bf16.msra.mxu0 %v2409_v7  ;;  %v111_v7 = vld [vmem:[#allocation2 + $0x150] sm:$0xff]  ;;  %v156_v17 = vpack.c.bf16 %v116_v14, %v115_v13  ;;  %v120_v20 = vld [vmem:[#allocation2 + $0x198] sm:$0xff] }
  0x3b   :  { %2247 = vmatprep.subr.bf16.mxu0 %v2410_v8  ;;  %v119_v19 = vld [vmem:[#allocation2 + $0x190] sm:$0xff]  ;;  %v124_v26 = vld [vmem:[#allocation2 + $0x1b8] sm:$0xff] }
  0x3c   :  { %v158_v23 = vpack.c.bf16 %v120_v20, %v119_v19  ;;  %v123_v25 = vld [vmem:[#allocation2 + $0x1b0] sm:$0xff]  ;;  %v128_v32 = vld [vmem:[#allocation2 + $0x1d8] sm:$0xff] }
  0x3d   :  { %v160_v29 = vpack.c.bf16 %v124_v26, %v123_v25  ;;  %v127_v31 = vld [vmem:[#allocation2 + $0x1d0] sm:$0xff]  ;;  %v132_v38 = vld [vmem:[#allocation2 + $0x1f8] sm:$0xff] }
  0x3e   :  { %2248 = vmatpush3.bf16.msra.mxu0 %v2410_v8  ;;  %v112_v8 = vld [vmem:[#allocation2 + $0x158] sm:$0xff]  ;;  %v162_v35 = vpack.c.bf16 %v128_v32, %v127_v31  ;;  %v131_v37 = vld [vmem:[#allocation2 + $0x1f0] sm:$0xff] }
  0x3f   :  { %2249 = vmatprep.subr.bf16.mxu0 %v2411_v9  ;;  %v154_v11 = vpack.c.bf16 %v112_v8, %v111_v7 }
  0x42   :  { %2250 = vmatpush3.bf16.msra.mxu0 %v2411_v9  ;;  %v113_v9 = vld [vmem:[#allocation2 + $0x160] sm:$0xff] }
  0x43   :  { %2251 = vmatprep.subr.bf16.mxu0 %v2412_v10 }
  0x46   :  { %2252 = vmatpush3.bf16.msra.mxu0 %v2412_v10  ;;  %v114_v10 = vld [vmem:[#allocation2 + $0x168] sm:$0xff] }
  0x47   :  { %v155_v12 = vpack.c.bf16 %v114_v10, %v113_v9 }
  0x49   :  { %2254 = vmatmul.mubr.bf16.vlgmr.msra.gmra.mxu0 %v134_v15  ;;  %v117_v15 = vld [vmem:[#allocation2 + $0x180] sm:$0xff] }
  0x4a   :  { %2257 = vmatprep.mubr.bf16.mxu0 %v135_v16  ;;  %v118_v16 = vld [vmem:[#allocation2 + $0x188] sm:$0xff] }
  0x4b   :  { %v157_v18 = vpack.c.bf16 %v118_v16, %v117_v15 }
  0x51   :  { %2258 = vmatmul.mubr.bf16.gmra.mxu0 %v136_v21  ;;  %v121_v21 = vld [vmem:[#allocation2 + $0x1a0] sm:$0xff] }
  0x52   :  { %2261 = vmatprep.mubr.bf16.mxu0 %v137_v22  ;;  %v122_v22 = vld [vmem:[#allocation2 + $0x1a8] sm:$0xff] }
  0x53   :  { %v159_v24 = vpack.c.bf16 %v122_v22, %v121_v21 }
  0x59   :  { %2262 = vmatmul.mubr.bf16.gmra.mxu0 %v138_v27  ;;  %v125_v27 = vld [vmem:[#allocation2 + $0x1c0] sm:$0xff] }
  0x5a   :  { %2265 = vmatprep.mubr.bf16.mxu0 %v139_v28  ;;  %v126_v28 = vld [vmem:[#allocation2 + $0x1c8] sm:$0xff] }
  0x5b   :  { %v161_v30 = vpack.c.bf16 %v126_v28, %v125_v27 }
  0x61   :  { %2266 = vmatmul.mubr.bf16.gmra.mxu0 %v140_v33  ;;  %v129_v33 = vld [vmem:[#allocation2 + $0x1e0] sm:$0xff] }
  0x62   :  { %2269 = vmatprep.mubr.bf16.mxu0 %v141_v34  ;;  %v130_v34 = vld [vmem:[#allocation2 + $0x1e8] sm:$0xff] }
  0x63   :  { %v163_v36 = vpack.c.bf16 %v130_v34, %v129_v33 }
  0x69   :  { %2270 = vmatmul.mubr.bf16.gmra.mxu0 %v142_v39  ;;  %v164_v39 = vpack.c.bf16 %v132_v38, %v131_v37 }
  0x6a   :  { %2273 = vmatprep.mubr.bf16.mxu0 %v143_v40 }
  0x71   :  { %2274 = vmatmul.mubr.bf16.gmra.mxu0 %v144_v45 }
  0x72   :  { %2277 = vmatprep.mubr.bf16.mxu0 %v145_v46 }
  0x79   :  { %2278 = vmatmul.mubr.bf16.gmra.mxu0 %v146_v51 }
  0x7a   :  { %2281 = vmatprep.mubr.bf16.mxu0 %v147_v52 }
  0x81   :  { %2282 = vmatmul.mubr.bf16.gmra.mxu0 %v148_v57 }
  0x82   :  { %2285 = vmatprep.mubr.bf16.mxu0 %v149_v58 }
  0x89   :  { %2286 = vmatmul.mubr.bf16.gmra.mxu0 %v150_v63 }
  0x8a   :  { %2289 = vmatprep.mubr.bf16.mxu0 %v151_v0 }
  0x91   :  { %2290 = vmatmul.mubr.bf16.gmra.mxu0 %v152_v5 }
  0x92   :  { %2293 = vmatprep.mubr.bf16.mxu0 %v153_v6 }
  0x99   :  { %2294 = vmatmul.mubr.bf16.gmra.mxu0 %v154_v11 }
  0x9a   :  { %2297 = vmatprep.mubr.bf16.mxu0 %v155_v12 }
  0xa1   :  { %2298 = vmatmul.mubr.bf16.gmra.mxu0 %v156_v17 }
  0xa2   :  { %2301 = vmatprep.mubr.bf16.mxu0 %v157_v18 }
  0xa9   :  { %2302 = vmatmul.mubr.bf16.gmra.mxu0 %v158_v23 }
  0xaa   :  { %2305 = vmatprep.mubr.bf16.mxu0 %v159_v24 }
  0xb1   :  { %2306 = vmatmul.mubr.bf16.gmra.mxu0 %v160_v29 }
  0xb2   :  { %2309 = vmatprep.mubr.bf16.mxu0 %v161_v30 }
  0xb9   :  { %2310 = vmatmul.mubr.bf16.gmra.mxu0 %v162_v35 }
  0xba   :  { %2313 = vmatprep.mubr.bf16.mxu0 %v163_v36 }
  0xc1   :  { %2314 = vmatmul.mubr.bf16.gmra.mxu0 %v164_v39 }
 0x109   :  { %v2635_v40 = vpop.f32.mrf.mxu0 }
 0x10a   :  { %v590_v48 = vmul.f32 %v2635_v40, %v2635_v40 }
 0x10b   :  { %v2637_v41 = vpop.f32.mrf.mxu0 }
 0x10c   :  { %v588_v44 = vmul.f32 %v2637_v41, %v2637_v41 }
 0x10d   :  { %v2639_v42 = vpop.f32.mrf.mxu0 }
 0x10e   :  { %v591_v52 = vmul.f32 %v2639_v42, %v2639_v42 }
 0x10f   :  { %v2641_v43 = vpop.f32.mrf.mxu0 }
 0x110   :  { %v518_v45 = vadd.f32 %v2641_v43, %v2637_v41  ;;  %v589_v46 = vmul.f32 %v2641_v43, %v2641_v43 }
 0x111   :  { %v2649_v47 = vpop.f32.mrf.mxu0 }
 0x112   :  { %v519_v49 = vadd.f32 %v2635_v40, %v518_v45  ;;  %v652_v50 = vadd.f32 %v589_v46, %v588_v44  ;;  %v594_v0 = vmul.f32 %v2649_v47, %v2649_v47 }
 0x113   :  { %v2654_v51 = vpop.f32.mrf.mxu0 }
 0x114   :  { %v653_v53 = vadd.f32 %v652_v50, %v590_v48  ;;  %v520_v54 = vadd.f32 %v2639_v42, %v519_v49  ;;  %v592_v57 = vmul.f32 %v2654_v51, %v2654_v51 }
 0x115   :  { %v2659_v55 = vpop.f32.mrf.mxu0 }
 0x116   :  { %v521_v56 = vadd.f32 %v520_v54, %v2654_v51  ;;  %v654_v58 = vadd.f32 %v653_v53, %v591_v52  ;;  %v595_v4 = vmul.f32 %v2659_v55, %v2659_v55 }
 0x117   :  { %v2664_v59 = vpop.f32.mrf.mxu0 }
 0x118   :  { %v655_v60 = vadd.f32 %v654_v58, %v592_v57  ;;  %v522_v61 = vadd.f32 %v521_v56, %v2664_v59  ;;  %v593_v62 = vmul.f32 %v2664_v59, %v2664_v59 }
 0x119   :  { %v2669_v63 = vpop.f32.mrf.mxu0 }
 0x11a   :  { %v523_v1 = vadd.f32 %v2649_v47, %v522_v61  ;;  %v656_v2 = vadd.f32 %v655_v60, %v593_v62  ;;  %v598_v16 = vmul.f32 %v2669_v63, %v2669_v63 }
 0x11b   :  { %v2674_v3 = vpop.f32.mrf.mxu0 }
 0x11c   :  { %v657_v5 = vadd.f32 %v656_v2, %v594_v0  ;;  %v524_v6 = vadd.f32 %v2659_v55, %v523_v1  ;;  %v596_v9 = vmul.f32 %v2674_v3, %v2674_v3 }
 0x11d   :  { %v2679_v7 = vpop.f32.mrf.mxu0 }
 0x11e   :  { %v525_v8 = vadd.f32 %v524_v6, %v2674_v3  ;;  %v658_v10 = vadd.f32 %v657_v5, %v595_v4  ;;  %v599_v20 = vmul.f32 %v2679_v7, %v2679_v7 }
 0x11f   :  { %v2684_v11 = vpop.f32.mrf.mxu0 }
 0x120   :  { %v659_v12 = vadd.f32 %v658_v10, %v596_v9  ;;  %v526_v13 = vadd.f32 %v525_v8, %v2684_v11  ;;  %v597_v14 = vmul.f32 %v2684_v11, %v2684_v11 }
 0x121   :  { %v2689_v15 = vpop.f32.mrf.mxu0 }
 0x122   :  { %v527_v17 = vadd.f32 %v2669_v63, %v526_v13  ;;  %v660_v18 = vadd.f32 %v659_v12, %v597_v14  ;;  %v602_v32 = vmul.f32 %v2689_v15, %v2689_v15 }
 0x123   :  { %v2694_v19 = vpop.f32.mrf.mxu0 }
 0x124   :  { %v661_v21 = vadd.f32 %v660_v18, %v598_v16  ;;  %v528_v22 = vadd.f32 %v2679_v7, %v527_v17  ;;  %v600_v25 = vmul.f32 %v2694_v19, %v2694_v19 }
 0x125   :  { %v2699_v23 = vpop.f32.mrf.mxu0 }
 0x126   :  { %v529_v24 = vadd.f32 %v528_v22, %v2694_v19  ;;  %v662_v26 = vadd.f32 %v661_v21, %v599_v20  ;;  %v603_v36 = vmul.f32 %v2699_v23, %v2699_v23  ;;  %v2413_v21 = vld [vmem:[#allocation7 + $0x38] sm:$0xff]  }
 0x127   :  { %v2704_v27 = vpop.f32.mrf.mxu0  ;;  %2317 = vmatprep.subr.bf16.mxu1 %v2413_v21 }
 0x128   :  { %v663_v28 = vadd.f32 %v662_v26, %v600_v25  ;;  %v530_v29 = vadd.f32 %v529_v24, %v2704_v27  ;;  %v601_v30 = vmul.f32 %v2704_v27, %v2704_v27  ;;  %2318 = vmatpush3.bf16.msra.mxu1 %v2413_v21 }
 0x129   :  { %v2709_v31 = vpop.f32.mrf.mxu0 }
 0x12a   :  { %v531_v33 = vadd.f32 %v2689_v15, %v530_v29  ;;  %v664_v34 = vadd.f32 %v663_v28, %v601_v30  ;;  %v606_v54 = vmul.f32 %v2709_v31, %v2709_v31 }
 0x12b   :  { %v2714_v35 = vpop.f32.mrf.mxu0 }
 0x12c   :  { %v665_v37 = vadd.f32 %v664_v34, %v602_v32  ;;  %v532_v38 = vadd.f32 %v2699_v23, %v531_v33  ;;  %v604_v45 = vmul.f32 %v2714_v35, %v2714_v35  ;;  %v2414_v33 = vld [vmem:[#allocation7 + $0x30] sm:$0xff]  }
 0x12d   :  { %v2719_v39 = vpop.f32.mrf.mxu0  ;;  %2319 = vmatprep.subr.bf16.mxu1 %v2414_v33 }
 0x12e   :  { %v533_v44 = vadd.f32 %v532_v38, %v2714_v35  ;;  %v666_v46 = vadd.f32 %v665_v37, %v603_v36  ;;  %v607_v60 = vmul.f32 %v2719_v39, %v2719_v39  ;;  %2320 = vmatpush3.bf16.msra.mxu1 %v2414_v33  ;;  %v2418_v33 = vld [vmem:[#allocation7 + $0x10] sm:$0xff]  }
 0x12f   :  { %v2724_v48 = vpop.f32.mrf.mxu0 }
 0x130   :  { %v667_v49 = vadd.f32 %v666_v46, %v604_v45  ;;  %v534_v50 = vadd.f32 %v533_v44, %v2724_v48  ;;  %v605_v52 = vmul.f32 %v2724_v48, %v2724_v48 }
 0x131   :  { %v2729_v53 = vpop.f32.mrf.mxu0 }
 0x132   :  { %v535_v56 = vadd.f32 %v2709_v31, %v534_v50  ;;  %v668_v57 = vadd.f32 %v667_v49, %v605_v52  ;;  %v610_v12 = vmul.f32 %v2729_v53, %v2729_v53  ;;  %v2415_v50 = vld [vmem:[#allocation7 + $0x28] sm:$0xff]  }
 0x133   :  { %v2734_v58 = vpop.f32.mrf.mxu0  ;;  %2321 = vmatprep.subr.bf16.mxu1 %v2415_v50 }
 0x134   :  { %v669_v61 = vadd.f32 %v668_v57, %v606_v54  ;;  %v536_v62 = vadd.f32 %v2719_v39, %v535_v56  ;;  %v608_v2 = vmul.f32 %v2734_v58, %v2734_v58  ;;  %2322 = vmatpush3.bf16.msra.mxu1 %v2415_v50 }
 0x135   :  { %v2739_v0 = vpop.f32.mrf.mxu0 }
 0x136   :  { %v537_v1 = vadd.f32 %v536_v62, %v2734_v58  ;;  %v670_v4 = vadd.f32 %v669_v61, %v607_v60  ;;  %v611_v17 = vmul.f32 %v2739_v0, %v2739_v0 }
 0x137   :  { %v2744_v5 = vpop.f32.mrf.mxu0 }
 0x138   :  { %v671_v6 = vadd.f32 %v670_v4, %v608_v2  ;;  %v538_v8 = vadd.f32 %v537_v1, %v2744_v5  ;;  %v609_v9 = vmul.f32 %v2744_v5, %v2744_v5  ;;  %v2416_v2 = vld [vmem:[#allocation7 + $0x20] sm:$0xff]  }
 0x139   :  { %v2749_v10 = vpop.f32.mrf.mxu0  ;;  %2323 = vmatprep.subr.bf16.mxu1 %v2416_v2 }
 0x13a   :  { %v539_v13 = vadd.f32 %v2729_v53, %v538_v8  ;;  %v672_v14 = vadd.f32 %v671_v6, %v609_v9  ;;  %v614_v36 = vmul.f32 %v2749_v10, %v2749_v10  ;;  %2324 = vmatpush3.bf16.msra.mxu1 %v2416_v2  ;;  %v2420_v2 = vld [vmem:[#allocation7] sm:$0xff]  }
 0x13b   :  { %v2754_v16 = vpop.f32.mrf.mxu0 }
 0x13c   :  { %v673_v18 = vadd.f32 %v672_v14, %v610_v12  ;;  %v540_v20 = vadd.f32 %v2739_v0, %v539_v13  ;;  %v612_v25 = vmul.f32 %v2754_v16, %v2754_v16 }
 0x13d   :  { %v2759_v22 = vpop.f32.mrf.mxu0 }
 0x13e   :  { %v541_v24 = vadd.f32 %v540_v20, %v2754_v16  ;;  %v674_v26 = vadd.f32 %v673_v18, %v611_v17  ;;  %v615_v45 = vmul.f32 %v2759_v22, %v2759_v22  ;;  %v2417_v18 = vld [vmem:[#allocation7 + $0x18] sm:$0xff]  }
 0x13f   :  { %v2764_v28 = vpop.f32.mrf.mxu0  ;;  %2325 = vmatprep.subr.bf16.mxu1 %v2417_v18 }
 0x140   :  { %v675_v29 = vadd.f32 %v674_v26, %v612_v25  ;;  %v542_v30 = vadd.f32 %v541_v24, %v2764_v28  ;;  %v613_v32 = vmul.f32 %v2764_v28, %v2764_v28  ;;  %2326 = vmatpush3.bf16.msra.mxu1 %v2417_v18 }
 0x141   :  { %v2769_v34 = vpop.f32.mrf.mxu0  ;;  %2327 = vmatprep.subr.bf16.mxu1 %v2418_v33 }
 0x142   :  { %v543_v37 = vadd.f32 %v2749_v10, %v542_v30  ;;  %v676_v38 = vadd.f32 %v675_v29, %v613_v32  ;;  %v618_v6 = vmul.f32 %v2769_v34, %v2769_v34 }
 0x143   :  { %v2774_v44 = vpop.f32.mrf.mxu0 }
 0x144   :  { %v677_v46 = vadd.f32 %v676_v38, %v614_v36  ;;  %v544_v49 = vadd.f32 %v2759_v22, %v543_v37  ;;  %v616_v56 = vmul.f32 %v2774_v44, %v2774_v44  ;;  %2328 = vmatpush3.bf16.msra.mxu1 %v2418_v33 }
 0x145   :  { %v2779_v52 = vpop.f32.mrf.mxu0 }
 0x146   :  { %v545_v54 = vadd.f32 %v544_v49, %v2774_v44  ;;  %v678_v57 = vadd.f32 %v677_v46, %v615_v45  ;;  %v619_v13 = vmul.f32 %v2779_v52, %v2779_v52 }
 0x147   :  { %v2784_v60 = vpop.f32.mrf.mxu0 }
 0x148   :  { %v679_v61 = vadd.f32 %v678_v57, %v616_v56  ;;  %v546_v62 = vadd.f32 %v545_v54, %v2784_v60  ;;  %v617_v1 = vmul.f32 %v2784_v60, %v2784_v60  ;;  %v2419_v56 = vld [vmem:[#allocation7 + $0x8] sm:$0xff]  }
 0x149   :  { %v2789_v4 = vpop.f32.mrf.mxu0  ;;  %2329 = vmatprep.subr.bf16.mxu1 %v2419_v56 }
 0x14a   :  { %v547_v8 = vadd.f32 %v2769_v34, %v546_v62  ;;  %v680_v9 = vadd.f32 %v679_v61, %v617_v1  ;;  %v622_v37 = vmul.f32 %v2789_v4, %v2789_v4  ;;  %2330 = vmatpush3.bf16.msra.mxu1 %v2419_v56 }
 0x14b   :  { %v2794_v12 = vpop.f32.mrf.mxu0  ;;  %2331 = vmatprep.subr.bf16.mxu1 %v2420_v2 }
 0x14c   :  { %v681_v14 = vadd.f32 %v680_v9, %v618_v6  ;;  %v548_v17 = vadd.f32 %v2779_v52, %v547_v8  ;;  %v620_v24 = vmul.f32 %v2794_v12, %v2794_v12 }
 0x14d   :  { %v2799_v20 = vpop.f32.mrf.mxu0 }
 0x14e   :  { %v549_v21 = vadd.f32 %v548_v17, %v2794_v12  ;;  %v682_v25 = vadd.f32 %v681_v14, %v619_v13  ;;  %v623_v49 = vmul.f32 %v2799_v20, %v2799_v20  ;;  %2332 = vmatpush3.bf16.msra.mxu1 %v2420_v2 }
 0x14f   :  { %v2804_v26 = vpop.f32.mrf.mxu0 }
 0x150   :  { %v683_v29 = vadd.f32 %v682_v25, %v620_v24  ;;  %v550_v30 = vadd.f32 %v549_v21, %v2804_v26  ;;  %v621_v32 = vmul.f32 %v2804_v26, %v2804_v26 }
 0x151   :  { %v2809_v36 = vpop.f32.mrf.mxu0 }
 0x152   :  { %5062 = vst [vmem:[#allocation12_spill] sm:$0xff] %v2809_v36  ;;  %v551_v38 = vadd.f32 %v2789_v4, %v550_v30  ;;  %v684_v45 = vadd.f32 %v683_v29, %v621_v32  ;;  %v626_v17 = vmul.f32 %v2809_v36, %v2809_v36 }
 0x153   :  { %v2814_v46 = vpop.f32.mrf.mxu0 }
 0x154   :  { %v685_v50 = vadd.f32 %v684_v45, %v622_v37  ;;  %v552_v54 = vadd.f32 %v2799_v20, %v551_v38  ;;  %v624_v62 = vmul.f32 %v2814_v46, %v2814_v46 }
 0x155   :  { %v2819_v57 = vpop.f32.mrf.mxu0 }
 0x156   :  { %5063 = vst [vmem:[#allocation13_spill] sm:$0xff] %v2819_v57  ;;  %v553_v61 = vadd.f32 %v552_v54, %v2814_v46  ;;  %v686_v1 = vadd.f32 %v685_v50, %v623_v49  ;;  %v627_v25 = vmul.f32 %v2819_v57, %v2819_v57 }
 0x157   :  { %v2824_v6 = vpop.f32.mrf.mxu0 }
 0x158   :  { %v687_v8 = vadd.f32 %v686_v1, %v624_v62  ;;  %v554_v9 = vadd.f32 %v553_v61, %v2824_v6  ;;  %v625_v13 = vmul.f32 %v2824_v6, %v2824_v6 }
 0x159   :  { %v2829_v14 = vpop.f32.mrf.mxu0 }
 0x15a   :  { %5064 = vst [vmem:[#allocation14_spill] sm:$0xff] %v2829_v14  ;;  %v555_v18 = vadd.f32 %v2809_v36, %v554_v9  ;;  %v688_v21 = vadd.f32 %v687_v8, %v625_v13  ;;  %v630_v61 = vmul.f32 %v2829_v14, %v2829_v14 }
 0x15b   :  { %v2834_v24 = vpop.f32.mrf.mxu0 }
 0x15c   :  { %5065 = vst [vmem:[#allocation15_spill] sm:$0xff] %v2834_v24  ;;  %v689_v29 = vadd.f32 %v688_v21, %v626_v17  ;;  %v556_v30 = vadd.f32 %v2819_v57, %v555_v18  ;;  %v628_v37 = vmul.f32 %v2834_v24, %v2834_v24 }
 0x15d   :  { %v2839_v32 = vpop.f32.mrf.mxu0 }
 0x15e   :  { %5066 = vst [vmem:[#allocation16_spill] sm:$0xff] %v2839_v32  ;;  %v557_v33 = vadd.f32 %v556_v30, %v2834_v24  ;;  %v690_v38 = vadd.f32 %v689_v29, %v627_v25  ;;  %v631_v8 = vmul.f32 %v2839_v32, %v2839_v32 }
 0x15f   :  { %v2844_v45 = vpop.f32.mrf.mxu0 }
 0x160   :  { %5067 = vst [vmem:[#allocation17_spill] sm:$0xff] %v2844_v45  ;;  %v691_v49 = vadd.f32 %v690_v38, %v628_v37  ;;  %v558_v50 = vadd.f32 %v557_v33, %v2844_v45  ;;  %v629_v54 = vmul.f32 %v2844_v45, %v2844_v45 }
 0x161   :  { %v2849_v56 = vpop.f32.mrf.mxu0 }
 0x162   :  { %5068 = vst [vmem:[#allocation18_spill] sm:$0xff] %v2849_v56  ;;  %v559_v62 = vadd.f32 %v2829_v14, %v558_v50  ;;  %v692_v1 = vadd.f32 %v691_v49, %v629_v54  ;;  %v634_v49 = vmul.f32 %v2849_v56, %v2849_v56 }
 0x163   :  { %v2854_v2 = vpop.f32.mrf.mxu0 }
 0x164   :  { %5069 = vst [vmem:[#allocation19_spill] sm:$0xff] %v2854_v2  ;;  %v693_v9 = vadd.f32 %v692_v1, %v630_v61  ;;  %v560_v13 = vadd.f32 %v2839_v32, %v559_v62  ;;  %v632_v21 = vmul.f32 %v2854_v2, %v2854_v2 }
 0x165   :  { %v2859_v17 = vpop.f32.mrf.mxu0 }
 0x166   :  { %5070 = vst [vmem:[#allocation20_spill] sm:$0xff] %v2859_v17  ;;  %v561_v18 = vadd.f32 %v560_v13, %v2854_v2  ;;  %v694_v25 = vadd.f32 %v693_v9, %v631_v8  ;;  %v635_v62 = vmul.f32 %v2859_v17, %v2859_v17 }
 0x167   :  { %v2864_v29 = vpop.f32.mrf.mxu0 }
 0x168   :  { %5071 = vst [vmem:[#allocation21_spill] sm:$0xff] %v2864_v29  ;;  %v695_v30 = vadd.f32 %v694_v25, %v632_v21  ;;  %v562_v33 = vadd.f32 %v561_v18, %v2864_v29  ;;  %v633_v37 = vmul.f32 %v2864_v29, %v2864_v29 }
 0x169   :  { %v2869_v38 = vpop.f32.mrf.mxu0 }
 0x16a   :  { %5072 = vst [vmem:[#allocation22_spill] sm:$0xff] %v2869_v38  ;;  %v563_v50 = vadd.f32 %v2849_v56, %v562_v33  ;;  %v696_v54 = vadd.f32 %v695_v30, %v633_v37 }
 0x16b   :  { %v2874_v61 = vpop.f32.mrf.mxu0 }
 0x16c   :  { %5073 = vst [vmem:[#allocation23_spill] sm:$0xff] %v2874_v61  ;;  %v697_v1 = vadd.f32 %v696_v54, %v634_v49  ;;  %v564_v8 = vadd.f32 %v2859_v17, %v563_v50  ;;  %v636_v18 = vmul.f32 %v2874_v61, %v2874_v61  ;;  %v638_v49 = vmul.f32 %v2869_v38, %v2869_v38 }
 0x16d   :  { %v2879_v9 = vpop.f32.mrf.mxu0 }
 0x16e   :  { %5074 = vst [vmem:[#allocation24_spill] sm:$0xff] %v2879_v9  ;;  %v565_v13 = vadd.f32 %v564_v8, %v2874_v61  ;;  %v698_v21 = vadd.f32 %v697_v1, %v635_v62  ;;  %v639_v62 = vmul.f32 %v2879_v9, %v2879_v9 }
 0x16f   :  { %v2884_v25 = vpop.f32.mrf.mxu0 }
 0x170   :  { %5075 = vst [vmem:[#allocation25_spill] sm:$0xff] %v2884_v25  ;;  %v699_v33 = vadd.f32 %v698_v21, %v636_v18  ;;  %v566_v30 = vadd.f32 %v565_v13, %v2884_v25  ;;  %v637_v37 = vmul.f32 %v2884_v25, %v2884_v25 }
 0x171   :  { %v2889_v56 = vpop.f32.mrf.mxu0 }
 0x172   :  { %5076 = vst [vmem:[#allocation26_spill] sm:$0xff] %v2889_v56  ;;  %v567_v50 = vadd.f32 %v2869_v38, %v566_v30  ;;  %v700_v54 = vadd.f32 %v699_v33, %v637_v37 }
 0x173   :  { %v2894_v8 = vpop.f32.mrf.mxu0 }
 0x174   :  { %5077 = vst [vmem:[#allocation27_spill] sm:$0xff] %v2894_v8  ;;  %v701_v1 = vadd.f32 %v700_v54, %v638_v49  ;;  %v568_v18 = vadd.f32 %v2879_v9, %v567_v50  ;;  %v640_v25 = vmul.f32 %v2894_v8, %v2894_v8  ;;  %v642_v49 = vmul.f32 %v2889_v56, %v2889_v56 }
 0x175   :  { %v2899_v13 = vpop.f32.mrf.mxu0 }
 0x176   :  { %5078 = vst [vmem:[#allocation28_spill] sm:$0xff] %v2899_v13  ;;  %v569_v21 = vadd.f32 %v568_v18, %v2894_v8  ;;  %v702_v61 = vadd.f32 %v701_v1, %v639_v62  ;;  %v643_v62 = vmul.f32 %v2899_v13, %v2899_v13 }
 0x177   :  { %v2904_v17 = vpop.f32.mrf.mxu0 }
 0x178   :  { %5079 = vst [vmem:[#allocation29_spill] sm:$0xff] %v2904_v17  ;;  %v703_v30 = vadd.f32 %v702_v61, %v640_v25  ;;  %v570_v33 = vadd.f32 %v569_v21, %v2904_v17  ;;  %v641_v37 = vmul.f32 %v2904_v17, %v2904_v17 }
 0x179   :  { %v2909_v38 = vpop.f32.mrf.mxu0 }
 0x17a   :  { %5080 = vst [vmem:[#allocation30_spill] sm:$0xff] %v2909_v38  ;;  %v571_v50 = vadd.f32 %v2889_v56, %v570_v33  ;;  %v704_v54 = vadd.f32 %v703_v30, %v641_v37 }
 0x17b   :  { %v2914_v18 = vpop.f32.mrf.mxu0 }
 0x17c   :  { %5081 = vst [vmem:[#allocation31_spill] sm:$0xff] %v2914_v18  ;;  %v705_v1 = vadd.f32 %v704_v54, %v642_v49  ;;  %v572_v61 = vadd.f32 %v2899_v13, %v571_v50  ;;  %v644_v17 = vmul.f32 %v2914_v18, %v2914_v18  ;;  %v646_v49 = vmul.f32 %v2909_v38, %v2909_v38 }
 0x17d   :  { %v2919_v25 = vpop.f32.mrf.mxu0 }
 0x17e   :  { %5082 = vst [vmem:[#allocation32_spill] sm:$0xff] %v2919_v25  ;;  %v573_v21 = vadd.f32 %v572_v61, %v2914_v18  ;;  %v706_v8 = vadd.f32 %v705_v1, %v643_v62  ;;  %v647_v62 = vmul.f32 %v2919_v25, %v2919_v25 }
 0x17f   :  { %v2924_v9 = vpop.f32.mrf.mxu0 }
 0x180   :  { %5083 = vst [vmem:[#allocation33_spill] sm:$0xff] %v2924_v9  ;;  %v707_v33 = vadd.f32 %v706_v8, %v644_v17  ;;  %v574_v30 = vadd.f32 %v573_v21, %v2924_v9  ;;  %v645_v37 = vmul.f32 %v2924_v9, %v2924_v9 }
 0x181   :  { %v2929_v56 = vpop.f32.mrf.mxu0 }
 0x182   :  { %5084 = vst [vmem:[#allocation34_spill] sm:$0xff] %v2929_v56  ;;  %v575_v50 = vadd.f32 %v2909_v38, %v574_v30  ;;  %v708_v54 = vadd.f32 %v707_v33, %v645_v37  ;;  %v650_v37 = vmul.f32 %v2929_v56, %v2929_v56 }
 0x183   :  { %v2934_v61 = vpop.f32.mrf.mxu0 }
 0x184   :  { %5085 = vst [vmem:[#allocation35_spill] sm:$0xff] %v2934_v61  ;;  %v709_v1 = vadd.f32 %v708_v54, %v646_v49  ;;  %v576_v17 = vadd.f32 %v2919_v25, %v575_v50  ;;  %v648_v9 = vmul.f32 %v2934_v61, %v2934_v61 }
 0x185   :  { %v2939_v8 = vpop.f32.mrf.mxu0 }
 0x186   :  { %v577_v21 = vadd.f32 %v576_v17, %v2934_v61  ;;  %v710_v18 = vadd.f32 %v709_v1, %v647_v62  ;;  %v651_v50 = vmul.f32 %v2939_v8, %v2939_v8 }
 0x187   :  { %v506_v13 = vpop.f32.mrf.mxu0 }
 0x188   :  { %v711_v29 = vadd.f32 %v710_v18, %v648_v9  ;;  %v578_v30 = vadd.f32 %v577_v21, %v506_v13  ;;  %v649_v33 = vmul.f32 %v506_v13, %v506_v13 }
 0x18a   :  { %v579_v38 = vadd.f32 %v2929_v56, %v578_v30  ;;  %v712_v49 = vadd.f32 %v711_v29, %v649_v33 }
 0x18c   :  { %v580_v54 = vadd.f32 %v2939_v8, %v579_v38  ;;  %v713_v17 = vadd.f32 %v712_v49, %v650_v37  ;;  %v733_v37 = vlaneseq }
 0x18e   :  { %v581_v25 = vrot.slane %v580_v54, 4  ;;  %v714_v2 = vadd.f32 %v713_v17, %v651_v50  ;;  %v734_v49 = vshrl.u32 %v733_v37, 7 }
 0x190   :  { %v582_v61 = vadd.f32 %v581_v25, %v580_v54  ;;  %v715_v62 = vrot.slane %v714_v2, 4  ;;  %v2953_v25 = vsub.s32 0, %v734_v49 }
 0x192   :  { %v583_v1 = vrot.slane %v582_v61, 2  ;;  %v716_v9 = vadd.f32 %v715_v62, %v714_v2  ;;  %v725_v2 = vld [vmem:[%s4972_s2] sm:$0x1]  ;;  %5086 = vst [vmem:[#allocation36_spill] sm:$0xff] %v2953_v25 }
 0x194   :  { %v584_v18 = vadd.f32 %v583_v1, %v582_v61  ;;  %v717_v21 = vrot.slane %v716_v9, 2 }
 0x196   :  { %v585_v32 = vrot.slane %v584_v18, 1  ;;  %v718_v14 = vadd.f32 %v717_v21, %v716_v9  ;;  %v5098_v21 = vld [vmem:[#allocation12_spill] sm:$0xff] }
 0x198   :  { %v586_v45 = vadd.f32 %v585_v32, %v584_v18  ;;  %v719_v24 = vrot.slane %v718_v14, 1 }
 0x19a   :  { %v587_v30 = vmul.f32 0.001953125, %v586_v45  ;;  %v720_v29 = vadd.f32 %v719_v24, %v718_v14  ;;  %v729_v14 = vld [vmem:[%s4973_s3] sm:$0x1] }
 0x19c   :  { %v721_v33 = vmul.f32 0.001953125, %v720_v29  ;;  %v722_v56 = vmul.f32 %v587_v30, %v587_v30 }
 0x19e   :  { %v723_v57 = vsub.f32 %v721_v33, %v722_v56 }
 0x1a0   :  { %v724_v36 = vmax.f32 %v723_v57, 0.0 }
 0x1a2   :  { %v726_v38 = vadd.f32 1e-05, %v724_v36 }
 0x1a4   :  { %2421 = vrsqrt.f32 %v726_v38  ;;  %v5101_v38 = vld [vmem:[#allocation17_spill] sm:$0xff] }
 0x1b1   :  { %v2422_v61 = vpop.eup %2421 }
 0x1b2   :  { %v728_v50 = vmul.f32 %v2422_v61, %v725_v2  ;;  %v5104_v2 = vld [vmem:[#allocation19_spill] sm:$0xff]  ;;  %v5105_v61 = vld [vmem:[#allocation21_spill] sm:$0xff] }
 0x1b4   :  { %v730_v24 = vmul.f32 %v728_v50, %v587_v30  ;;  %v2959_v32 = vrot.slane %v728_v50, %v2953_v25  ;;  %v5099_v30 = vld [vmem:[#allocation13_spill] sm:$0xff] }
 0x1b6   :  { %v731_v36 = vsub.f32 %v729_v14, %v730_v24  ;;  %v799_v57 = vmul.f32 %v2959_v32, %v506_v13  ;;  %v2970_v54 = vmul.f32 %v2959_v32, %v2637_v41  ;;  %v2974_v17 = vmul.f32 %v2959_v32, %v2641_v43  ;;  %v5106_v14 = vld [vmem:[#allocation18_spill] sm:$0xff] }
 0x1b7   :  { %v740_v62 = vmul.f32 %v2635_v40, %v2959_v32  ;;  %v741_v13 = vmul.f32 %v2639_v42, %v2959_v32  ;;  %v742_v1 = vmul.f32 %v2959_v32, %v2654_v51  ;;  %v743_v9 = vmul.f32 %v2959_v32, %v2664_v59 }
 0x1b8   :  { %v2963_v45 = vrot.slane %v731_v36, %v2953_v25  ;;  %v744_v41 = vmul.f32 %v2649_v47, %v2959_v32  ;;  %v745_v18 = vmul.f32 %v2659_v55, %v2959_v32  ;;  %v746_v43 = vmul.f32 %v2959_v32, %v2674_v3  ;;  %v5107_v36 = vld [vmem:[#allocation20_spill] sm:$0xff] }
 0x1b9   :  { %v747_v40 = vmul.f32 %v2959_v32, %v2684_v11  ;;  %v748_v42 = vmul.f32 %v2669_v63, %v2959_v32  ;;  %v749_v51 = vmul.f32 %v2679_v7, %v2959_v32  ;;  %v750_v59 = vmul.f32 %v2959_v32, %v2694_v19 }
 0x1ba   :  { %v2966_v56 = vadd.f32 %v2963_v45, %v799_v57  ;;  %v751_v47 = vmul.f32 %v2959_v32, %v2704_v27  ;;  %v752_v55 = vmul.f32 %v2689_v15, %v2959_v32  ;;  %v753_v3 = vmul.f32 %v2699_v23, %v2959_v32 }
 0x1bb   :  { %v754_v11 = vmul.f32 %v2959_v32, %v2714_v35  ;;  %v755_v63 = vmul.f32 %v2959_v32, %v2724_v48  ;;  %v756_v7 = vmul.f32 %v2709_v31, %v2959_v32  ;;  %v757_v27 = vmul.f32 %v2719_v39, %v2959_v32 }
 0x1bc   :  { %5087 = vst [vmem:[#allocation37_spill] sm:$0xff] %v2966_v56  ;;  %v3011_v19 = vmul.f32 0.2, %v2966_v56  ;;  %v758_v15 = vmul.f32 %v2959_v32, %v2734_v58  ;;  %v3019_v23 = vmul.f32 %v2959_v32, %v2744_v5  ;;  %v3023_v35 = vmul.f32 %v2729_v53, %v2959_v32  ;;  %v5113_v56 = vld [vmem:[#allocation29_spill] sm:$0xff] }
 0x1bd   :  { %v3027_v31 = vmul.f32 %v2739_v0, %v2959_v32  ;;  %v3031_v48 = vmul.f32 %v2959_v32, %v2754_v16  ;;  %v3035_v39 = vmul.f32 %v2959_v32, %v2764_v28  ;;  %v3039_v58 = vmul.f32 %v2749_v10, %v2959_v32 }
 0x1be   :  { %5088 = vst [vmem:[#allocation38_spill] sm:$0xff] %v3011_v19  ;;  %v3043_v53 = vmul.f32 %v2759_v22, %v2959_v32  ;;  %v3047_v0 = vmul.f32 %v2959_v32, %v2774_v44  ;;  %v3051_v5 = vmul.f32 %v2959_v32, %v2784_v60  ;;  %v3055_v16 = vmul.f32 %v2769_v34, %v2959_v32  ;;  %v5112_v19 = vld [vmem:[#allocation27_spill] sm:$0xff] }
 0x1bf   :  { %5089 = vst [vmem:[#allocation39_spill] sm:$0xff] %v3035_v39  ;;  %5090 = vst [vmem:[#allocation40_spill] sm:$0xff] %v3039_v58  ;;  %v3059_v10 = vmul.f32 %v2779_v52, %v2959_v32  ;;  %v3063_v22 = vmul.f32 %v2959_v32, %v2794_v12  ;;  %v3067_v28 = vmul.f32 %v2959_v32, %v2804_v26  ;;  %v5100_v26 = vld [vmem:[#allocation15_spill] sm:$0xff] }
 0x1c0   :  { %5091 = vst [vmem:[#allocation41_spill] sm:$0xff] %v3043_v53  ;;  %5092 = vst [vmem:[#allocation42_spill] sm:$0xff] %v3047_v0  ;;  %v772_v44 = vmul.f32 %v2789_v4, %v2959_v32  ;;  %v773_v60 = vmul.f32 %v2799_v20, %v2959_v32  ;;  %v774_v34 = vmul.f32 %v2959_v32, %v2814_v46  ;;  %v5102_v20 = vld [vmem:[#allocation14_spill] sm:$0xff]  ;;  %v5103_v46 = vld [vmem:[#allocation16_spill] sm:$0xff] }
 0x1c1   :  { %5093 = vst [vmem:[#allocation43_spill] sm:$0xff] %v3051_v5  ;;  %5094 = vst [vmem:[#allocation44_spill] sm:$0xff] %v3055_v16  ;;  %v775_v52 = vmul.f32 %v2959_v32, %v2824_v6  ;;  %v776_v12 = vmul.f32 %v5098_v21, %v2959_v32  ;;  %v777_v29 = vmul.f32 %v5099_v30, %v2959_v32  ;;  %v5108_v21 = vld [vmem:[#allocation23_spill] sm:$0xff]  ;;  %v5117_v16 = vld [vmem:[#allocation33_spill] sm:$0xff] }
 0x1c2   :  { %5095 = vst [vmem:[#allocation45_spill] sm:$0xff] %v3059_v10  ;;  %5096 = vst [vmem:[#allocation46_spill] sm:$0xff] %v3063_v22  ;;  %v778_v33 = vmul.f32 %v2959_v32, %v5100_v26  ;;  %v779_v4 = vmul.f32 %v2959_v32, %v5101_v38  ;;  %v780_v37 = vmul.f32 %v5102_v20, %v2959_v32  ;;  %v5109_v38 = vld [vmem:[#allocation25_spill] sm:$0xff]  ;;  %v5116_v10 = vld [vmem:[#allocation31_spill] sm:$0xff] }
 0x1c3   :  { %5097 = vst [vmem:[#allocation47_spill] sm:$0xff] %v3067_v28  ;;  %v781_v49 = vmul.f32 %v5103_v46, %v2959_v32  ;;  %v782_v6 = vmul.f32 %v2959_v32, %v5104_v2  ;;  %v783_v50 = vmul.f32 %v2959_v32, %v5105_v61  ;;  %v784_v24 = vmul.f32 %v5106_v14, %v2959_v32  ;;  %v5110_v46 = vld [vmem:[#allocation22_spill] sm:$0xff]  ;;  %v5111_v61 = vld [vmem:[#allocation24_spill] sm:$0xff]  ;;  %v5120_v53 = vld [vmem:[#allocation35_spill] sm:$0xff] }
 0x1c4   :  { %v785_v57 = vmul.f32 %v5107_v36, %v2959_v32  ;;  %v786_v30 = vmul.f32 %v2959_v32, %v5108_v21  ;;  %v801_v26 = vmul.f32 %v2939_v8, %v2959_v32  ;;  %v787_v20 = vmul.f32 %v2959_v32, %v5109_v38  ;;  %v5114_v21 = vld [vmem:[#allocation26_spill] sm:$0xff]  ;;  %v5115_v8 = vld [vmem:[#allocation28_spill] sm:$0xff] }
 0x1c5   :  { %v788_v2 = vmul.f32 %v5110_v46, %v2959_v32  ;;  %v789_v25 = vmul.f32 %v5111_v61, %v2959_v32  ;;  %v790_v14 = vmul.f32 %v2959_v32, %v5112_v19  ;;  %v791_v36 = vmul.f32 %v2959_v32, %v5113_v56  ;;  %v5118_v61 = vld [vmem:[#allocation30_spill] sm:$0xff]  ;;  %v5119_v19 = vld [vmem:[#allocation32_spill] sm:$0xff] }
 0x1c6   :  { %v792_v28 = vmul.f32 %v5114_v21, %v2959_v32  ;;  %v793_v22 = vmul.f32 %v5115_v8, %v2959_v32  ;;  %v794_v38 = vmul.f32 %v2959_v32, %v5116_v10  ;;  %v795_v46 = vmul.f32 %v2959_v32, %v5117_v16  ;;  %v5121_v21 = vld [vmem:[#allocation34_spill] sm:$0xff] }
 0x1c7   :  { %v796_v5 = vmul.f32 %v5118_v61, %v2959_v32  ;;  %v797_v0 = vmul.f32 %v5119_v19, %v2959_v32  ;;  %v798_v56 = vmul.f32 %v2959_v32, %v5120_v53  ;;  %v800_v58 = vmul.f32 %v5121_v21, %v2959_v32 }
 0x1c8   :  { %v810_v8 = vadd.f32 %v2963_v45, %v740_v62  ;;  %v811_v39 = vadd.f32 %v2963_v45, %v741_v13  ;;  %v3130_v10 = vadd.f32 %v2963_v45, %v742_v1  ;;  %v3133_v16 = vadd.f32 %v2963_v45, %v743_v9 }
 0x1c9   :  { %v3136_v61 = vadd.f32 %v2963_v45, %v744_v41  ;;  %v3139_v19 = vadd.f32 %v2963_v45, %v745_v18  ;;  %v3142_v53 = vadd.f32 %v2963_v45, %v746_v43  ;;  %v3145_v32 = vadd.f32 %v2963_v45, %v747_v40 }
 0x1ca   :  { %v3148_v62 = vadd.f32 %v2963_v45, %v748_v42  ;;  %v3151_v13 = vadd.f32 %v2963_v45, %v749_v51  ;;  %v3154_v1 = vadd.f32 %v2963_v45, %v750_v59  ;;  %v3157_v9 = vadd.f32 %v2963_v45, %v751_v47 }
 0x1cb   :  { %v3160_v41 = vadd.f32 %v2963_v45, %v752_v55  ;;  %v3163_v18 = vadd.f32 %v2963_v45, %v753_v3  ;;  %v3166_v43 = vadd.f32 %v2963_v45, %v754_v11  ;;  %v3169_v40 = vadd.f32 %v2963_v45, %v755_v63 }
 0x1cc   :  { %v3172_v42 = vadd.f32 %v2963_v45, %v756_v7  ;;  %v3175_v51 = vadd.f32 %v2963_v45, %v757_v27  ;;  %v3178_v59 = vadd.f32 %v2963_v45, %v758_v15  ;;  %v3181_v47 = vadd.f32 %v2963_v45, %v772_v44 }
 0x1cd   :  { %v3184_v55 = vadd.f32 %v2963_v45, %v773_v60  ;;  %v3187_v3 = vadd.f32 %v2963_v45, %v774_v34  ;;  %v3190_v11 = vadd.f32 %v2963_v45, %v775_v52  ;;  %v3193_v63 = vadd.f32 %v2963_v45, %v776_v12 }
 0x1ce   :  { %v3196_v7 = vadd.f32 %v2963_v45, %v777_v29  ;;  %v3199_v27 = vadd.f32 %v2963_v45, %v778_v33  ;;  %v3202_v15 = vadd.f32 %v2963_v45, %v779_v4  ;;  %v3205_v44 = vadd.f32 %v2963_v45, %v780_v37 }
 0x1cf   :  { %v3208_v60 = vadd.f32 %v2963_v45, %v781_v49  ;;  %v3211_v34 = vadd.f32 %v2963_v45, %v782_v6  ;;  %v3214_v52 = vadd.f32 %v2963_v45, %v783_v50  ;;  %v3217_v12 = vadd.f32 %v2963_v45, %v784_v24 }
 0x1d0   :  { %v3220_v29 = vadd.f32 %v2963_v45, %v785_v57  ;;  %v3223_v33 = vadd.f32 %v2963_v45, %v786_v30  ;;  %v3226_v4 = vadd.f32 %v2963_v45, %v787_v20  ;;  %v3229_v37 = vadd.f32 %v2963_v45, %v788_v2 }
 0x1d1   :  { %v3232_v49 = vadd.f32 %v2963_v45, %v789_v25  ;;  %v3235_v6 = vadd.f32 %v2963_v45, %v790_v14  ;;  %v3238_v50 = vadd.f32 %v2963_v45, %v791_v36  ;;  %v3241_v24 = vadd.f32 %v2963_v45, %v792_v28 }
 0x1d2   :  { %v3244_v57 = vadd.f32 %v2963_v45, %v793_v22  ;;  %v3247_v30 = vadd.f32 %v2963_v45, %v794_v38  ;;  %v3250_v20 = vadd.f32 %v2963_v45, %v795_v46  ;;  %v3253_v25 = vadd.f32 %v2963_v45, %v796_v5 }
 0x1d3   :  { %v3256_v2 = vadd.f32 %v2963_v45, %v797_v0  ;;  %v3259_v14 = vadd.f32 %v2963_v45, %v798_v56  ;;  %v3262_v28 = vadd.f32 %v2963_v45, %v800_v58  ;;  %v3265_v22 = vadd.f32 %v2963_v45, %v801_v26 }
 0x1d4   :  { %5122 = vst [vmem:[#allocation12_spill] sm:$0xff] %v3253_v25  ;;  %v808_v36 = vadd.f32 %v2963_v45, %v2970_v54  ;;  %v809_v38 = vadd.f32 %v2963_v45, %v2974_v17  ;;  %vm874_vm0 = vcmp.gt.f32.partialorder %v810_v8, 0.0  ;;  %vm875_vm1 = vcmp.gt.f32.partialorder %v811_v39, 0.0 }
 0x1d5   :  { %5123 = vst [vmem:[#allocation13_spill] sm:$0xff] %v3256_v2  ;;  %5124 = vst [vmem:[#allocation15_spill] sm:$0xff] %v3259_v14  ;;  %v938_v5 = vmul.f32 0.2, %v810_v8  ;;  %v939_v0 = vmul.f32 0.2, %v811_v39  ;;  %v3277_v14 = vadd.f32 %v2963_v45, %v3019_v23  ;;  %v3281_v2 = vadd.f32 %v2963_v45, %v3023_v35 }
 0x1d6   :  { %5125 = vst [vmem:[#allocation17_spill] sm:$0xff] %v3262_v28  ;;  %5126 = vst [vmem:[#allocation14_spill] sm:$0xff] %v3265_v22  ;;  %vm876_vm2 = vcmp.gt.f32.partialorder %v3130_v10, 0.0  ;;  %vm872_vm3 = vcmp.gt.f32.partialorder %v808_v36, 0.0  ;;  %vm873_vm4 = vcmp.gt.f32.partialorder %v809_v38, 0.0  ;;  %vm877_vm5 = vcmp.gt.f32.partialorder %v3133_v16, 0.0 }
 0x1d7   :  { %v936_v46 = vmul.f32 0.2, %v808_v36  ;;  %v937_v58 = vmul.f32 0.2, %v809_v38  ;;  %v1002_v56 = vsel %vm874_vm0, %v810_v8, %v938_v5  ;;  %v1003_v21 = vsel %vm875_vm1, %v811_v39, %v939_v0  ;;  %v5127_v5 = vld [vmem:[#allocation39_spill] sm:$0xff] }
 0x1d8   :  { %v940_v26 = vmul.f32 0.2, %v3130_v10  ;;  %v1065_v28 = vpack.c.bf16 %v1003_v21, %v1002_v56  ;;  %v941_v17 = vmul.f32 0.2, %v3133_v16  ;;  %v3288_v8 = vadd.f32 %v2963_v45, %v3027_v31 }
 0x1d9   :  { %v1000_v54 = vsel %vm872_vm3, %v808_v36, %v936_v46  ;;  %v1001_v22 = vsel %vm873_vm4, %v809_v38, %v937_v58  ;;  %vm878_vm6 = vcmp.gt.f32.partialorder %v3136_v61, 0.0  ;;  %v942_v23 = vmul.f32 0.2, %v3136_v61 }
 0x1da   :  { %v1064_v25 = vpack.c.bf16 %v1001_v22, %v1000_v54  ;;  %v1004_v39 = vsel %vm876_vm2, %v3130_v10, %v940_v26  ;;  %v1005_v36 = vsel %vm877_vm5, %v3133_v16, %v941_v17  ;;  %v3295_v38 = vadd.f32 %v2963_v45, %v3031_v48 }
 0x1db   :  { %v1066_v35 = vpack.c.bf16 %v1005_v36, %v1004_v39  ;;  %v943_v22 = vmul.f32 0.2, %v3139_v19  ;;  %v944_v10 = vmul.f32 0.2, %v3142_v53  ;;  %v3301_v31 = vadd.f32 %v2963_v45, %v5127_v5  ;;  %v5128_v39 = vld [vmem:[#allocation40_spill] sm:$0xff] }
 0x1dc   :  { %2333 = vmatprep.mubr.bf16.mxu1 %v1064_v25  ;;  %vm879_vm7 = vcmp.gt.f32.partialorder %v3139_v19, 0.0  ;;  %vm880_vm8 = vcmp.gt.f32.partialorder %v3142_v53, 0.0  ;;  %v945_v16 = vmul.f32 0.2, %v3145_v32  ;;  %v1006_v48 = vsel %vm878_vm6, %v3136_v61, %v942_v23  ;;  %v5129_v23 = vld [vmem:[#allocation41_spill] sm:$0xff] }
 0x1dd   :  { %2334 = vmatmul.mubr.bf16.vlgmr.msra.gmra.mxu1 %v1065_v28  ;;  %vm881_vm9 = vcmp.gt.f32.partialorder %v3145_v32, 0.0  ;;  %vm882_vm10 = vcmp.gt.f32.partialorder %v3148_v62, 0.0  ;;  %v946_v25 = vmul.f32 0.2, %v3148_v62  ;;  %vm883_vm11 = vcmp.gt.f32.partialorder %v3151_v13, 0.0 }
 0x1de   :  { %2337 = vmatprep.mubr.bf16.mxu1 %v1066_v35  ;;  %v947_v0 = vmul.f32 0.2, %v3151_v13  ;;  %vm884_vm12 = vcmp.gt.f32.partialorder %v3154_v1, 0.0  ;;  %vm885_vm13 = vcmp.gt.f32.partialorder %v3157_v9, 0.0  ;;  %v1007_v28 = vsel %vm879_vm7, %v3139_v19, %v943_v22 }
 0x1df   :  { %v1008_v46 = vsel %vm880_vm8, %v3142_v53, %v944_v10  ;;  %v948_v61 = vmul.f32 0.2, %v3154_v1  ;;  %v949_v58 = vmul.f32 0.2, %v3157_v9  ;;  %v1009_v56 = vsel %vm881_vm9, %v3145_v32, %v945_v16 }
 0x1e0   :  { %v1010_v21 = vsel %vm882_vm10, %v3148_v62, %v946_v25  ;;  %vm886_vm14 = vcmp.gt.f32.partialorder %v3160_v41, 0.0  ;;  %v950_v26 = vmul.f32 0.2, %v3160_v41  ;;  %v1011_v54 = vsel %vm883_vm11, %v3151_v13, %v947_v0  ;;  %v5130_v62 = vld [vmem:[#allocation42_spill] sm:$0xff]  ;;  %v5131_v13 = vld [vmem:[#allocation43_spill] sm:$0xff] }
 0x1e1   :  { %v1012_v17 = vsel %vm884_vm12, %v3154_v1, %v948_v61  ;;  %v1013_v19 = vsel %vm885_vm13, %v3157_v9, %v949_v58  ;;  %v951_v53 = vmul.f32 0.2, %v3163_v18  ;;  %v834_v36 = vadd.f32 %v2963_v45, %v5128_v39  ;;  %v5132_v9 = vld [vmem:[#allocation44_spill] sm:$0xff] }
 0x1e2   :  { %v835_v32 = vadd.f32 %v2963_v45, %v5129_v23  ;;  %v1067_v35 = vpack.c.bf16 %v1007_v28, %v1006_v48  ;;  %vm887_vm15 = vcmp.gt.f32.partialorder %v3163_v18, 0.0  ;;  %v3333_v22 = vadd.f32 %v2963_v45, %v5130_v62 }
 0x1e3   :  { %v3337_v1 = vadd.f32 %v2963_v45, %v5131_v13  ;;  %v3341_v10 = vadd.f32 %v2963_v45, %v5132_v9  ;;  %v1068_v5 = vpack.c.bf16 %v1009_v56, %v1008_v46  ;;  %v1069_v16 = vpack.c.bf16 %v1011_v54, %v1010_v21  ;;  %v5133_v13 = vld [vmem:[#allocation45_spill] sm:$0xff] }
 0x1e4   :  { %v1070_v25 = vpack.c.bf16 %v1013_v19, %v1012_v17  ;;  %v3346_v48 = vsel %vm886_vm14, %v3160_v41, %v950_v26  ;;  %vm888_vm0 = vcmp.gt.f32.partialorder %v3166_v43, 0.0  ;;  %v1015_v0 = vsel %vm887_vm15, %v3163_v18, %v951_v53 }
 0x1e5   :  { %2338 = vmatmul.mubr.bf16.gmra.mxu1 %v1067_v35  ;;  %vm889_vm1 = vcmp.gt.f32.partialorder %v3169_v40, 0.0  ;;  %v952_v28 = vmul.f32 0.2, %v3166_v43  ;;  %v953_v61 = vmul.f32 0.2, %v3169_v40  ;;  %vm890_vm2 = vcmp.gt.f32.partialorder %v3172_v42, 0.0 }
 0x1e6   :  { %2341 = vmatprep.mubr.bf16.mxu1 %v1068_v5  ;;  %vm891_vm3 = vcmp.gt.f32.partialorder %v3175_v51, 0.0  ;;  %v954_v46 = vmul.f32 0.2, %v3172_v42  ;;  %v955_v41 = vmul.f32 0.2, %v3175_v51  ;;  %vm892_vm4 = vcmp.gt.f32.partialorder %v3178_v59, 0.0 }
 0x1e7   :  { %vm893_vm5 = vcmp.gt.f32.partialorder %v3277_v14, 0.0  ;;  %v956_v18 = vmul.f32 0.2, %v3178_v59  ;;  %v957_v58 = vmul.f32 0.2, %v3277_v14  ;;  %vm894_vm6 = vcmp.gt.f32.partialorder %v3281_v2, 0.0 }
 0x1e8   :  { %vm895_vm7 = vcmp.gt.f32.partialorder %v3288_v8, 0.0  ;;  %v958_v56 = vmul.f32 0.2, %v3281_v2  ;;  %v959_v21 = vmul.f32 0.2, %v3288_v8  ;;  %vm896_vm8 = vcmp.gt.f32.partialorder %v3295_v38, 0.0 }
 0x1e9   :  { %vm897_vm9 = vcmp.gt.f32.partialorder %v3301_v31, 0.0  ;;  %v960_v26 = vmul.f32 0.2, %v3295_v38  ;;  %v961_v54 = vmul.f32 0.2, %v3301_v31  ;;  %v1016_v17 = vsel %vm888_vm0, %v3166_v43, %v952_v28 }
 0x1ea   :  { %v1017_v19 = vsel %vm889_vm1, %v3169_v40, %v953_v61  ;;  %v3378_v53 = vsel %vm890_vm2, %v3172_v42, %v954_v46  ;;  %v3383_v39 = vsel %vm891_vm3, %v3175_v51, %v955_v41  ;;  %v3388_v23 = vsel %vm892_vm4, %v3178_v59, %v956_v18 }
 0x1eb   :  { %v3393_v43 = vsel %vm893_vm5, %v3277_v14, %v957_v58  ;;  %v3396_v40 = vsel %vm894_vm6, %v3281_v2, %v958_v56  ;;  %v3399_v42 = vsel %vm895_vm7, %v3288_v8, %v959_v21  ;;  %v3402_v51 = vsel %vm896_vm8, %v3295_v38, %v960_v26  ;;  %v5134_v14 = vld [vmem:[#allocation46_spill] sm:$0xff]  ;;  %v5135_v8 = vld [vmem:[#allocation47_spill] sm:$0xff] }
 0x1ec   :  { %v3405_v35 = vsel %vm897_vm9, %v3301_v31, %v961_v54  ;;  %v962_v59 = vmul.f32 0.2, %v834_v36  ;;  %v963_v62 = vmul.f32 0.2, %v835_v32  ;;  %v3409_v9 = vadd.f32 %v2963_v45, %v5133_v13 }
 0x1ed   :  { %2342 = vmatmul.mubr.bf16.gmra.mxu1 %v1069_v16  ;;  %v3413_v2 = vadd.f32 %v2963_v45, %v5134_v14  ;;  %vm898_vm10 = vcmp.gt.f32.partialorder %v834_v36, 0.0  ;;  %vm899_vm11 = vcmp.gt.f32.partialorder %v835_v32, 0.0  ;;  %v3417_v38 = vadd.f32 %v2963_v45, %v5135_v8 }
 0x1ee   :  { %2345 = vmatprep.mubr.bf16.mxu1 %v1070_v25  ;;  %v1071_v31 = vpack.c.bf16 %v1015_v0, %v3346_v48  ;;  %v1072_v5 = vpack.c.bf16 %v1017_v19, %v1016_v17  ;;  %v1073_v16 = vpack.c.bf16 %v3383_v39, %v3378_v53  ;;  %v1074_v28 = vpack.c.bf16 %v3393_v43, %v3388_v23 }
 0x1ef   :  { %v1075_v61 = vpack.c.bf16 %v3399_v42, %v3396_v40  ;;  %v1076_v25 = vpack.c.bf16 %v3405_v35, %v3402_v51  ;;  %v964_v46 = vmul.f32 0.2, %v3333_v22  ;;  %v3429_v41 = vsel %vm898_vm10, %v834_v36, %v962_v59 }
 0x1f0   :  { %v3431_v45 = vsel %vm899_vm11, %v835_v32, %v963_v62  ;;  %vm900_vm12 = vcmp.gt.f32.partialorder %v3333_v22, 0.0  ;;  %v965_v48 = vmul.f32 0.2, %v3337_v1  ;;  %vm901_vm13 = vcmp.gt.f32.partialorder %v3337_v1, 0.0 }
 0x1f1   :  { %v3437_v0 = vmul.f32 0.2, %v3341_v10  ;;  %v3440_v18 = vmul.f32 0.2, %v3409_v9  ;;  %vm906_vm14 = vcmp.gt.f32.partialorder %v3181_v47, 0.0  ;;  %vm907_vm15 = vcmp.gt.f32.partialorder %v3184_v55, 0.0 }
 0x1f2   :  { %v970_v36 = vmul.f32 0.2, %v3181_v47  ;;  %v971_v32 = vmul.f32 0.2, %v3184_v55  ;;  %vm908_vm0 = vcmp.gt.f32.partialorder %v3187_v3, 0.0  ;;  %v1077_v58 = vpack.c.bf16 %v3431_v45, %v3429_v41 }
 0x1f3   :  { %v3450_v56 = vsel %vm900_vm12, %v3333_v22, %v964_v46  ;;  %vm909_vm1 = vcmp.gt.f32.partialorder %v3190_v11, 0.0  ;;  %v972_v21 = vmul.f32 0.2, %v3187_v3  ;;  %v3455_v26 = vsel %vm901_vm13, %v3337_v1, %v965_v48 }
 0x1f4   :  { %v3458_v54 = vsel %vm906_vm14, %v3181_v47, %v970_v36  ;;  %v3461_v17 = vsel %vm907_vm15, %v3184_v55, %v971_v32  ;;  %v973_v19 = vmul.f32 0.2, %v3190_v11  ;;  %vm910_vm2 = vcmp.gt.f32.partialorder %v3193_v63, 0.0 }
 0x1f5   :  { %2346 = vmatmul.mubr.bf16.gmra.mxu1 %v1071_v31  ;;  %v1081_v22 = vpack.c.bf16 %v3461_v17, %v3458_v54  ;;  %v3467_v53 = vsel %vm908_vm0, %v3187_v3, %v972_v21  ;;  %vm911_vm3 = vcmp.gt.f32.partialorder %v3196_v7, 0.0  ;;  %v974_v47 = vmul.f32 0.2, %v3193_v63 }
 0x1f6   :  { %2349 = vmatprep.mubr.bf16.mxu1 %v1072_v5  ;;  %v3472_v1 = vsel %vm909_vm1, %v3190_v11, %v973_v19  ;;  %v975_v55 = vmul.f32 0.2, %v3196_v7  ;;  %vm912_vm4 = vcmp.gt.f32.partialorder %v3199_v27, 0.0  ;;  %vm913_vm5 = vcmp.gt.f32.partialorder %v3202_v15, 0.0 }
 0x1f7   :  { %v1082_v39 = vpack.c.bf16 %v3472_v1, %v3467_v53  ;;  %v976_v3 = vmul.f32 0.2, %v3199_v27  ;;  %v977_v23 = vmul.f32 0.2, %v3202_v15  ;;  %v3483_v43 = vsel %vm910_vm2, %v3193_v63, %v974_v47 }
 0x1f8   :  { %v3486_v11 = vsel %vm911_vm3, %v3196_v7, %v975_v55  ;;  %vm914_vm6 = vcmp.gt.f32.partialorder %v3205_v44, 0.0  ;;  %vm915_vm7 = vcmp.gt.f32.partialorder %v3208_v60, 0.0  ;;  %v978_v14 = vmul.f32 0.2, %v3205_v44 }
 0x1f9   :  { %v1083_v59 = vpack.c.bf16 %v3486_v11, %v3483_v43  ;;  %v3493_v62 = vsel %vm912_vm4, %v3199_v27, %v976_v3  ;;  %v3496_v13 = vsel %vm913_vm5, %v3202_v15, %v977_v23  ;;  %v979_v7 = vmul.f32 0.2, %v3208_v60 }
 0x1fa   :  { %v1084_v63 = vpack.c.bf16 %v3496_v13, %v3493_v62  ;;  %vm916_vm8 = vcmp.gt.f32.partialorder %v3211_v34, 0.0  ;;  %vm917_vm9 = vcmp.gt.f32.partialorder %v3214_v52, 0.0  ;;  %v3505_v8 = vsel %vm914_vm6, %v3205_v44, %v978_v14 }
 0x1fb   :  { %v980_v27 = vmul.f32 0.2, %v3211_v34  ;;  %v981_v31 = vmul.f32 0.2, %v3214_v52  ;;  %vm918_vm10 = vcmp.gt.f32.partialorder %v3217_v12, 0.0  ;;  %v3511_v15 = vsel %vm915_vm7, %v3208_v60, %v979_v7 }
 0x1fc   :  { %vm919_vm11 = vcmp.gt.f32.partialorder %v3220_v29, 0.0  ;;  %v982_v5 = vmul.f32 0.2, %v3217_v12  ;;  %v983_v46 = vmul.f32 0.2, %v3220_v29  ;;  %v1085_v44 = vpack.c.bf16 %v3511_v15, %v3505_v8 }
 0x1fd   :  { %2350 = vmatmul.mubr.bf16.gmra.mxu1 %v1073_v16  ;;  %v3519_v48 = vsel %vm916_vm8, %v3211_v34, %v980_v27  ;;  %v3522_v36 = vsel %vm917_vm9, %v3214_v52, %v981_v31  ;;  %vm920_vm12 = vcmp.gt.f32.partialorder %v3223_v33, 0.0  ;;  %vm921_vm13 = vcmp.gt.f32.partialorder %v3226_v4, 0.0  ;;  %v5136_v27 = vld [vmem:[#allocation12_spill] sm:$0xff]  ;;  %v5137_v31 = vld [vmem:[#allocation13_spill] sm:$0xff] }
 0x1fe   :  { %2353 = vmatprep.mubr.bf16.mxu1 %v1074_v28  ;;  %v1086_v60 = vpack.c.bf16 %v3522_v36, %v3519_v48  ;;  %v3528_v16 = vsel %vm918_vm10, %v3217_v12, %v982_v5  ;;  %v3531_v32 = vsel %vm919_vm11, %v3220_v29, %v983_v46  ;;  %v984_v28 = vmul.f32 0.2, %v3223_v33 }
 0x1ff   :  { %v1087_v34 = vpack.c.bf16 %v3531_v32, %v3528_v16  ;;  %v985_v52 = vmul.f32 0.2, %v3226_v4  ;;  %vm922_vm14 = vcmp.gt.f32.partialorder %v3229_v37, 0.0  ;;  %vm923_vm15 = vcmp.gt.f32.partialorder %v3232_v49, 0.0 }
 0x200   :  { %v986_v21 = vmul.f32 0.2, %v3229_v37  ;;  %v987_v12 = vmul.f32 0.2, %v3232_v49  ;;  %vm924_vm0 = vcmp.gt.f32.partialorder %v3235_v6, 0.0  ;;  %v3544_v29 = vsel %vm920_vm12, %v3223_v33, %v984_v28 }
 0x201   :  { %v3547_v19 = vsel %vm921_vm13, %v3226_v4, %v985_v52  ;;  %vm925_vm1 = vcmp.gt.f32.partialorder %v3238_v50, 0.0  ;;  %v988_v47 = vmul.f32 0.2, %v3235_v6  ;;  %v989_v14 = vmul.f32 0.2, %v3238_v50  ;;  %v5138_v52 = vld [vmem:[#allocation15_spill] sm:$0xff] }
 0x202   :  { %v1088_v55 = vpack.c.bf16 %v3547_v19, %v3544_v29  ;;  %v3554_v3 = vsel %vm922_vm14, %v3229_v37, %v986_v21  ;;  %v3557_v23 = vsel %vm923_vm15, %v3232_v49, %v987_v12  ;;  %vm926_vm2 = vcmp.gt.f32.partialorder %v3241_v24, 0.0  ;;  %v5139_v21 = vld [vmem:[#allocation37_spill] sm:$0xff]  ;;  %v5140_v12 = vld [vmem:[#allocation38_spill] sm:$0xff] }
 0x203   :  { %v1089_v33 = vpack.c.bf16 %v3557_v23, %v3554_v3  ;;  %v3563_v4 = vsel %vm924_vm0, %v3235_v6, %v988_v47  ;;  %vm927_vm3 = vcmp.gt.f32.partialorder %v3244_v57, 0.0  ;;  %vm902_vm4 = vcmp.gt.f32.partialorder %v3341_v10, 0.0 }
 0x204   :  { %vm903_vm5 = vcmp.gt.f32.partialorder %v3409_v9, 0.0  ;;  %v1053_v37 = vsel %vm925_vm1, %v3238_v50, %v989_v14  ;;  %v990_v49 = vmul.f32 0.2, %v3241_v24  ;;  %v991_v7 = vmul.f32 0.2, %v3244_v57  ;;  %v5141_v14 = vld [vmem:[#allocation17_spill] sm:$0xff] }
 0x205   :  { %2354 = vmatmul.mubr.bf16.gmra.mxu1 %v1075_v61  ;;  %vm928_vm6 = vcmp.gt.f32.partialorder %v3247_v30, 0.0  ;;  %v1090_v6 = vpack.c.bf16 %v1053_v37, %v3563_v4  ;;  %vm929_vm7 = vcmp.gt.f32.partialorder %v3250_v20, 0.0  ;;  %v992_v40 = vmul.f32 0.2, %v3247_v30 }
 0x206   :  { %2357 = vmatprep.mubr.bf16.mxu1 %v1076_v25  ;;  %v993_v42 = vmul.f32 0.2, %v3250_v20  ;;  %v1054_v50 = vsel %vm926_vm2, %v3241_v24, %v990_v49  ;;  %v1055_v61 = vsel %vm927_vm3, %v3244_v57, %v991_v7  ;;  %vm930_vm8 = vcmp.gt.f32.partialorder %v5136_v27, 0.0 }
 0x207   :  { %vm931_vm9 = vcmp.gt.f32.partialorder %v5137_v31, 0.0  ;;  %v1091_v5 = vpack.c.bf16 %v1055_v61, %v1054_v50  ;;  %v1056_v51 = vsel %vm928_vm6, %v3247_v30, %v992_v40  ;;  %v994_v25 = vmul.f32 0.2, %v5136_v27 }
 0x208   :  { %v1057_v35 = vsel %vm929_vm7, %v3250_v20, %v993_v42  ;;  %v995_v28 = vmul.f32 0.2, %v5137_v31  ;;  %vm932_vm10 = vcmp.gt.f32.partialorder %v5138_v52, 0.0  ;;  %vm933_vm11 = vcmp.gt.f32.partialorder %v5139_v21, 0.0  ;;  %v5142_v20 = vld [vmem:[#allocation14_spill] sm:$0xff] }
 0x209   :  { %v1092_v46 = vpack.c.bf16 %v1057_v35, %v1056_v51  ;;  %v1058_v24 = vsel %vm930_vm8, %v5136_v27, %v994_v25  ;;  %v996_v57 = vmul.f32 0.2, %v5138_v52  ;;  %v1061_v47 = vsel %vm933_vm11, %v5139_v21, %v5140_v12 }
 0x20a   :  { %vm934_vm12 = vcmp.gt.f32.partialorder %v5141_v14, 0.0  ;;  %v1059_v30 = vsel %vm931_vm9, %v5137_v31, %v995_v28  ;;  %vm935_vm13 = vcmp.gt.f32.partialorder %v5142_v20, 0.0  ;;  %v998_v4 = vmul.f32 0.2, %v5141_v14 }
 0x20b   :  { %v999_v37 = vmul.f32 0.2, %v5142_v20  ;;  %v1078_v49 = vpack.c.bf16 %v3455_v26, %v3450_v56  ;;  %v968_v7 = vmul.f32 0.2, %v3413_v2  ;;  %v1093_v40 = vpack.c.bf16 %v1059_v30, %v1058_v24 }
 0x20c   :  { %v1060_v42 = vsel %vm932_vm10, %v5138_v52, %v996_v57  ;;  %v969_v50 = vmul.f32 0.2, %v3417_v38  ;;  %v1062_v27 = vsel %vm934_vm12, %v5141_v14, %v998_v4  ;;  %vm904_vm14 = vcmp.gt.f32.partialorder %v3413_v2, 0.0 }
 0x20d   :  { %2358 = vmatmul.mubr.bf16.gmra.mxu1 %v1077_v58  ;;  %v1094_v61 = vpack.c.bf16 %v1061_v47, %v1060_v42  ;;  %v1063_v31 = vsel %vm935_vm13, %v5142_v20, %v999_v37  ;;  %vm905_vm15 = vcmp.gt.f32.partialorder %v3417_v38, 0.0  ;;  %v1030_v26 = vsel %vm902_vm4, %v3341_v10, %v3437_v0 }
 0x20e   :  { %2361 = vmatprep.mubr.bf16.mxu1 %v1078_v49  ;;  %v1095_v56 = vpack.c.bf16 %v1063_v31, %v1062_v27  ;;  %v1031_v41 = vsel %vm903_vm5, %v3409_v9, %v3440_v18  ;;  %v1032_v45 = vsel %vm904_vm14, %v3413_v2, %v968_v7  ;;  %v1033_v58 = vsel %vm905_vm15, %v3417_v38, %v969_v50 }
 0x20f   :  { %v1079_v51 = vpack.c.bf16 %v1031_v41, %v1030_v26  ;;  %v1080_v35 = vpack.c.bf16 %v1033_v58, %v1032_v45 }
 0x215   :  { %2362 = vmatmul.mubr.bf16.gmra.mxu1 %v1079_v51 }
 0x216   :  { %2365 = vmatprep.mubr.bf16.mxu1 %v1080_v35 }
 0x21d   :  { %2366 = vmatmul.mubr.bf16.gmra.mxu1 %v1081_v22 }
 0x21e   :  { %2369 = vmatprep.mubr.bf16.mxu1 %v1082_v39 }
 0x225   :  { %2370 = vmatmul.mubr.bf16.gmra.mxu1 %v1083_v59 }
 0x226   :  { %2373 = vmatprep.mubr.bf16.mxu1 %v1084_v63 }
 0x22d   :  { %2374 = vmatmul.mubr.bf16.gmra.mxu1 %v1085_v44 }
 0x22e   :  { %2377 = vmatprep.mubr.bf16.mxu1 %v1086_v60 }
 0x235   :  { %2378 = vmatmul.mubr.bf16.gmra.mxu1 %v1087_v34 }
 0x236   :  { %2381 = vmatprep.mubr.bf16.mxu1 %v1088_v55 }
 0x23d   :  { %2382 = vmatmul.mubr.bf16.gmra.mxu1 %v1089_v33 }
 0x23e   :  { %2385 = vmatprep.mubr.bf16.mxu1 %v1090_v6 }
 0x245   :  { %2386 = vmatmul.mubr.bf16.gmra.mxu1 %v1091_v5 }
 0x246   :  { %2389 = vmatprep.mubr.bf16.mxu1 %v1092_v46 }
 0x24d   :  { %2390 = vmatmul.mubr.bf16.gmra.mxu1 %v1093_v40 }
 0x24e   :  { %2393 = vmatprep.mubr.bf16.mxu1 %v1094_v61 }
 0x255   :  { %2394 = vmatmul.mubr.bf16.gmra.mxu1 %v1095_v56 }
 0x29d   :  { %v3651_v10 = vpop.f32.mrf.mxu1 }
 0x29e   :  { %5143 = vst [vmem:[#allocation16_spill] sm:$0xff] %v3651_v10  ;;  %v1521_v22 = vmul.f32 %v3651_v10, %v3651_v10 }
 0x29f   :  { %v3653_v9 = vpop.f32.mrf.mxu1 }
 0x2a0   :  { %5144 = vst [vmem:[#allocation19_spill] sm:$0xff] %v3653_v9  ;;  %v1519_v0 = vmul.f32 %v3653_v9, %v3653_v9 }
 0x2a1   :  { %v3655_v2 = vpop.f32.mrf.mxu1 }
 0x2a2   :  { %5145 = vst [vmem:[#allocation21_spill] sm:$0xff] %v3655_v2  ;;  %v1522_v43 = vmul.f32 %v3655_v2, %v3655_v2 }
 0x2a3   :  { %v3657_v38 = vpop.f32.mrf.mxu1 }
 0x2a4   :  { %5146 = vst [vmem:[#allocation18_spill] sm:$0xff] %v3657_v38  ;;  %v1449_v18 = vadd.f32 %v3657_v38, %v3653_v9  ;;  %v1520_v54 = vmul.f32 %v3657_v38, %v3657_v38 }
 0x2a5   :  { %v3665_v17 = vpop.f32.mrf.mxu1 }
 0x2a6   :  { %v1450_v53 = vadd.f32 %v3651_v10, %v1449_v18  ;;  %v1583_v1 = vadd.f32 %v1520_v54, %v1519_v0  ;;  %v1525_v16 = vmul.f32 %v3665_v17, %v3665_v17 }
 0x2a7   :  { %v3670_v39 = vpop.f32.mrf.mxu1 }
 0x2a8   :  { %5147 = vst [vmem:[#allocation20_spill] sm:$0xff] %v3670_v39  ;;  %v1584_v11 = vadd.f32 %v1583_v1, %v1521_v22  ;;  %v1451_v59 = vadd.f32 %v3655_v2, %v1450_v53  ;;  %v1523_v63 = vmul.f32 %v3670_v39, %v3670_v39 }
 0x2a9   :  { %v3675_v62 = vpop.f32.mrf.mxu1 }
 0x2aa   :  { %v1452_v13 = vadd.f32 %v1451_v59, %v3670_v39  ;;  %v1585_v8 = vadd.f32 %v1584_v11, %v1522_v43  ;;  %v1526_v19 = vmul.f32 %v3675_v62, %v3675_v62 }
 0x2ab   :  { %v3680_v15 = vpop.f32.mrf.mxu1 }
 0x2ac   :  { %5148 = vst [vmem:[#allocation23_spill] sm:$0xff] %v3680_v15  ;;  %v1586_v44 = vadd.f32 %v1585_v8, %v1523_v63  ;;  %v1453_v48 = vadd.f32 %v1452_v13, %v3680_v15  ;;  %v1524_v36 = vmul.f32 %v3680_v15, %v3680_v15 }
 0x2ad   :  { %v3685_v60 = vpop.f32.mrf.mxu1 }
 0x2ae   :  { %v1454_v32 = vadd.f32 %v3665_v17, %v1453_v48  ;;  %v1587_v34 = vadd.f32 %v1586_v44, %v1524_v36  ;;  %v1529_v24 = vmul.f32 %v3685_v60, %v3685_v60 }
 0x2af   :  { %v3690_v29 = vpop.f32.mrf.mxu1 }
 0x2b0   :  { %v1588_v55 = vadd.f32 %v1587_v34, %v1525_v16  ;;  %v1455_v3 = vadd.f32 %v3675_v62, %v1454_v32  ;;  %v1527_v6 = vmul.f32 %v3690_v29, %v3690_v29 }
 0x2b1   :  { %v3695_v23 = vpop.f32.mrf.mxu1 }
 0x2b2   :  { %v1456_v33 = vadd.f32 %v1455_v3, %v3690_v29  ;;  %v1589_v5 = vadd.f32 %v1588_v55, %v1526_v19  ;;  %v1530_v14 = vmul.f32 %v3695_v23, %v3695_v23 }
 0x2b3   :  { %v3700_v25 = vpop.f32.mrf.mxu1 }
 0x2b4   :  { %v1590_v46 = vadd.f32 %v1589_v5, %v1527_v6  ;;  %v1457_v28 = vadd.f32 %v1456_v33, %v3700_v25  ;;  %v1528_v52 = vmul.f32 %v3700_v25, %v3700_v25 }
 0x2b5   :  { %v3705_v21 = vpop.f32.mrf.mxu1 }
 0x2b6   :  { %v1458_v57 = vadd.f32 %v3685_v60, %v1457_v28  ;;  %v1591_v12 = vadd.f32 %v1590_v46, %v1528_v52  ;;  %v1533_v31 = vmul.f32 %v3705_v21, %v3705_v21 }
 0x2b7   :  { %v3710_v47 = vpop.f32.mrf.mxu1 }
 0x2b8   :  { %v1592_v30 = vadd.f32 %v1591_v12, %v1529_v24  ;;  %v1459_v20 = vadd.f32 %v3695_v23, %v1458_v57  ;;  %v1531_v49 = vmul.f32 %v3710_v47, %v3710_v47 }
 0x2b9   :  { %v3715_v4 = vpop.f32.mrf.mxu1 }
 0x2ba   :  { %v1460_v37 = vadd.f32 %v1459_v20, %v3710_v47  ;;  %v1593_v7 = vadd.f32 %v1592_v30, %v1530_v14  ;;  %v1534_v45 = vmul.f32 %v3715_v4, %v3715_v4 }
 0x2bb   :  { %v3720_v40 = vpop.f32.mrf.mxu1 }
 0x2bc   :  { %v1594_v42 = vadd.f32 %v1593_v7, %v1531_v49  ;;  %v1461_v50 = vadd.f32 %v1460_v37, %v3720_v40  ;;  %v1532_v61 = vmul.f32 %v3720_v40, %v3720_v40 }
 0x2bd   :  { %v3725_v27 = vpop.f32.mrf.mxu1 }
 0x2be   :  { %v1462_v56 = vadd.f32 %v3705_v21, %v1461_v50  ;;  %v1595_v26 = vadd.f32 %v1594_v42, %v1532_v61  ;;  %v1537_v59 = vmul.f32 %v3725_v27, %v3725_v27 }
 0x2bf   :  { %v3730_v41 = vpop.f32.mrf.mxu1 }
 0x2c0   :  { %v1596_v58 = vadd.f32 %v1595_v26, %v1533_v31  ;;  %v1463_v51 = vadd.f32 %v3715_v4, %v1462_v56  ;;  %v1535_v18 = vmul.f32 %v3730_v41, %v3730_v41 }
 0x2c1   :  { %v3735_v35 = vpop.f32.mrf.mxu1 }
 0x2c2   :  { %v1464_v0 = vadd.f32 %v1463_v51, %v3730_v41  ;;  %v1597_v54 = vadd.f32 %v1596_v58, %v1534_v45  ;;  %v1538_v44 = vmul.f32 %v3735_v35, %v3735_v35 }
 0x2c3   :  { %v3740_v22 = vpop.f32.mrf.mxu1 }
 0x2c4   :  { %v1598_v53 = vadd.f32 %v1597_v54, %v1535_v18  ;;  %v1465_v1 = vadd.f32 %v1464_v0, %v3740_v22  ;;  %v1536_v43 = vmul.f32 %v3740_v22, %v3740_v22 }
 0x2c5   :  { %v3745_v11 = vpop.f32.mrf.mxu1 }
 0x2c6   :  { %v1466_v13 = vadd.f32 %v3725_v27, %v1465_v1  ;;  %v1599_v63 = vadd.f32 %v1598_v53, %v1536_v43  ;;  %v1541_v46 = vmul.f32 %v3745_v11, %v3745_v11 }
 0x2c7   :  { %v3750_v8 = vpop.f32.mrf.mxu1 }
 0x2c8   :  { %v1600_v48 = vadd.f32 %v1599_v63, %v1537_v59  ;;  %v1467_v36 = vadd.f32 %v3735_v35, %v1466_v13  ;;  %v1539_v34 = vmul.f32 %v3750_v8, %v3750_v8 }
 0x2c9   :  { %v3755_v16 = vpop.f32.mrf.mxu1 }
 0x2ca   :  { %v1468_v32 = vadd.f32 %v1467_v36, %v3750_v8  ;;  %v1601_v19 = vadd.f32 %v1600_v48, %v1538_v44  ;;  %v1542_v57 = vmul.f32 %v3755_v16, %v3755_v16 }
 0x2cb   :  { %v3760_v55 = vpop.f32.mrf.mxu1 }
 0x2cc   :  { %v1602_v3 = vadd.f32 %v1601_v19, %v1539_v34  ;;  %v1469_v33 = vadd.f32 %v1468_v32, %v3760_v55  ;;  %v1540_v6 = vmul.f32 %v3760_v55, %v3760_v55 }
 0x2cd   :  { %v3765_v5 = vpop.f32.mrf.mxu1 }
 0x2ce   :  { %v1470_v28 = vadd.f32 %v3745_v11, %v1469_v33  ;;  %v1603_v52 = vadd.f32 %v1602_v3, %v1540_v6  ;;  %v1545_v56 = vmul.f32 %v3765_v5, %v3765_v5 }
 0x2cf   :  { %v3770_v24 = vpop.f32.mrf.mxu1 }
 0x2d0   :  { %v1604_v12 = vadd.f32 %v1603_v52, %v1541_v46  ;;  %v1471_v14 = vadd.f32 %v3755_v16, %v1470_v28  ;;  %v1543_v37 = vmul.f32 %v3770_v24, %v3770_v24 }
 0x2d1   :  { %v3775_v30 = vpop.f32.mrf.mxu1 }
 0x2d2   :  { %v1472_v20 = vadd.f32 %v1471_v14, %v3770_v24  ;;  %v1605_v49 = vadd.f32 %v1604_v12, %v1542_v57  ;;  %v1546_v51 = vmul.f32 %v3775_v30, %v3775_v30 }
 0x2d3   :  { %v3780_v7 = vpop.f32.mrf.mxu1 }
 0x2d4   :  { %v1606_v42 = vadd.f32 %v1605_v49, %v1543_v37  ;;  %v1473_v50 = vadd.f32 %v1472_v20, %v3780_v7  ;;  %v1544_v61 = vmul.f32 %v3780_v7, %v3780_v7 }
 0x2d5   :  { %v3785_v31 = vpop.f32.mrf.mxu1 }
 0x2d6   :  { %v1474_v26 = vadd.f32 %v3765_v5, %v1473_v50  ;;  %v1607_v45 = vadd.f32 %v1606_v42, %v1544_v61  ;;  %v1549_v36 = vmul.f32 %v3785_v31, %v3785_v31 }
 0x2d7   :  { %v3790_v58 = vpop.f32.mrf.mxu1 }
 0x2d8   :  { %v1608_v0 = vadd.f32 %v1607_v45, %v1545_v56  ;;  %v1475_v18 = vadd.f32 %v3775_v30, %v1474_v26  ;;  %v1547_v1 = vmul.f32 %v3790_v58, %v3790_v58 }
 0x2d9   :  { %v3795_v54 = vpop.f32.mrf.mxu1 }
 0x2da   :  { %v1476_v53 = vadd.f32 %v1475_v18, %v3790_v58  ;;  %v1609_v43 = vadd.f32 %v1608_v0, %v1546_v51  ;;  %v1550_v3 = vmul.f32 %v3795_v54, %v3795_v54 }
 0x2db   :  { %v3800_v59 = vpop.f32.mrf.mxu1 }
 0x2dc   :  { %v1610_v13 = vadd.f32 %v1609_v43, %v1547_v1  ;;  %v1477_v63 = vadd.f32 %v1476_v53, %v3800_v59  ;;  %v1548_v44 = vmul.f32 %v3800_v59, %v3800_v59 }
 0x2dd   :  { %v3805_v48 = vpop.f32.mrf.mxu1 }
 0x2de   :  { %v1478_v32 = vadd.f32 %v3785_v31, %v1477_v63  ;;  %v1611_v34 = vadd.f32 %v1610_v13, %v1548_v44  ;;  %v1553_v42 = vmul.f32 %v3805_v48, %v3805_v48 }
 0x2df   :  { %v3810_v19 = vpop.f32.mrf.mxu1 }
 0x2e0   :  { %v1612_v33 = vadd.f32 %v1611_v34, %v1549_v36  ;;  %v1479_v6 = vadd.f32 %v3795_v54, %v1478_v32  ;;  %v1551_v52 = vmul.f32 %v3810_v19, %v3810_v19 }
 0x2e1   :  { %v3815_v46 = vpop.f32.mrf.mxu1 }
 0x2e2   :  { %v1480_v28 = vadd.f32 %v1479_v6, %v3810_v19  ;;  %v1613_v57 = vadd.f32 %v1612_v33, %v1550_v3  ;;  %v1554_v26 = vmul.f32 %v3815_v46, %v3815_v46 }
 0x2e3   :  { %v3820_v12 = vpop.f32.mrf.mxu1 }
 0x2e4   :  { %v1614_v14 = vadd.f32 %v1613_v57, %v1551_v52  ;;  %v1481_v20 = vadd.f32 %v1480_v28, %v3820_v12  ;;  %v1552_v37 = vmul.f32 %v3820_v12, %v3820_v12 }
 0x2e5   :  { %v3825_v49 = vpop.f32.mrf.mxu1 }
 0x2e6   :  { %v1482_v50 = vadd.f32 %v3805_v48, %v1481_v20  ;;  %v1615_v61 = vadd.f32 %v1614_v14, %v1552_v37  ;;  %v1557_v32 = vmul.f32 %v3825_v49, %v3825_v49 }
 0x2e7   :  { %v3830_v56 = vpop.f32.mrf.mxu1 }
 0x2e8   :  { %v1616_v45 = vadd.f32 %v1615_v61, %v1553_v42  ;;  %v1483_v51 = vadd.f32 %v3815_v46, %v1482_v50  ;;  %v1555_v53 = vmul.f32 %v3830_v56, %v3830_v56 }
 0x2e9   :  { %v3835_v0 = vpop.f32.mrf.mxu1 }
 0x2ea   :  { %v1484_v18 = vadd.f32 %v1483_v51, %v3830_v56  ;;  %v1617_v1 = vadd.f32 %v1616_v45, %v1554_v26  ;;  %v1558_v6 = vmul.f32 %v3835_v0, %v3835_v0 }
 0x2eb   :  { %v3840_v43 = vpop.f32.mrf.mxu1 }
 0x2ec   :  { %v1618_v13 = vadd.f32 %v1617_v1, %v1555_v53  ;;  %v1485_v63 = vadd.f32 %v1484_v18, %v3840_v43  ;;  %v1556_v44 = vmul.f32 %v3840_v43, %v3840_v43 }
 0x2ed   :  { %v3845_v36 = vpop.f32.mrf.mxu1 }
 0x2ee   :  { %v1486_v34 = vadd.f32 %v3825_v49, %v1485_v63  ;;  %v1619_v3 = vadd.f32 %v1618_v13, %v1556_v44  ;;  %v1561_v51 = vmul.f32 %v3845_v36, %v3845_v36 }
 0x2ef   :  { %v3850_v33 = vpop.f32.mrf.mxu1 }
 0x2f0   :  { %v1620_v28 = vadd.f32 %v1619_v3, %v1557_v32  ;;  %v1487_v52 = vadd.f32 %v3835_v0, %v1486_v34  ;;  %v1559_v20 = vmul.f32 %v3850_v33, %v3850_v33 }
 0x2f1   :  { %v3855_v57 = vpop.f32.mrf.mxu1 }
 0x2f2   :  { %v1488_v14 = vadd.f32 %v1487_v52, %v3850_v33  ;;  %v1621_v37 = vadd.f32 %v1620_v28, %v1558_v6  ;;  %v1562_v13 = vmul.f32 %v3855_v57, %v3855_v57 }
 0x2f3   :  { %v3860_v42 = vpop.f32.mrf.mxu1 }
 0x2f4   :  { %v1622_v50 = vadd.f32 %v1621_v37, %v1559_v20  ;;  %v1489_v61 = vadd.f32 %v1488_v14, %v3860_v42  ;;  %v1560_v26 = vmul.f32 %v3860_v42, %v3860_v42 }
 0x2f5   :  { %v3865_v45 = vpop.f32.mrf.mxu1 }
 0x2f6   :  { %5149 = vst [vmem:[#allocation25_spill] sm:$0xff] %v3865_v45  ;;  %v1490_v18 = vadd.f32 %v3845_v36, %v1489_v61  ;;  %v1623_v53 = vadd.f32 %v1622_v50, %v1560_v26  ;;  %v1565_v50 = vmul.f32 %v3865_v45, %v3865_v45 }
 0x2f7   :  { %v3870_v1 = vpop.f32.mrf.mxu1 }
 0x2f8   :  { %5150 = vst [vmem:[#allocation22_spill] sm:$0xff] %v3870_v1  ;;  %v1624_v63 = vadd.f32 %v1623_v53, %v1561_v51  ;;  %v1491_v44 = vadd.f32 %v3855_v57, %v1490_v18  ;;  %v1563_v3 = vmul.f32 %v3870_v1, %v3870_v1 }
 0x2f9   :  { %v3875_v32 = vpop.f32.mrf.mxu1 }
 0x2fa   :  { %5151 = vst [vmem:[#allocation24_spill] sm:$0xff] %v3875_v32  ;;  %v1492_v34 = vadd.f32 %v1491_v44, %v3870_v1  ;;  %v1625_v6 = vadd.f32 %v1624_v63, %v1562_v13  ;;  %v1566_v18 = vmul.f32 %v3875_v32, %v3875_v32 }
 0x2fb   :  { %v3880_v28 = vpop.f32.mrf.mxu1 }
 0x2fc   :  { %5152 = vst [vmem:[#allocation27_spill] sm:$0xff] %v3880_v28  ;;  %v1626_v52 = vadd.f32 %v1625_v6, %v1563_v3  ;;  %v1493_v14 = vadd.f32 %v1492_v34, %v3880_v28  ;;  %v1564_v20 = vmul.f32 %v3880_v28, %v3880_v28 }
 0x2fd   :  { %v3885_v37 = vpop.f32.mrf.mxu1 }
 0x2fe   :  { %5153 = vst [vmem:[#allocation29_spill] sm:$0xff] %v3885_v37  ;;  %v1494_v61 = vadd.f32 %v3865_v45, %v1493_v14  ;;  %v1627_v26 = vadd.f32 %v1626_v52, %v1564_v20 }
 0x2ff   :  { %v3890_v51 = vpop.f32.mrf.mxu1 }
 0x300   :  { %5154 = vst [vmem:[#allocation26_spill] sm:$0xff] %v3890_v51  ;;  %v1628_v53 = vadd.f32 %v1627_v26, %v1565_v50  ;;  %v1495_v13 = vadd.f32 %v3875_v32, %v1494_v61  ;;  %v1567_v34 = vmul.f32 %v3890_v51, %v3890_v51  ;;  %v1569_v50 = vmul.f32 %v3885_v37, %v3885_v37 }
 0x301   :  { %v3895_v63 = vpop.f32.mrf.mxu1 }
 0x302   :  { %5155 = vst [vmem:[#allocation28_spill] sm:$0xff] %v3895_v63  ;;  %v1496_v44 = vadd.f32 %v1495_v13, %v3890_v51  ;;  %v1629_v3 = vadd.f32 %v1628_v53, %v1566_v18  ;;  %v1570_v18 = vmul.f32 %v3895_v63, %v3895_v63 }
 0x303   :  { %v3900_v6 = vpop.f32.mrf.mxu1 }
 0x304   :  { %5156 = vst [vmem:[#allocation31_spill] sm:$0xff] %v3900_v6  ;;  %v1630_v14 = vadd.f32 %v1629_v3, %v1567_v34  ;;  %v1497_v52 = vadd.f32 %v1496_v44, %v3900_v6  ;;  %v1568_v20 = vmul.f32 %v3900_v6, %v3900_v6 }
 0x305   :  { %v3905_v15 = vpop.f32.mrf.mxu1 }
 0x306   :  { %5157 = vst [vmem:[#allocation33_spill] sm:$0xff] %v3905_v15  ;;  %v1498_v61 = vadd.f32 %v3885_v37, %v1497_v52  ;;  %v1631_v26 = vadd.f32 %v1630_v14, %v1568_v20 }
 0x307   :  { %v3910_v13 = vpop.f32.mrf.mxu1 }
 0x308   :  { %5158 = vst [vmem:[#allocation30_spill] sm:$0xff] %v3910_v13  ;;  %v1632_v53 = vadd.f32 %v1631_v26, %v1569_v50  ;;  %v1499_v34 = vadd.f32 %v3895_v63, %v1498_v61  ;;  %v1571_v39 = vmul.f32 %v3910_v13, %v3910_v13  ;;  %v1573_v50 = vmul.f32 %v3905_v15, %v3905_v15 }
 0x309   :  { %v3915_v44 = vpop.f32.mrf.mxu1 }
 0x30a   :  { %5159 = vst [vmem:[#allocation32_spill] sm:$0xff] %v3915_v44  ;;  %v1500_v3 = vadd.f32 %v1499_v34, %v3910_v13  ;;  %v1633_v2 = vadd.f32 %v1632_v53, %v1570_v18  ;;  %v1574_v18 = vmul.f32 %v3915_v44, %v3915_v44 }
 0x30b   :  { %v3920_v10 = vpop.f32.mrf.mxu1 }
 0x30c   :  { %5160 = vst [vmem:[#allocation35_spill] sm:$0xff] %v3920_v10  ;;  %v1634_v52 = vadd.f32 %v1633_v2, %v1571_v39  ;;  %v1501_v14 = vadd.f32 %v1500_v3, %v3920_v10  ;;  %v1572_v20 = vmul.f32 %v3920_v10, %v3920_v10 }
 0x30d   :  { %v3925_v38 = vpop.f32.mrf.mxu1 }
 0x30e   :  { %5161 = vst [vmem:[#allocation34_spill] sm:$0xff] %v3925_v38  ;;  %v1502_v61 = vadd.f32 %v3905_v15, %v1501_v14  ;;  %v1635_v26 = vadd.f32 %v1634_v52, %v1572_v20 }
 0x30f   :  { %v3930_v34 = vpop.f32.mrf.mxu1 }
 0x310   :  { %5162 = vst [vmem:[#allocation39_spill] sm:$0xff] %v3930_v34  ;;  %v1636_v53 = vadd.f32 %v1635_v26, %v1573_v50  ;;  %v1503_v2 = vadd.f32 %v3915_v44, %v1502_v61  ;;  %v1575_v9 = vmul.f32 %v3930_v34, %v3930_v34  ;;  %v1577_v50 = vmul.f32 %v3925_v38, %v3925_v38 }
 0x311   :  { %v3935_v39 = vpop.f32.mrf.mxu1 }
 0x312   :  { %5163 = vst [vmem:[#allocation40_spill] sm:$0xff] %v3935_v39  ;;  %v1504_v3 = vadd.f32 %v1503_v2, %v3930_v34  ;;  %v1637_v10 = vadd.f32 %v1636_v53, %v1574_v18  ;;  %v1578_v18 = vmul.f32 %v3935_v39, %v3935_v39 }
 0x313   :  { %v3940_v13 = vpop.f32.mrf.mxu1 }
 0x314   :  { %5164 = vst [vmem:[#allocation41_spill] sm:$0xff] %v3940_v13  ;;  %v1638_v14 = vadd.f32 %v1637_v10, %v1575_v9  ;;  %v1505_v52 = vadd.f32 %v1504_v3, %v3940_v13  ;;  %v1576_v20 = vmul.f32 %v3940_v13, %v3940_v13 }
 0x315   :  { %v3945_v15 = vpop.f32.mrf.mxu1 }
 0x316   :  { %5165 = vst [vmem:[#allocation42_spill] sm:$0xff] %v3945_v15  ;;  %v1506_v61 = vadd.f32 %v3925_v38, %v1505_v52  ;;  %v1639_v26 = vadd.f32 %v1638_v14, %v1576_v20  ;;  %v1581_v20 = vmul.f32 %v3945_v15, %v3945_v15 }
 0x317   :  { %v3950_v2 = vpop.f32.mrf.mxu1 }
 0x318   :  { %5166 = vst [vmem:[#allocation43_spill] sm:$0xff] %v3950_v2  ;;  %v1640_v53 = vadd.f32 %v1639_v26, %v1577_v50  ;;  %v1507_v10 = vadd.f32 %v3935_v39, %v1506_v61  ;;  %v1579_v13 = vmul.f32 %v3950_v2, %v3950_v2 }
 0x319   :  { %v3955_v9 = vpop.f32.mrf.mxu1 }
 0x31a   :  { %v1508_v3 = vadd.f32 %v1507_v10, %v3950_v2  ;;  %v1641_v34 = vadd.f32 %v1640_v53, %v1578_v18  ;;  %v1582_v61 = vmul.f32 %v3955_v9, %v3955_v9 }
 0x31b   :  { %v1437_v44 = vpop.f32.mrf.mxu1 }
 0x31c   :  { %v1642_v63 = vadd.f32 %v1641_v34, %v1579_v13  ;;  %v1509_v52 = vadd.f32 %v1508_v3, %v1437_v44  ;;  %v1580_v14 = vmul.f32 %v1437_v44, %v1437_v44 }
 0x31e   :  { %v1510_v38 = vadd.f32 %v3945_v15, %v1509_v52  ;;  %v1643_v50 = vadd.f32 %v1642_v63, %v1580_v14 }
 0x320   :  { %v1511_v26 = vadd.f32 %v3955_v9, %v1510_v38  ;;  %v1644_v10 = vadd.f32 %v1643_v50, %v1581_v20  ;;  %v5167_v50 = vld [vmem:[#allocation36_spill] sm:$0xff] }
 0x322   :  { %v1512_v39 = vrot.slane %v1511_v26, 4  ;;  %v1645_v37 = vadd.f32 %v1644_v10, %v1582_v61 }
 0x324   :  { %v1513_v2 = vadd.f32 %v1512_v39, %v1511_v26  ;;  %v1646_v18 = vrot.slane %v1645_v37, 4  ;;  %v1656_v39 = vld [vmem:[%s4975_s5] sm:$0x1]  ;;  %s2582_s5 = smov [#allocation8]  }
 0x326   :  { %v1514_v53 = vrot.slane %v1513_v2, 2  ;;  %v1647_v13 = vadd.f32 %v1646_v18, %v1645_v37  ;;  %v2425_v18 = vld [vmem:[#allocation2 + $0x1e8] sm:$0xff] }
 0x328   :  { %v1515_v34 = vadd.f32 %v1514_v53, %v1513_v2  ;;  %v1648_v3 = vrot.slane %v1647_v13, 2  ;;  %v1660_v2 = vld [vmem:[%s4976_s6] sm:$0x1]  ;;  %s2128_s6 = sshll.u32 %s2582_s5, 4  ;;  %s2129_s6 = int_to_ptr.vmem [resolvable:$true] %s2128_s6 }
 0x329   :  { %s2549_s23 = scalar_lea.vmem %s2129_s6, 8192  ;;  %p2554_p2 = scmp.lt.s32.totalorder %s2129_s6, %s2129_s6 }
 0x32a   :  { %v1516_v6 = vrot.slane %v1515_v34, 1  ;;  %v1649_v51 = vadd.f32 %v1648_v3, %v1647_v13  ;;  %p2550_p1 = scmp.ne.s32.totalorder %s2129_s6, %s2549_s23  ;;  %p2555_p3 = scmp.lt.s32.totalorder %s2549_s23, %s2549_s23 }
 0x32c   :  { %v1517_v32 = vadd.f32 %v1516_v6, %v1515_v34  ;;  %v1650_v45 = vrot.slane %v1649_v51, 1  ;;  %p2556_p4 = por %p2555_p3, %p2554_p2 }
 0x32e   :  { %v1518_v52 = vmul.f32 0.001953125, %v1517_v32  ;;  %v1651_v63 = vadd.f32 %v1650_v45, %v1649_v51  ;;  %p2557_p5 = pnand %p2556_p4, %p2550_p1 }
 0x330   :  { %v1652_v14 = vmul.f32 0.001953125, %v1651_v63  ;;  %v1653_v15 = vmul.f32 %v1518_v52, %v1518_v52  ;;  %v5170_v63 = vld [vmem:[#allocation22_spill] sm:$0xff] }
 0x332   :  { %v1654_v28 = vsub.f32 %v1652_v14, %v1653_v15  ;;  %v5171_v14 = vld [vmem:[#allocation27_spill] sm:$0xff] }
 0x334   :  { %v1655_v1 = vmax.f32 %v1654_v28, 0.0 }
 0x336   :  { %v1657_v38 = vadd.f32 1e-05, %v1655_v1 }
 0x338   :  { %2423 = vrsqrt.f32 %v1657_v38 }
 0x345   :  { %v2424_v20 = vpop.eup %2423 }
 0x346   :  { %v1659_v37 = vmul.f32 %v2424_v20, %v1656_v39  ;;  %v5174_v20 = vld [vmem:[#allocation26_spill] sm:$0xff] }
 0x348   :  { %v1661_v6 = vmul.f32 %v1659_v37, %v1518_v52  ;;  %v3973_v32 = vrot.slane %v1659_v37, %v5167_v50  ;;  %v5175_v37 = vld [vmem:[#allocation31_spill] sm:$0xff] }
 0x34a   :  { %v1662_v45 = vsub.f32 %v1660_v2, %v1661_v6  ;;  %v1730_v15 = vmul.f32 %v3973_v32, %v1437_v44  ;;  %v3981_v28 = vmul.f32 %v3665_v17, %v3973_v32  ;;  %v3986_v61 = vmul.f32 %v3675_v62, %v3973_v32  ;;  %v5177_v6 = vld [vmem:[#allocation28_spill] sm:$0xff] }
 0x34b   :  { %v3990_v26 = vmul.f32 %v3973_v32, %v3690_v29  ;;  %v3994_v44 = vmul.f32 %v3973_v32, %v3700_v25  ;;  %v3998_v10 = vmul.f32 %v3685_v60, %v3973_v32  ;;  %v4002_v17 = vmul.f32 %v3695_v23, %v3973_v32 }
 0x34c   :  { %v3977_v1 = vrot.slane %v1662_v45, %v5167_v50  ;;  %v4006_v62 = vmul.f32 %v3973_v32, %v3710_v47  ;;  %v4010_v29 = vmul.f32 %v3973_v32, %v3720_v40  ;;  %v1683_v25 = vmul.f32 %v3705_v21, %v3973_v32  ;;  %v5178_v45 = vld [vmem:[#allocation30_spill] sm:$0xff] }
 0x34d   :  { %v1684_v60 = vmul.f32 %v3715_v4, %v3973_v32  ;;  %v1685_v23 = vmul.f32 %v3973_v32, %v3730_v41  ;;  %v1686_v13 = vmul.f32 %v3973_v32, %v3740_v22  ;;  %v1687_v47 = vmul.f32 %v3725_v27, %v3973_v32 }
 0x34e   :  { %v1800_v51 = vadd.f32 %v3977_v1, %v1730_v15  ;;  %5168 = vst [vmem:[#allocation44_spill] sm:$0xff] %v4006_v62  ;;  %5169 = vst [vmem:[#allocation45_spill] sm:$0xff] %v4010_v29  ;;  %v1688_v40 = vmul.f32 %v3735_v35, %v3973_v32  ;;  %v1689_v34 = vmul.f32 %v3973_v32, %v3750_v8  ;;  %v5186_v29 = vld [vmem:[#allocation43_spill] sm:$0xff] }
 0x34f   :  { %v1690_v4 = vmul.f32 %v3973_v32, %v3760_v55  ;;  %v1691_v41 = vmul.f32 %v3745_v11, %v3973_v32  ;;  %v1692_v22 = vmul.f32 %v3755_v16, %v3973_v32  ;;  %v1693_v27 = vmul.f32 %v3973_v32, %v3770_v24 }
 0x350   :  { %v1864_v53 = vadd.f32 %v2425_v18, %v1800_v51  ;;  %v1694_v35 = vmul.f32 %v3973_v32, %v3780_v7  ;;  %v1695_v8 = vmul.f32 %v3765_v5, %v3973_v32  ;;  %v1696_v52 = vmul.f32 %v3775_v30, %v3973_v32  ;;  %v5179_v51 = vld [vmem:[#allocation35_spill] sm:$0xff] }
 0x351   :  { %v1697_v55 = vmul.f32 %v3973_v32, %v3790_v58  ;;  %v1698_v11 = vmul.f32 %v3973_v32, %v3800_v59  ;;  %v1699_v16 = vmul.f32 %v3785_v31, %v3973_v32  ;;  %v1700_v24 = vmul.f32 %v3795_v54, %v3973_v32 }
 0x352   :  { %vm1928_vm0 = vcmp.gt.f32.partialorder %v1864_v53, 0.0  ;;  %v1992_v21 = vmul.f32 0.2, %v1864_v53  ;;  %v1701_v5 = vmul.f32 %v3973_v32, %v3810_v19  ;;  %v1702_v7 = vmul.f32 %v3973_v32, %v3820_v12 }
 0x353   :  { %v1703_v30 = vmul.f32 %v3805_v48, %v3973_v32  ;;  %v1704_v58 = vmul.f32 %v3815_v46, %v3973_v32  ;;  %v1705_v59 = vmul.f32 %v3973_v32, %v3830_v56  ;;  %v1706_v31 = vmul.f32 %v3973_v32, %v3840_v43 }
 0x354   :  { %v2056_v3 = vsel %vm1928_vm0, %v1864_v53, %v1992_v21  ;;  %v1707_v54 = vmul.f32 %v3825_v49, %v3973_v32  ;;  %v1708_v19 = vmul.f32 %v3835_v0, %v3973_v32  ;;  %v1709_v12 = vmul.f32 %v3973_v32, %v3850_v33  ;;  %v5172_v0 = vld [vmem:[#allocation25_spill] sm:$0xff]  ;;  %v5173_v33 = vld [vmem:[#allocation24_spill] sm:$0xff] }
 0x355   :  { %2120 = vst [vmem:[#allocation8 + $0x1e8] sm:$0xff] %v2056_v3  ;;  %v1710_v48 = vmul.f32 %v3973_v32, %v3860_v42  ;;  %v1711_v46 = vmul.f32 %v3845_v36, %v3973_v32  ;;  %v1712_v56 = vmul.f32 %v3855_v57, %v3973_v32  ;;  %v1713_v43 = vmul.f32 %v3973_v32, %v5170_v63  ;;  %v5176_v57 = vld [vmem:[#allocation29_spill] sm:$0xff]  ;;  %v5181_v3 = vld [vmem:[#allocation32_spill] sm:$0xff] }
 0x356   :  { %v1714_v49 = vmul.f32 %v3973_v32, %v5171_v14  ;;  %v1715_v38 = vmul.f32 %v5172_v0, %v3973_v32  ;;  %v1716_v39 = vmul.f32 %v5173_v33, %v3973_v32  ;;  %v1717_v42 = vmul.f32 %v3973_v32, %v5174_v20  ;;  %v5180_v53 = vld [vmem:[#allocation33_spill] sm:$0xff]  ;;  %v5182_v14 = vld [vmem:[#allocation39_spill] sm:$0xff] }
 0x357   :  { %v1718_v36 = vmul.f32 %v3973_v32, %v5175_v37  ;;  %v1719_v2 = vmul.f32 %v5176_v57, %v3973_v32  ;;  %v1720_v50 = vmul.f32 %v5177_v6, %v3973_v32  ;;  %v1721_v15 = vmul.f32 %v3973_v32, %v5178_v45  ;;  %v5183_v33 = vld [vmem:[#allocation41_spill] sm:$0xff]  ;;  %v5184_v37 = vld [vmem:[#allocation34_spill] sm:$0xff]  ;;  %v5185_v6 = vld [vmem:[#allocation40_spill] sm:$0xff] }
 0x358   :  { %v1722_v18 = vmul.f32 %v3973_v32, %v5179_v51  ;;  %v1723_v21 = vmul.f32 %v5180_v53, %v3973_v32  ;;  %v1724_v63 = vmul.f32 %v5181_v3, %v3973_v32  ;;  %v1725_v0 = vmul.f32 %v3973_v32, %v5182_v14  ;;  %v5187_v53 = vld [vmem:[#allocation42_spill] sm:$0xff] }
 0x359   :  { %v1726_v20 = vmul.f32 %v3973_v32, %v5183_v33  ;;  %v1727_v57 = vmul.f32 %v5184_v37, %v3973_v32  ;;  %v1728_v45 = vmul.f32 %v5185_v6, %v3973_v32  ;;  %v1729_v51 = vmul.f32 %v3973_v32, %v5186_v29 }
 0x35a   :  { %v1731_v62 = vmul.f32 %v5187_v53, %v3973_v32  ;;  %v1732_v3 = vmul.f32 %v3955_v9, %v3973_v32  ;;  %v4112_v14 = vadd.f32 %v3977_v1, %v3981_v28  ;;  %v4116_v33 = vadd.f32 %v3977_v1, %v3986_v61  ;;  %v5190_v28 = vld [vmem:[#allocation44_spill] sm:$0xff]  ;;  %v5191_v53 = vld [vmem:[#allocation45_spill] sm:$0xff] }
 0x35b   :  { %v4120_v37 = vadd.f32 %v3977_v1, %v3990_v26  ;;  %v4124_v29 = vadd.f32 %v3977_v1, %v3994_v44  ;;  %v4128_v6 = vadd.f32 %v3977_v1, %v3998_v10  ;;  %v4132_v9 = vadd.f32 %v3977_v1, %v4002_v17 }
 0x35c   :  { %v4136_v61 = vadd.f32 %v3977_v1, %v5190_v28  ;;  %v4140_v26 = vadd.f32 %v3977_v1, %v5191_v53  ;;  %v4146_v44 = vadd.f32 %v3977_v1, %v1684_v60  ;;  %v4149_v10 = vadd.f32 %v3977_v1, %v1685_v23 }
 0x35d   :  { %5188 = vst [vmem:[#allocation46_spill] sm:$0xff] %v4120_v37  ;;  %5189 = vst [vmem:[#allocation47_spill] sm:$0xff] %v4132_v9  ;;  %v4143_v37 = vadd.f32 %v3977_v1, %v1683_v25  ;;  %v4152_v17 = vadd.f32 %v3977_v1, %v1686_v13  ;;  %v4155_v9 = vadd.f32 %v3977_v1, %v1687_v47 }
 0x35e   :  { %v4158_v28 = vadd.f32 %v3977_v1, %v1688_v40  ;;  %v4161_v53 = vadd.f32 %v3977_v1, %v1689_v34  ;;  %v4164_v25 = vadd.f32 %v3977_v1, %v1690_v4  ;;  %v4167_v60 = vadd.f32 %v3977_v1, %v1691_v41 }
 0x35f   :  { %v4170_v23 = vadd.f32 %v3977_v1, %v1692_v22  ;;  %v4173_v13 = vadd.f32 %v3977_v1, %v1693_v27  ;;  %v4176_v47 = vadd.f32 %v3977_v1, %v1694_v35  ;;  %v4179_v40 = vadd.f32 %v3977_v1, %v1695_v8 }
 0x360   :  { %v4182_v34 = vadd.f32 %v3977_v1, %v1696_v52  ;;  %v4185_v4 = vadd.f32 %v3977_v1, %v1697_v55  ;;  %v4188_v41 = vadd.f32 %v3977_v1, %v1698_v11  ;;  %v4191_v22 = vadd.f32 %v3977_v1, %v1699_v16 }
 0x361   :  { %v4194_v27 = vadd.f32 %v3977_v1, %v1700_v24  ;;  %v4197_v35 = vadd.f32 %v3977_v1, %v1701_v5  ;;  %v4200_v8 = vadd.f32 %v3977_v1, %v1702_v7  ;;  %v4203_v52 = vadd.f32 %v3977_v1, %v1703_v30 }
 0x362   :  { %v4206_v55 = vadd.f32 %v3977_v1, %v1704_v58  ;;  %v4209_v11 = vadd.f32 %v3977_v1, %v1705_v59  ;;  %v4212_v16 = vadd.f32 %v3977_v1, %v1706_v31  ;;  %v4215_v24 = vadd.f32 %v3977_v1, %v1707_v54 }
 0x363   :  { %v4218_v5 = vadd.f32 %v3977_v1, %v1708_v19  ;;  %v4221_v7 = vadd.f32 %v3977_v1, %v1709_v12  ;;  %v4224_v30 = vadd.f32 %v3977_v1, %v1710_v48  ;;  %v4227_v58 = vadd.f32 %v3977_v1, %v1711_v46 }
 0x364   :  { %v4230_v59 = vadd.f32 %v3977_v1, %v1712_v56  ;;  %v4233_v31 = vadd.f32 %v3977_v1, %v1713_v43  ;;  %v4236_v54 = vadd.f32 %v3977_v1, %v1714_v49  ;;  %v4239_v19 = vadd.f32 %v3977_v1, %v1715_v38 }
 0x365   :  { %v4242_v12 = vadd.f32 %v3977_v1, %v1716_v39  ;;  %v4245_v48 = vadd.f32 %v3977_v1, %v1717_v42  ;;  %v4248_v46 = vadd.f32 %v3977_v1, %v1718_v36  ;;  %v4251_v56 = vadd.f32 %v3977_v1, %v1719_v2 }
 0x366   :  { %v4254_v43 = vadd.f32 %v3977_v1, %v1720_v50  ;;  %v4257_v49 = vadd.f32 %v3977_v1, %v1721_v15  ;;  %v4260_v38 = vadd.f32 %v3977_v1, %v1722_v18  ;;  %v4263_v39 = vadd.f32 %v3977_v1, %v1723_v21 }
 0x367   :  { %v4266_v42 = vadd.f32 %v3977_v1, %v1724_v63  ;;  %v4269_v36 = vadd.f32 %v3977_v1, %v1725_v0  ;;  %v4272_v2 = vadd.f32 %v3977_v1, %v1726_v20  ;;  %v4275_v50 = vadd.f32 %v3977_v1, %v1727_v57  ;;  %v5204_v0 = vld [vmem:[#allocation19_spill] sm:$0xff]  ;;  %v5205_v20 = vld [vmem:[#allocation18_spill] sm:$0xff]  ;;  %v5206_v57 = vld [vmem:[#allocation16_spill] sm:$0xff] }
 0x368   :  { %5192 = vst [vmem:[#allocation12_spill] sm:$0xff] %v4254_v43  ;;  %5193 = vst [vmem:[#allocation13_spill] sm:$0xff] %v4257_v49  ;;  %v4278_v15 = vadd.f32 %v3977_v1, %v1728_v45  ;;  %v4281_v18 = vadd.f32 %v3977_v1, %v1729_v51  ;;  %v4284_v21 = vadd.f32 %v3977_v1, %v1731_v62  ;;  %v5207_v45 = vld [vmem:[#allocation21_spill] sm:$0xff]  ;;  %v5208_v51 = vld [vmem:[#allocation20_spill] sm:$0xff] }
 0x369   :  { %5194 = vst [vmem:[#allocation15_spill] sm:$0xff] %v4260_v38  ;;  %5195 = vst [vmem:[#allocation37_spill] sm:$0xff] %v4263_v39  ;;  %v4287_v63 = vadd.f32 %v3977_v1, %v1732_v3  ;;  %v5209_v62 = vld [vmem:[#allocation23_spill] sm:$0xff]  ;;  %v2426_v39 = vld [vmem:[#allocation2] sm:$0xff] }
 0x36a   :  { %5196 = vst [vmem:[#allocation38_spill] sm:$0xff] %v4266_v42  ;;  %5197 = vst [vmem:[#allocation17_spill] sm:$0xff] %v4269_v36  ;;  %v1669_v36 = vmul.f32 %v3973_v32, %v5204_v0  ;;  %v2427_v38 = vld [vmem:[#allocation2 + $0x8] sm:$0xff]  ;;  %v2428_v49 = vld [vmem:[#allocation2 + $0x10] sm:$0xff] }
 0x36b   :  { %5198 = vst [vmem:[#allocation14_spill] sm:$0xff] %v4272_v2  ;;  %5199 = vst [vmem:[#allocation36_spill] sm:$0xff] %v4275_v50  ;;  %v1670_v2 = vmul.f32 %v3973_v32, %v5205_v20  ;;  %v1671_v50 = vmul.f32 %v5206_v57, %v3973_v32 }
 0x36c   :  { %5200 = vst [vmem:[#allocation22_spill] sm:$0xff] %v4278_v15  ;;  %5201 = vst [vmem:[#allocation27_spill] sm:$0xff] %v4281_v18  ;;  %v1672_v15 = vmul.f32 %v5207_v45, %v3973_v32  ;;  %v1673_v18 = vmul.f32 %v3973_v32, %v5208_v51  ;;  %v1739_v3 = vadd.f32 %v3977_v1, %v1669_v36  ;;  %v2429_v36 = vld [vmem:[#allocation2 + $0x18] sm:$0xff] }
 0x36d   :  { %5202 = vst [vmem:[#allocation25_spill] sm:$0xff] %v4284_v21  ;;  %5203 = vst [vmem:[#allocation24_spill] sm:$0xff] %v4287_v63  ;;  %v1674_v21 = vmul.f32 %v3973_v32, %v5209_v62  ;;  %v1740_v63 = vadd.f32 %v3977_v1, %v1670_v2  ;;  %v1741_v0 = vadd.f32 %v3977_v1, %v1671_v50  ;;  %v2430_v2 = vld [vmem:[#allocation2 + $0x20] sm:$0xff] }
 0x36e   :  { %v1742_v20 = vadd.f32 %v3977_v1, %v1672_v15  ;;  %v1743_v42 = vadd.f32 %v3977_v1, %v1673_v18  ;;  %v4307_v45 = vadd.f32 %v2426_v39, %v1739_v3  ;;  %v2431_v15 = vld [vmem:[#allocation2 + $0x28] sm:$0xff]  ;;  %v2432_v18 = vld [vmem:[#allocation2 + $0x30] sm:$0xff]  ;;  %v2433_v39 = vld [vmem:[#allocation2 + $0x38] sm:$0xff] }
 0x36f   :  { %v1744_v57 = vadd.f32 %v3977_v1, %v1674_v21  ;;  %v4309_v51 = vadd.f32 %v2427_v38, %v1740_v63  ;;  %v4311_v32 = vadd.f32 %v2428_v49, %v1741_v0  ;;  %v4320_v1 = vadd.f32 %v2432_v18, %v4112_v14  ;;  %v2434_v21 = vld [vmem:[#allocation2 + $0x40] sm:$0xff]  ;;  %v5210_v49 = vld [vmem:[#allocation46_spill] sm:$0xff]  ;;  %v2435_v3 = vld [vmem:[#allocation2 + $0x48] sm:$0xff] }
 0x370   :  { %v4313_v62 = vadd.f32 %v2429_v36, %v1742_v20  ;;  %v4315_v50 = vadd.f32 %v2430_v2, %v1743_v42  ;;  %v4323_v38 = vadd.f32 %v2433_v39, %v4116_v33  ;;  %v4326_v63 = vadd.f32 %v2434_v21, %v5210_v49  ;;  %v2436_v42 = vld [vmem:[#allocation2 + $0x50] sm:$0xff]  ;;  %v5211_v36 = vld [vmem:[#allocation47_spill] sm:$0xff]  ;;  %v2438_v2 = vld [vmem:[#allocation2 + $0x60] sm:$0xff] }
 0x371   :  { %v4317_v43 = vadd.f32 %v2431_v15, %v1744_v57  ;;  %v4329_v0 = vadd.f32 %v2435_v3, %v4124_v29  ;;  %v4332_v20 = vadd.f32 %v2436_v42, %v4128_v6  ;;  %v2437_v57 = vld [vmem:[#allocation2 + $0x58] sm:$0xff]  ;;  %v4338_v33 = vadd.f32 %v2438_v2, %v4136_v61  ;;  %v2439_v15 = vld [vmem:[#allocation2 + $0x68] sm:$0xff]  ;;  %v2440_v39 = vld [vmem:[#allocation2 + $0x70] sm:$0xff] }
 0x372   :  { %v4335_v14 = vadd.f32 %v2437_v57, %v5211_v36  ;;  %v4341_v18 = vadd.f32 %v2439_v15, %v4140_v26  ;;  %v4344_v29 = vadd.f32 %v2440_v39, %v4143_v37  ;;  %v2441_v21 = vld [vmem:[#allocation2 + $0x78] sm:$0xff]  ;;  %v2442_v49 = vld [vmem:[#allocation2 + $0x80] sm:$0xff]  ;;  %v2443_v42 = vld [vmem:[#allocation2 + $0x88] sm:$0xff]  ;;  %vm1867_vm1 = vcmp.gt.f32.partialorder %v4307_v45, 0.0 }
 0x373   :  { %v4347_v6 = vadd.f32 %v2441_v21, %v4146_v44  ;;  %v4350_v3 = vadd.f32 %v2442_v49, %v4149_v10  ;;  %v4353_v61 = vadd.f32 %v2443_v42, %v4152_v17  ;;  %v2444_v57 = vld [vmem:[#allocation2 + $0x90] sm:$0xff]  ;;  %v2445_v36 = vld [vmem:[#allocation2 + $0x98] sm:$0xff]  ;;  %v2446_v2 = vld [vmem:[#allocation2 + $0xa0] sm:$0xff]  ;;  %vm1868_vm2 = vcmp.gt.f32.partialorder %v4309_v51, 0.0 }
 0x374   :  { %v4356_v26 = vadd.f32 %v2444_v57, %v4155_v9  ;;  %v4359_v37 = vadd.f32 %v2445_v36, %v4158_v28  ;;  %v4362_v44 = vadd.f32 %v2446_v2, %v4161_v53  ;;  %v2447_v15 = vld [vmem:[#allocation2 + $0xa8] sm:$0xff]  ;;  %v2448_v39 = vld [vmem:[#allocation2 + $0xb0] sm:$0xff]  ;;  %v2449_v21 = vld [vmem:[#allocation2 + $0xb8] sm:$0xff]  ;;  %vm1869_vm3 = vcmp.gt.f32.partialorder %v4311_v32, 0.0 }
 0x375   :  { %v4365_v10 = vadd.f32 %v2447_v15, %v4164_v25  ;;  %v4368_v17 = vadd.f32 %v2448_v39, %v4167_v60  ;;  %v4371_v9 = vadd.f32 %v2449_v21, %v4170_v23  ;;  %v2450_v49 = vld [vmem:[#allocation2 + $0xc0] sm:$0xff]  ;;  %v2451_v42 = vld [vmem:[#allocation2 + $0xc8] sm:$0xff]  ;;  %v2452_v57 = vld [vmem:[#allocation2 + $0xd0] sm:$0xff]  ;;  %vm1870_vm4 = vcmp.gt.f32.partialorder %v4313_v62, 0.0 }
 0x376   :  { %v4374_v28 = vadd.f32 %v2450_v49, %v4173_v13  ;;  %v4377_v53 = vadd.f32 %v2451_v42, %v4176_v47  ;;  %v4380_v25 = vadd.f32 %v2452_v57, %v4179_v40  ;;  %v2453_v36 = vld [vmem:[#allocation2 + $0xd8] sm:$0xff]  ;;  %v2454_v2 = vld [vmem:[#allocation2 + $0xe0] sm:$0xff]  ;;  %v2455_v15 = vld [vmem:[#allocation2 + $0xe8] sm:$0xff]  ;;  %vm1871_vm5 = vcmp.gt.f32.partialorder %v4315_v50, 0.0 }
 0x377   :  { %v4383_v60 = vadd.f32 %v2453_v36, %v4182_v34  ;;  %v4386_v23 = vadd.f32 %v2454_v2, %v4185_v4  ;;  %v4389_v13 = vadd.f32 %v2455_v15, %v4188_v41  ;;  %v2456_v39 = vld [vmem:[#allocation2 + $0xf0] sm:$0xff]  ;;  %v2457_v21 = vld [vmem:[#allocation2 + $0xf8] sm:$0xff]  ;;  %v2458_v49 = vld [vmem:[#allocation2 + $0x100] sm:$0xff]  ;;  %vm1872_vm6 = vcmp.gt.f32.partialorder %v4317_v43, 0.0 }
 0x378   :  { %v4392_v47 = vadd.f32 %v2456_v39, %v4191_v22  ;;  %v4395_v40 = vadd.f32 %v2457_v21, %v4194_v27  ;;  %v4398_v34 = vadd.f32 %v2458_v49, %v4197_v35  ;;  %v2459_v42 = vld [vmem:[#allocation2 + $0x108] sm:$0xff]  ;;  %v2460_v57 = vld [vmem:[#allocation2 + $0x110] sm:$0xff]  ;;  %v2461_v36 = vld [vmem:[#allocation2 + $0x118] sm:$0xff]  ;;  %vm1873_vm7 = vcmp.gt.f32.partialorder %v4320_v1, 0.0 }
 0x379   :  { %v4401_v4 = vadd.f32 %v2459_v42, %v4200_v8  ;;  %v4404_v41 = vadd.f32 %v2460_v57, %v4203_v52  ;;  %v4407_v22 = vadd.f32 %v2461_v36, %v4206_v55  ;;  %v2462_v2 = vld [vmem:[#allocation2 + $0x120] sm:$0xff]  ;;  %v2463_v15 = vld [vmem:[#allocation2 + $0x128] sm:$0xff]  ;;  %v2464_v39 = vld [vmem:[#allocation2 + $0x130] sm:$0xff]  ;;  %vm1874_vm8 = vcmp.gt.f32.partialorder %v4323_v38, 0.0 }
 0x37a   :  { %v4410_v27 = vadd.f32 %v2462_v2, %v4209_v11  ;;  %v4413_v35 = vadd.f32 %v2463_v15, %v4212_v16  ;;  %v4416_v8 = vadd.f32 %v2464_v39, %v4215_v24  ;;  %v2465_v21 = vld [vmem:[#allocation2 + $0x138] sm:$0xff]  ;;  %v2466_v49 = vld [vmem:[#allocation2 + $0x140] sm:$0xff]  ;;  %v2467_v42 = vld [vmem:[#allocation2 + $0x148] sm:$0xff]  ;;  %vm1875_vm9 = vcmp.gt.f32.partialorder %v4326_v63, 0.0 }
 0x37b   :  { %v4419_v52 = vadd.f32 %v2465_v21, %v4218_v5  ;;  %v4422_v55 = vadd.f32 %v2466_v49, %v4221_v7  ;;  %v4425_v11 = vadd.f32 %v2467_v42, %v4224_v30  ;;  %v2468_v57 = vld [vmem:[#allocation2 + $0x150] sm:$0xff]  ;;  %v2469_v36 = vld [vmem:[#allocation2 + $0x158] sm:$0xff]  ;;  %v2470_v2 = vld [vmem:[#allocation2 + $0x160] sm:$0xff]  ;;  %vm1876_vm10 = vcmp.gt.f32.partialorder %v4329_v0, 0.0 }
 0x37c   :  { %v4428_v16 = vadd.f32 %v2468_v57, %v4227_v58  ;;  %v4431_v24 = vadd.f32 %v2469_v36, %v4230_v59  ;;  %v4434_v5 = vadd.f32 %v2470_v2, %v4233_v31  ;;  %v2471_v15 = vld [vmem:[#allocation2 + $0x168] sm:$0xff]  ;;  %v2472_v39 = vld [vmem:[#allocation2 + $0x170] sm:$0xff]  ;;  %v2473_v21 = vld [vmem:[#allocation2 + $0x178] sm:$0xff]  ;;  %vm1877_vm11 = vcmp.gt.f32.partialorder %v4332_v20, 0.0 }
 0x37d   :  { %v4437_v7 = vadd.f32 %v2471_v15, %v4236_v54  ;;  %v4440_v30 = vadd.f32 %v2472_v39, %v4239_v19  ;;  %v4443_v58 = vadd.f32 %v2473_v21, %v4242_v12  ;;  %v2474_v49 = vld [vmem:[#allocation2 + $0x180] sm:$0xff]  ;;  %v2475_v42 = vld [vmem:[#allocation2 + $0x188] sm:$0xff]  ;;  %v2476_v57 = vld [vmem:[#allocation2 + $0x190] sm:$0xff]  ;;  %vm1878_vm12 = vcmp.gt.f32.partialorder %v4335_v14, 0.0 }
 0x37e   :  { %5212 = vst [vmem:[#allocation26_spill] sm:$0xff] %v4428_v16  ;;  %v4446_v59 = vadd.f32 %v2474_v49, %v4245_v48  ;;  %v4449_v31 = vadd.f32 %v2475_v42, %v4248_v46  ;;  %v4452_v54 = vadd.f32 %v2476_v57, %v4251_v56  ;;  %v2477_v36 = vld [vmem:[#allocation2 + $0x198] sm:$0xff]  ;;  %v5218_v2 = vld [vmem:[#allocation12_spill] sm:$0xff]  ;;  %v5220_v39 = vld [vmem:[#allocation13_spill] sm:$0xff]  ;;  %vm1879_vm13 = vcmp.gt.f32.partialorder %v4338_v33, 0.0 }
 0x37f   :  { %5213 = vst [vmem:[#allocation31_spill] sm:$0xff] %v4440_v30  ;;  %5214 = vst [vmem:[#allocation29_spill] sm:$0xff] %v4443_v58  ;;  %v4455_v19 = vadd.f32 %v2477_v36, %v5218_v2  ;;  %v2478_v15 = vld [vmem:[#allocation2 + $0x1a0] sm:$0xff]  ;;  %v2479_v21 = vld [vmem:[#allocation2 + $0x1a8] sm:$0xff]  ;;  %vm1880_vm14 = vcmp.gt.f32.partialorder %v4341_v18, 0.0  ;;  %vm1881_vm15 = vcmp.gt.f32.partialorder %v4344_v29, 0.0 }
 0x380   :  { %5215 = vst [vmem:[#allocation28_spill] sm:$0xff] %v4446_v59  ;;  %5216 = vst [vmem:[#allocation30_spill] sm:$0xff] %v4449_v31  ;;  %v4458_v12 = vadd.f32 %v2478_v15, %v5220_v39  ;;  %v5222_v58 = vld [vmem:[#allocation15_spill] sm:$0xff]  ;;  %v2480_v49 = vld [vmem:[#allocation2 + $0x1b0] sm:$0xff]  ;;  %vm1882_vm0 = vcmp.gt.f32.partialorder %v4347_v6, 0.0 }
 0x381   :  { %5217 = vst [vmem:[#allocation35_spill] sm:$0xff] %v4452_v54  ;;  %5219 = vst [vmem:[#allocation33_spill] sm:$0xff] %v4455_v19  ;;  %v4461_v48 = vadd.f32 %v2479_v21, %v5222_v58  ;;  %v5224_v59 = vld [vmem:[#allocation37_spill] sm:$0xff]  ;;  %v2481_v42 = vld [vmem:[#allocation2 + $0x1b8] sm:$0xff] }
 0x382   :  { %5221 = vst [vmem:[#allocation32_spill] sm:$0xff] %v4458_v12  ;;  %v4464_v46 = vadd.f32 %v2480_v49, %v5224_v59  ;;  %v5226_v31 = vld [vmem:[#allocation38_spill] sm:$0xff]  ;;  %v2482_v57 = vld [vmem:[#allocation2 + $0x1c0] sm:$0xff]  ;;  %v5228_v54 = vld [vmem:[#allocation17_spill] sm:$0xff] }
 0x383   :  { %5223 = vst [vmem:[#allocation39_spill] sm:$0xff] %v4461_v48  ;;  %v4467_v56 = vadd.f32 %v2481_v42, %v5226_v31  ;;  %v4470_v36 = vadd.f32 %v2482_v57, %v5228_v54  ;;  %v2483_v2 = vld [vmem:[#allocation2 + $0x1c8] sm:$0xff]  ;;  %v5230_v19 = vld [vmem:[#allocation14_spill] sm:$0xff]  ;;  %v5232_v12 = vld [vmem:[#allocation36_spill] sm:$0xff]  ;;  %v1933_v42 = vmul.f32 0.2, %v4311_v32 }
 0x384   :  { %5225 = vst [vmem:[#allocation41_spill] sm:$0xff] %v4464_v46  ;;  %v4473_v15 = vadd.f32 %v2483_v2, %v5230_v19  ;;  %v2484_v39 = vld [vmem:[#allocation2 + $0x1d0] sm:$0xff]  ;;  %v2485_v21 = vld [vmem:[#allocation2 + $0x1d8] sm:$0xff]  ;;  %v2486_v49 = vld [vmem:[#allocation2 + $0x1e0] sm:$0xff] }
 0x385   :  { %5227 = vst [vmem:[#allocation34_spill] sm:$0xff] %v4467_v56  ;;  %5229 = vst [vmem:[#allocation40_spill] sm:$0xff] %v4470_v36  ;;  %v4476_v58 = vadd.f32 %v2484_v39, %v5232_v12  ;;  %v5234_v48 = vld [vmem:[#allocation22_spill] sm:$0xff]  ;;  %v5236_v46 = vld [vmem:[#allocation27_spill] sm:$0xff]  ;;  %v1997_v36 = vsel %vm1869_vm3, %v4311_v32, %v1933_v42  ;;  %v4553_v32 = vmul.f32 0.2, %v4356_v26 }
 0x386   :  { %5231 = vst [vmem:[#allocation43_spill] sm:$0xff] %v4473_v15  ;;  %v4479_v59 = vadd.f32 %v2485_v21, %v5234_v48  ;;  %v4482_v31 = vadd.f32 %v2486_v49, %v5236_v46  ;;  %v2487_v54 = vld [vmem:[#allocation2 + $0x1f0] sm:$0xff]  ;;  %v5238_v19 = vld [vmem:[#allocation25_spill] sm:$0xff]  ;;  %v1931_v48 = vmul.f32 0.2, %v4307_v45  ;;  %v2488_v57 = vld [vmem:[#allocation2 + $0x1f8] sm:$0xff] }
 0x387   :  { %5233 = vst [vmem:[#allocation42_spill] sm:$0xff] %v4476_v58  ;;  %v4494_v12 = vadd.f32 %v2487_v54, %v5238_v19  ;;  %v1932_v46 = vmul.f32 0.2, %v4309_v51  ;;  %v5240_v2 = vld [vmem:[#allocation24_spill] sm:$0xff]  ;;  %v1934_v21 = vmul.f32 0.2, %v4313_v62 }
 0x388   :  { %5235 = vst [vmem:[#allocation44_spill] sm:$0xff] %v4479_v59  ;;  %5237 = vst [vmem:[#allocation45_spill] sm:$0xff] %v4482_v31  ;;  %v4501_v39 = vadd.f32 %v2488_v57, %v5240_v2  ;;  %v1935_v49 = vmul.f32 0.2, %v4315_v50  ;;  %v1936_v54 = vmul.f32 0.2, %v4317_v43  ;;  %v1995_v57 = vsel %vm1867_vm1, %v4307_v45, %v1931_v48 }
 0x389   :  { %5239 = vst [vmem:[#allocation19_spill] sm:$0xff] %v4494_v12  ;;  %v1937_v19 = vmul.f32 0.2, %v4320_v1  ;;  %v1938_v12 = vmul.f32 0.2, %v4323_v38  ;;  %v1996_v58 = vsel %vm1868_vm2, %v4309_v51, %v1932_v46  ;;  %2059 = vst [vmem:[#allocation8] sm:$0xff] %v1995_v57  ;;  %v1998_v56 = vsel %vm1870_vm4, %v4313_v62, %v1934_v21 }
 0x38a   :  { %5241 = vst [vmem:[#allocation18_spill] sm:$0xff] %v4501_v39  ;;  %v1939_v31 = vmul.f32 0.2, %v4326_v63  ;;  %v1940_v2 = vmul.f32 0.2, %v4329_v0  ;;  %2060 = vst [vmem:[#allocation8 + $0x8] sm:$0xff] %v1996_v58 }
 0x38b   :  { %v4517_v39 = vmul.f32 0.2, %v4332_v20  ;;  %v4520_v59 = vmul.f32 0.2, %v4335_v14  ;;  %v4527_v15 = vmul.f32 0.2, %v4338_v33 }
 0x38c   :  { %v4530_v45 = vmul.f32 0.2, %v4341_v18  ;;  %v4533_v48 = vmul.f32 0.2, %v4344_v29  ;;  %v4540_v51 = vmul.f32 0.2, %v4347_v6 }
 0x38d   :  { %v4543_v46 = vmul.f32 0.2, %v4350_v3  ;;  %v4546_v57 = vmul.f32 0.2, %v4353_v61  ;;  %2061 = vst [vmem:[#allocation8 + $0x10] sm:$0xff] %v1997_v36  ;;  %2062 = vst [vmem:[#allocation8 + $0x18] sm:$0xff] %v1998_v56 }
 0x38e   :  { %v4556_v58 = vmul.f32 0.2, %v4359_v37  ;;  %v4559_v42 = vmul.f32 0.2, %v4362_v44  ;;  %vm1883_vm1 = vcmp.gt.f32.partialorder %v4350_v3, 0.0  ;;  %vm1884_vm2 = vcmp.gt.f32.partialorder %v4353_v61, 0.0 }
 0x38f   :  { %5242 = vst [vmem:[#allocation16_spill] sm:$0xff] %v4546_v57  ;;  %v1999_v57 = vsel %vm1871_vm5, %v4315_v50, %v1935_v49  ;;  %v4566_v62 = vmul.f32 0.2, %v4365_v10  ;;  %v4569_v36 = vmul.f32 0.2, %v4368_v17  ;;  %vm1885_vm3 = vcmp.gt.f32.partialorder %v4356_v26, 0.0 }
 0x390   :  { %5243 = vst [vmem:[#allocation21_spill] sm:$0xff] %v4559_v42  ;;  %v4572_v21 = vmul.f32 0.2, %v4371_v9  ;;  %v2000_v42 = vsel %vm1872_vm6, %v4317_v43, %v1936_v54  ;;  %2063 = vst [vmem:[#allocation8 + $0x20] sm:$0xff] %v1999_v57  ;;  %v4579_v50 = vmul.f32 0.2, %v4374_v28 }
 0x391   :  { %v4582_v56 = vmul.f32 0.2, %v4377_v53  ;;  %v4585_v49 = vmul.f32 0.2, %v4380_v25  ;;  %2064 = vst [vmem:[#allocation8 + $0x28] sm:$0xff] %v2000_v42  ;;  %vm1886_vm4 = vcmp.gt.f32.partialorder %v4359_v37, 0.0 }
 0x392   :  { %5244 = vst [vmem:[#allocation20_spill] sm:$0xff] %v4572_v21  ;;  %v2001_v21 = vsel %vm1873_vm7, %v4320_v1, %v1937_v19  ;;  %v4592_v43 = vmul.f32 0.2, %v4383_v60  ;;  %v4595_v54 = vmul.f32 0.2, %v4386_v23  ;;  %vm5285_vm5 = vcmp.gt.f32.partialorder %v4365_v10, 0.0 }
 0x393   :  { %5245 = vst [vmem:[#allocation23_spill] sm:$0xff] %v4585_v49  ;;  %v4598_v57 = vmul.f32 0.2, %v4389_v13  ;;  %v2002_v49 = vsel %vm1874_vm8, %v4323_v38, %v1938_v12  ;;  %2065 = vst [vmem:[#allocation8 + $0x30] sm:$0xff] %v2001_v21  ;;  %v4608_v1 = vmul.f32 0.2, %v4392_v47  ;;  %v2003_v38 = vsel %vm1875_vm9, %v4326_v63, %v1939_v31 }
 0x394   :  { %v4611_v19 = vmul.f32 0.2, %v4395_v40  ;;  %v4614_v42 = vmul.f32 0.2, %v4398_v34  ;;  %2066 = vst [vmem:[#allocation8 + $0x38] sm:$0xff] %v2002_v49  ;;  %vm1890_vm8 = vcmp.gt.f32.partialorder %v4371_v9, 0.0  ;;  %v2004_v63 = vsel %vm1876_vm10, %v4329_v0, %v1940_v2 }
 0x395   :  { %v4624_v12 = vmul.f32 0.2, %v4401_v4  ;;  %v4627_v21 = vmul.f32 0.2, %v4404_v41  ;;  %2067 = vst [vmem:[#allocation8 + $0x40] sm:$0xff] %v2003_v38  ;;  %vm1894_vm9 = vcmp.gt.f32.partialorder %v4383_v60, 0.0  ;;  %v2005_v0 = vsel %vm1877_vm11, %v4332_v20, %v4517_v39 }
 0x396   :  { %5246 = vst [vmem:[#allocation46_spill] sm:$0xff] %v4614_v42  ;;  %v4630_v42 = vmul.f32 0.2, %v4407_v22  ;;  %v4640_v31 = vmul.f32 0.2, %v4410_v27  ;;  %2068 = vst [vmem:[#allocation8 + $0x48] sm:$0xff] %v2004_v63  ;;  %v2006_v20 = vsel %vm1878_vm12, %v4335_v14, %v4520_v59  ;;  %v2007_v14 = vsel %vm1879_vm13, %v4338_v33, %v4527_v15 }
 0x397   :  { %v4643_v49 = vmul.f32 0.2, %v4413_v35  ;;  %vm1898_vm10 = vcmp.gt.f32.partialorder %v4395_v40, 0.0  ;;  %v4657_v2 = vmul.f32 0.2, %v4419_v52  ;;  %2069 = vst [vmem:[#allocation8 + $0x50] sm:$0xff] %v2005_v0  ;;  %v2008_v33 = vsel %vm1880_vm14, %v4341_v18, %v4530_v45 }
 0x398   :  { %5247 = vst [vmem:[#allocation47_spill] sm:$0xff] %v4630_v42  ;;  %v4646_v42 = vmul.f32 0.2, %v4416_v8  ;;  %v4660_v38 = vmul.f32 0.2, %v4422_v55  ;;  %vm1902_vm11 = vcmp.gt.f32.partialorder %v4407_v22, 0.0  ;;  %v2009_v18 = vsel %vm1881_vm15, %v4344_v29, %v4533_v48 }
 0x399   :  { %v4674_v39 = vmul.f32 0.2, %v4428_v16  ;;  %v4677_v63 = vmul.f32 0.2, %v4431_v24  ;;  %2070 = vst [vmem:[#allocation8 + $0x58] sm:$0xff] %v2006_v20  ;;  %vm1906_vm12 = vcmp.gt.f32.partialorder %v4419_v52, 0.0  ;;  %v2010_v29 = vsel %vm1882_vm0, %v4347_v6, %v4540_v51 }
 0x39a   :  { %5248 = vst [vmem:[#allocation12_spill] sm:$0xff] %v4646_v42  ;;  %v4663_v42 = vmul.f32 0.2, %v4425_v11  ;;  %v4691_v59 = vmul.f32 0.2, %v4437_v7  ;;  %2071 = vst [vmem:[#allocation8 + $0x60] sm:$0xff] %v2007_v14  ;;  %v2011_v6 = vsel %vm1883_vm1, %v4350_v3, %v4543_v46 }
 0x39b   :  { %5250 = vst [vmem:[#allocation15_spill] sm:$0xff] %v4677_v63  ;;  %v4694_v0 = vmul.f32 0.2, %v4440_v30  ;;  %vm1910_vm13 = vcmp.gt.f32.partialorder %v4431_v24, 0.0  ;;  %v5256_v15 = vld [vmem:[#allocation28_spill] sm:$0xff]  ;;  %2072 = vst [vmem:[#allocation8 + $0x68] sm:$0xff] %v2008_v33 }
 0x39c   :  { %5249 = vst [vmem:[#allocation13_spill] sm:$0xff] %v4663_v42  ;;  %v4680_v42 = vmul.f32 0.2, %v4434_v5  ;;  %5252 = vst [vmem:[#allocation38_spill] sm:$0xff] %v4691_v59  ;;  %v4708_v20 = vmul.f32 0.2, %v5256_v15 }
 0x39d   :  { %5253 = vst [vmem:[#allocation17_spill] sm:$0xff] %v4694_v0  ;;  %v5258_v0 = vld [vmem:[#allocation30_spill] sm:$0xff]  ;;  %v5262_v45 = vld [vmem:[#allocation33_spill] sm:$0xff]  ;;  %2073 = vst [vmem:[#allocation8 + $0x70] sm:$0xff] %v2009_v18 }
 0x39e   :  { %5251 = vst [vmem:[#allocation37_spill] sm:$0xff] %v4680_v42  ;;  %v5254_v42 = vld [vmem:[#allocation29_spill] sm:$0xff]  ;;  %5257 = vst [vmem:[#allocation36_spill] sm:$0xff] %v4708_v20  ;;  %v4711_v59 = vmul.f32 0.2, %v5258_v0  ;;  %vm1918_vm15 = vcmp.gt.f32.partialorder %v5262_v45, 0.0 }
 0x39f   :  { %v4697_v63 = vmul.f32 0.2, %v5254_v42  ;;  %vm1914_vm14 = vcmp.gt.f32.partialorder %v5254_v42, 0.0  ;;  %v4725_v14 = vmul.f32 0.2, %v5262_v45  ;;  %v5268_v48 = vld [vmem:[#allocation41_spill] sm:$0xff] }
 0x3a0   :  { %5259 = vst [vmem:[#allocation22_spill] sm:$0xff] %v4711_v59  ;;  %v5264_v59 = vld [vmem:[#allocation32_spill] sm:$0xff]  ;;  %v4742_v33 = vmul.f32 0.2, %v5268_v48  ;;  %2074 = vst [vmem:[#allocation8 + $0x78] sm:$0xff] %v2010_v29  ;;  %v5274_v51 = vld [vmem:[#allocation43_spill] sm:$0xff] }
 0x3a1   :  { %5255 = vst [vmem:[#allocation14_spill] sm:$0xff] %v4697_v63  ;;  %v5260_v63 = vld [vmem:[#allocation35_spill] sm:$0xff]  ;;  %5263 = vst [vmem:[#allocation25_spill] sm:$0xff] %v4725_v14  ;;  %v4728_v20 = vmul.f32 0.2, %v5264_v59  ;;  %v5275_v18 = vld [vmem:[#allocation42_spill] sm:$0xff] }
 0x3a2   :  { %v4714_v16 = vmul.f32 0.2, %v5260_v63  ;;  %5269 = vst [vmem:[#allocation28_spill] sm:$0xff] %v4742_v33  ;;  %v4759_v48 = vmul.f32 0.2, %v5274_v51  ;;  %2075 = vst [vmem:[#allocation8 + $0x80] sm:$0xff] %v2011_v6 }
 0x3a3   :  { %5265 = vst [vmem:[#allocation24_spill] sm:$0xff] %v4728_v20  ;;  %v5270_v20 = vld [vmem:[#allocation34_spill] sm:$0xff]  ;;  %v5280_v46 = vld [vmem:[#allocation45_spill] sm:$0xff]  ;;  %v5281_v29 = vld [vmem:[#allocation19_spill] sm:$0xff] }
 0x3a4   :  { %5261 = vst [vmem:[#allocation27_spill] sm:$0xff] %v4714_v16  ;;  %v5266_v16 = vld [vmem:[#allocation39_spill] sm:$0xff]  ;;  %v4745_v14 = vmul.f32 0.2, %v5270_v20  ;;  %vm1922_vm0 = vcmp.gt.f32.partialorder %v5270_v20, 0.0  ;;  %vm1927_vm6 = vcmp.gt.f32.partialorder %v5280_v46, 0.0 }
 0x3a5   :  { %v4731_v30 = vmul.f32 0.2, %v5266_v16  ;;  %v5279_v16 = vld [vmem:[#allocation16_spill] sm:$0xff]  ;;  %vm1929_vm7 = vcmp.gt.f32.partialorder %v5281_v29, 0.0  ;;  %v5282_v51 = vld [vmem:[#allocation18_spill] sm:$0xff]  ;;  %v5283_v6 = vld [vmem:[#allocation21_spill] sm:$0xff] }
 0x3a6   :  { %5271 = vst [vmem:[#allocation30_spill] sm:$0xff] %v4745_v14  ;;  %v4762_v14 = vmul.f32 0.2, %v5275_v18  ;;  %v2012_v3 = vsel %vm1884_vm2, %v4353_v61, %v5279_v16  ;;  %v4776_v18 = vmul.f32 0.2, %v5280_v46  ;;  %v2013_v61 = vsel %vm1885_vm3, %v4356_v26, %v4553_v32  ;;  %v5287_v32 = vld [vmem:[#allocation20_spill] sm:$0xff] }
 0x3a7   :  { %5267 = vst [vmem:[#allocation29_spill] sm:$0xff] %v4731_v30  ;;  %v5272_v30 = vld [vmem:[#allocation40_spill] sm:$0xff]  ;;  %2076 = vst [vmem:[#allocation8 + $0x88] sm:$0xff] %v2012_v3  ;;  %v2014_v16 = vsel %vm1886_vm4, %v4359_v37, %v4556_v58  ;;  %vm5284_vm2 = vcmp.gt.f32.partialorder %v4362_v44, 0.0  ;;  %vm5286_vm3 = vcmp.gt.f32.partialorder %v4368_v17, 0.0  ;;  %v2018_v37 = vsel %vm1890_vm8, %v4371_v9, %v5287_v32  ;;  %v5290_v58 = vld [vmem:[#allocation23_spill] sm:$0xff] }
 0x3a8   :  { %v4748_v63 = vmul.f32 0.2, %v5272_v30  ;;  %5276 = vst [vmem:[#allocation32_spill] sm:$0xff] %v4762_v14  ;;  %v4779_v14 = vmul.f32 0.2, %v5281_v29  ;;  %v2015_v29 = vsel %vm5284_vm2, %v4362_v44, %v5283_v6  ;;  %v2017_v26 = vsel %vm5286_vm3, %v4368_v17, %v4569_v36  ;;  %2077 = vst [vmem:[#allocation8 + $0x90] sm:$0xff] %v2013_v61 }
 0x3a9   :  { %vm5288_vm4 = vcmp.gt.f32.partialorder %v4374_v28, 0.0  ;;  %vm5291_vm2 = vcmp.gt.f32.partialorder %v4380_v25, 0.0  ;;  %2078 = vst [vmem:[#allocation8 + $0x98] sm:$0xff] %v2014_v16  ;;  %2079 = vst [vmem:[#allocation8 + $0xa0] sm:$0xff] %v2015_v29  ;;  %v2022_v9 = vsel %vm1894_vm9, %v4383_v60, %v4592_v43  ;;  %vm5292_vm8 = vcmp.gt.f32.partialorder %v4386_v23, 0.0  ;;  %v5329_v61 = vld [vmem:[#allocation39_spill] sm:$0xff] }
 0x3aa   :  { %5273 = vst [vmem:[#allocation33_spill] sm:$0xff] %v4748_v63  ;;  %v5277_v63 = vld [vmem:[#allocation44_spill] sm:$0xff]  ;;  %v2019_v44 = vsel %vm5288_vm4, %v4374_v28, %v4579_v50  ;;  %v2021_v17 = vsel %vm5291_vm2, %v4380_v25, %v5290_v58  ;;  %2081 = vst [vmem:[#allocation8 + $0xb0] sm:$0xff] %v2017_v26  ;;  %v2023_v28 = vsel %vm5292_vm8, %v4386_v23, %v4595_v54  ;;  %vm5293_vm3 = vcmp.gt.f32.partialorder %v4389_v13, 0.0  ;;  %v5295_v23 = vld [vmem:[#allocation46_spill] sm:$0xff] }
 0x3ab   :  { %v4765_v33 = vmul.f32 0.2, %v5277_v63  ;;  %vm1926_vm1 = vcmp.gt.f32.partialorder %v5277_v63, 0.0  ;;  %vm5294_vm4 = vcmp.gt.f32.partialorder %v4392_v47, 0.0  ;;  %2082 = vst [vmem:[#allocation8 + $0xb8] sm:$0xff] %v2018_v37  ;;  %2083 = vst [vmem:[#allocation8 + $0xc0] sm:$0xff] %v2019_v44  ;;  %v2026_v60 = vsel %vm1898_vm10, %v4395_v40, %v4611_v19 }
 0x3ac   :  { %v2025_v25 = vsel %vm5294_vm4, %v4392_v47, %v4608_v1  ;;  %2085 = vst [vmem:[#allocation8 + $0xd0] sm:$0xff] %v2021_v17  ;;  %vm5296_vm9 = vcmp.gt.f32.partialorder %v4398_v34, 0.0  ;;  %vm5298_vm2 = vcmp.gt.f32.partialorder %v4404_v41, 0.0  ;;  %2086 = vst [vmem:[#allocation8 + $0xd8] sm:$0xff] %v2022_v9  ;;  %v5299_v40 = vld [vmem:[#allocation47_spill] sm:$0xff]  ;;  %vm5300_vm10 = vcmp.gt.f32.partialorder %v4410_v27, 0.0 }
 0x3ad   :  { %5278 = vst [vmem:[#allocation34_spill] sm:$0xff] %v4765_v33  ;;  %v4782_v33 = vmul.f32 0.2, %v5282_v51  ;;  %v2016_v51 = vsel %vm5285_vm5, %v4365_v10, %v4566_v62  ;;  %vm5289_vm5 = vcmp.gt.f32.partialorder %v4377_v53, 0.0  ;;  %v2027_v62 = vsel %vm5296_vm9, %v4398_v34, %v5295_v23  ;;  %2087 = vst [vmem:[#allocation8 + $0xe0] sm:$0xff] %v2023_v28  ;;  %v5314_v19 = vld [vmem:[#allocation17_spill] sm:$0xff] }
 0x3ae   :  { %v2020_v10 = vsel %vm5289_vm5, %v4377_v53, %v4582_v56  ;;  %2080 = vst [vmem:[#allocation8 + $0xa8] sm:$0xff] %v2016_v51  ;;  %v2024_v53 = vsel %vm5293_vm3, %v4389_v13, %v4598_v57  ;;  %vm5297_vm5 = vcmp.gt.f32.partialorder %v4401_v4, 0.0  ;;  %v2029_v47 = vsel %vm5298_vm2, %v4404_v41, %v4627_v21  ;;  %2089 = vst [vmem:[#allocation8 + $0xf0] sm:$0xff] %v2025_v25  ;;  %v5302_v41 = vld [vmem:[#allocation12_spill] sm:$0xff]  ;;  %v5332_v26 = vld [vmem:[#allocation41_spill] sm:$0xff] }
 0x3af   :  { %2084 = vst [vmem:[#allocation8 + $0xc8] sm:$0xff] %v2020_v10  ;;  %v2028_v13 = vsel %vm5297_vm5, %v4401_v4, %v4624_v12  ;;  %2088 = vst [vmem:[#allocation8 + $0xe8] sm:$0xff] %v2024_v53  ;;  %v2030_v36 = vsel %vm1902_vm11, %v4407_v22, %v5299_v40  ;;  %v2031_v34 = vsel %vm5300_vm10, %v4410_v27, %v4640_v31  ;;  %vm5301_vm8 = vcmp.gt.f32.partialorder %v4413_v35, 0.0  ;;  %v5315_v12 = vld [vmem:[#allocation31_spill] sm:$0xff]  ;;  %v5318_v31 = vld [vmem:[#allocation36_spill] sm:$0xff] }
 0x3b0   :  { %v2032_v4 = vsel %vm5301_vm8, %v4413_v35, %v4643_v49  ;;  %vm5303_vm3 = vcmp.gt.f32.partialorder %v4416_v8, 0.0  ;;  %2090 = vst [vmem:[#allocation8 + $0xf8] sm:$0xff] %v2026_v60  ;;  %2091 = vst [vmem:[#allocation8 + $0x100] sm:$0xff] %v2027_v62  ;;  %v2034_v22 = vsel %vm1906_vm12, %v4419_v52, %v4657_v2  ;;  %vm5304_vm11 = vcmp.gt.f32.partialorder %v4422_v55, 0.0  ;;  %v5305_v35 = vld [vmem:[#allocation13_spill] sm:$0xff]  ;;  %v5309_v52 = vld [vmem:[#allocation15_spill] sm:$0xff] }
 0x3b1   :  { %v2033_v50 = vsel %vm5303_vm3, %v4416_v8, %v5302_v41  ;;  %2092 = vst [vmem:[#allocation8 + $0x108] sm:$0xff] %v2028_v13  ;;  %2093 = vst [vmem:[#allocation8 + $0x110] sm:$0xff] %v2029_v47  ;;  %v2035_v27 = vsel %vm5304_vm11, %v4422_v55, %v4660_v38  ;;  %vm5306_vm4 = vcmp.gt.f32.partialorder %v4425_v11, 0.0  ;;  %v5307_v8 = vld [vmem:[#allocation26_spill] sm:$0xff]  ;;  %v2038_v54 = vsel %vm1910_vm13, %v4431_v24, %v5309_v52  ;;  %v5310_v55 = vld [vmem:[#allocation37_spill] sm:$0xff] }
 0x3b2   :  { %v2036_v56 = vsel %vm5306_vm4, %v4425_v11, %v5305_v35  ;;  %vm5308_vm9 = vcmp.gt.f32.partialorder %v5307_v8, 0.0  ;;  %2094 = vst [vmem:[#allocation8 + $0x118] sm:$0xff] %v2030_v36  ;;  %2095 = vst [vmem:[#allocation8 + $0x120] sm:$0xff] %v2031_v34  ;;  %vm5311_vm12 = vcmp.gt.f32.partialorder %v4434_v5, 0.0  ;;  %v5312_v11 = vld [vmem:[#allocation38_spill] sm:$0xff]  ;;  %vm5313_vm5 = vcmp.gt.f32.partialorder %v4437_v7, 0.0 }
 0x3b3   :  { %v2037_v43 = vsel %vm5308_vm9, %v5307_v8, %v4674_v39  ;;  %2096 = vst [vmem:[#allocation8 + $0x128] sm:$0xff] %v2032_v4  ;;  %2097 = vst [vmem:[#allocation8 + $0x130] sm:$0xff] %v2033_v50  ;;  %v2039_v57 = vsel %vm5311_vm12, %v4434_v5, %v5310_v55  ;;  %v2040_v1 = vsel %vm5313_vm5, %v4437_v7, %v5312_v11  ;;  %vm5316_vm2 = vcmp.gt.f32.partialorder %v5315_v12, 0.0  ;;  %v5317_v24 = vld [vmem:[#allocation14_spill] sm:$0xff]  ;;  %v5322_v38 = vld [vmem:[#allocation27_spill] sm:$0xff] }
 0x3b4   :  { %v2041_v21 = vsel %vm5316_vm2, %v5315_v12, %v5314_v19  ;;  %2098 = vst [vmem:[#allocation8 + $0x138] sm:$0xff] %v2034_v22  ;;  %2099 = vst [vmem:[#allocation8 + $0x140] sm:$0xff] %v2035_v27  ;;  %v2042_v5 = vsel %vm1914_vm14, %v5254_v42, %v5317_v24  ;;  %vm5319_vm13 = vcmp.gt.f32.partialorder %v5256_v15, 0.0  ;;  %v5320_v49 = vld [vmem:[#allocation22_spill] sm:$0xff]  ;;  %vm5321_vm10 = vcmp.gt.f32.partialorder %v5258_v0, 0.0  ;;  %v5323_v39 = vld [vmem:[#allocation35_spill] sm:$0xff] }
 0x3b5   :  { %2100 = vst [vmem:[#allocation8 + $0x148] sm:$0xff] %v2036_v56  ;;  %2101 = vst [vmem:[#allocation8 + $0x150] sm:$0xff] %v2037_v43  ;;  %v2043_v7 = vsel %vm5319_vm13, %v5256_v15, %v5318_v31  ;;  %v2044_v2 = vsel %vm5321_vm10, %v5258_v0, %v5320_v49  ;;  %vm5324_vm8 = vcmp.gt.f32.partialorder %v5323_v39, 0.0  ;;  %v5325_v42 = vld [vmem:[#allocation25_spill] sm:$0xff]  ;;  %v5326_v15 = vld [vmem:[#allocation24_spill] sm:$0xff]  ;;  %vm5327_vm14 = vcmp.gt.f32.partialorder %v5264_v59, 0.0 }
 0x3b6   :  { %v2045_v51 = vsel %vm5324_vm8, %v5323_v39, %v5322_v38  ;;  %2102 = vst [vmem:[#allocation8 + $0x158] sm:$0xff] %v2038_v54  ;;  %2103 = vst [vmem:[#allocation8 + $0x160] sm:$0xff] %v2039_v57  ;;  %v2046_v3 = vsel %vm1918_vm15, %v5262_v45, %v5325_v42  ;;  %v2047_v29 = vsel %vm5327_vm14, %v5264_v59, %v5326_v15  ;;  %v5328_v0 = vld [vmem:[#allocation29_spill] sm:$0xff]  ;;  %vm5330_vm3 = vcmp.gt.f32.partialorder %v5329_v61, 0.0  ;;  %v5331_v6 = vld [vmem:[#allocation28_spill] sm:$0xff] }
 0x3b7   :  { %2104 = vst [vmem:[#allocation8 + $0x168] sm:$0xff] %v2040_v1  ;;  %2105 = vst [vmem:[#allocation8 + $0x170] sm:$0xff] %v2041_v21  ;;  %v2048_v16 = vsel %vm5330_vm3, %v5329_v61, %v5328_v0  ;;  %vm5333_vm11 = vcmp.gt.f32.partialorder %v5332_v26, 0.0  ;;  %v5334_v45 = vld [vmem:[#allocation30_spill] sm:$0xff]  ;;  %v5335_v59 = vld [vmem:[#allocation33_spill] sm:$0xff]  ;;  %vm5336_vm15 = vcmp.gt.f32.partialorder %v5272_v30, 0.0 }
 0x3b8   :  { %v2049_v32 = vsel %vm5333_vm11, %v5332_v26, %v5331_v6  ;;  %2106 = vst [vmem:[#allocation8 + $0x178] sm:$0xff] %v2042_v5  ;;  %2107 = vst [vmem:[#allocation8 + $0x180] sm:$0xff] %v2043_v7  ;;  %v2050_v37 = vsel %vm1922_vm0, %v5270_v20, %v5334_v45  ;;  %v2051_v44 = vsel %vm5336_vm15, %v5272_v30, %v5335_v59  ;;  %v5337_v10 = vld [vmem:[#allocation43_spill] sm:$0xff]  ;;  %v5339_v17 = vld [vmem:[#allocation32_spill] sm:$0xff] }
 0x3b9   :  { %2108 = vst [vmem:[#allocation8 + $0x188] sm:$0xff] %v2044_v2  ;;  %2109 = vst [vmem:[#allocation8 + $0x190] sm:$0xff] %v2045_v51  ;;  %vm5338_vm4 = vcmp.gt.f32.partialorder %v5337_v10, 0.0  ;;  %v5340_v9 = vld [vmem:[#allocation42_spill] sm:$0xff]  ;;  %v5343_v53 = vld [vmem:[#allocation19_spill] sm:$0xff] }
 0x3ba   :  { %v2052_v58 = vsel %vm5338_vm4, %v5337_v10, %v4759_v48  ;;  %vm5341_vm9 = vcmp.gt.f32.partialorder %v5340_v9, 0.0  ;;  %2110 = vst [vmem:[#allocation8 + $0x198] sm:$0xff] %v2046_v3  ;;  %2111 = vst [vmem:[#allocation8 + $0x1a0] sm:$0xff] %v2047_v29  ;;  %v5342_v20 = vld [vmem:[#allocation34_spill] sm:$0xff]  ;;  %v2055_v48 = vsel %vm1927_vm6, %v5280_v46, %v4776_v18  ;;  %v2057_v25 = vsel %vm1929_vm7, %v5343_v53, %v4779_v14 }
 0x3bb   :  { %v2053_v28 = vsel %vm5341_vm9, %v5340_v9, %v5339_v17  ;;  %2112 = vst [vmem:[#allocation8 + $0x1a8] sm:$0xff] %v2048_v16  ;;  %2113 = vst [vmem:[#allocation8 + $0x1b0] sm:$0xff] %v2049_v32  ;;  %v2054_v30 = vsel %vm1926_vm1, %v5277_v63, %v5342_v20  ;;  %v5344_v60 = vld [vmem:[#allocation18_spill] sm:$0xff] }
 0x3bc   :  { %vm5345_vm0 = vcmp.gt.f32.partialorder %v5344_v60, 0.0  ;;  %2114 = vst [vmem:[#allocation8 + $0x1b8] sm:$0xff] %v2050_v37  ;;  %2115 = vst [vmem:[#allocation8 + $0x1c0] sm:$0xff] %v2051_v44 }
 0x3bd   :  { %v2058_v23 = vsel %vm5345_vm0, %v5344_v60, %v4782_v33  ;;  %2116 = vst [vmem:[#allocation8 + $0x1c8] sm:$0xff] %v2052_v58  ;;  %2117 = vst [vmem:[#allocation8 + $0x1d0] sm:$0xff] %v2053_v28 }
 0x3be   :  { %2118 = vst [vmem:[#allocation8 + $0x1d8] sm:$0xff] %v2054_v30  ;;  %2119 = vst [vmem:[#allocation8 + $0x1e0] sm:$0xff] %v2055_v48 }
 0x3bf   :  { %2121 = vst [vmem:[#allocation8 + $0x1f0] sm:$0xff] %v2057_v25  ;;  %2122 = vst [vmem:[#allocation8 + $0x1f8] sm:$0xff] %v2058_v23 }
 0x3c0   :  { %2560 = shalt.err (!%p2557_p5)
}
 0x3c1   :  { %2134 = dma.vmem_to_hbm [thread:$0]  %s2129_s6, 8192, %s4977_s7, [#allocation4], %s2579_s11, %s2579_s11, %s2580_s12  }
 0x3c2   :  { %2573 = dma.done.wait [#allocation4], 8192  }
 0x3c3   :  { %2574 = vsyncadd [#allocation4], 4294959104 }
 0x3c4   :  { %2138 = vsyncpa [#allocation3], 1 }
 0x3c5   :  { %2139 = vsyncpa [#allocation6], 1 }
 0x3c6   :  { %2140 = vsyncpa [#allocation4], 1 }

</bundles_post_ra>
